<compile_context>
chip_gen: v6e
topology: v6e:2x2x1
jax: 0.10.0
libtpu: 0.0.40
codegen_flags: <defaults>
</compile_context>

<pallas_src>
import math
import functools
import numpy as np

import jax
import jax.numpy as jnp
from jax.experimental import pallas as pl
from jax.experimental.pallas import tpu as pltpu

LFR_F = 16  # hidden width of the LFR body (module default f=16)


def _sigmoid(x):
    # EUP exp + EUP approximate reciprocal; keeps the divide off the VALU slot.
    return pl.reciprocal(1.0 + jnp.exp(-x), approx=True)


def _const_spec(shape):
    nd = len(shape)
    return pl.BlockSpec(shape, lambda *_: (0,) * nd)


# ---------------------------------------------------------------------------
# Fused LFR kernel.  One grid step processes a group of G batches as a
# (G, C, L) block; per batch everything is plain 2-D matmuls (channels on
# sublanes, length on lanes).  The G per-batch chains are independent and
# statically unrolled so the scheduler can interleave them.
# ---------------------------------------------------------------------------
def _lfr_kernel(x_ref, w1_ref, b1_ref, pool_ref, w2f_ref, b2_ref, sel2_ref,
                w3f_ref, b3_ref, sel3_ref, interp_ref, o_ref):
    # Constant operands: load once, reused for every batch in the group.
    w1 = w1_ref[...]            # (f, C)      bf16
    b1 = b1_ref[...]            # (f, 1)      f32
    pool = pool_ref[...]        # (L, n1p)    bf16
    w2f = w2f_ref[...]          # (f, 3f)     bf16
    b2 = b2_ref[...]            # (f, 1)      f32
    w3f = w3f_ref[...]          # (C, 3f)     bf16
    b3 = b3_ref[...]            # (C, 1)      f32
    interp = interp_ref[...]    # (n2p, L)    bf16
    sel2 = [sel2_ref[k] for k in range(3)]    # 3 x (n1p, n2p) bf16
    sel3 = [sel3_ref[k] for k in range(3)]    # 3 x (n2p, n2p) bf16

    mxu = w1.dtype
    f = w1.shape[0]
    G = x_ref.shape[0]

    for g in range(G):                                   # static unroll
        x = x_ref[g]                                     # (C, L) f32
        gate = _sigmoid(x[0:1, :])                       # (1, L)

        # Conv1d(C -> f, kernel=1)
        y = jnp.dot(w1, x.astype(mxu),
                    preferred_element_type=jnp.float32) + b1          # (f, L)

        # SoftPooling1D(7, stride=3): avg(exp(clamp(y))*y) / avg(exp(clamp(y))).
        # num & den fused into ONE matmul on the stacked (2f, L) operand.
        xe = jnp.exp(jnp.clip(y, -10.0, 10.0))
        stacked = jnp.concatenate([xe * y, xe], axis=0).astype(mxu)    # (2f, L)
        pooled = jnp.dot(stacked, pool,
                         preferred_element_type=jnp.float32)           # (2f, n1p)
        yp = pooled[:f] * pl.reciprocal(pooled[f:], approx=True)       # (f, n1p)

        # Conv1d(f -> f, k=3, stride=2, pad=1): stack the 3 tap shifts along
        # channels, then ONE matmul with the flattened (f, 3f) weight.
        ypb = yp.astype(mxu)
        sh2 = jnp.concatenate(
            [jnp.dot(ypb, sel2[k], preferred_element_type=jnp.float32)
             for k in range(3)], axis=0).astype(mxu)                   # (3f, n2p)
        z = jnp.dot(w2f, sh2, preferred_element_type=jnp.float32) + b2

        # Conv1d(f -> C, k=3, pad=1): same tap-stacking trick.
        zb = z.astype(mxu)
        sh3 = jnp.concatenate(
            [jnp.dot(zb, sel3[k], preferred_element_type=jnp.float32)
             for k in range(3)], axis=0).astype(mxu)                   # (3f, n2p)
        u = jnp.dot(w3f, sh3, preferred_element_type=jnp.float32) + b3
        w_sig = _sigmoid(u)                                            # (C, n2p)

        # F.interpolate(mode='linear', align_corners=False) back to length L.
        w_full = jnp.dot(w_sig.astype(mxu), interp,
                         preferred_element_type=jnp.float32)           # (C, L)

        o_ref[g] = x * w_full * gate                                   # lane-dense store


# ---------------------------------------------------------------------------
# Shared (per-sequence) pool / conv-shift / interpolation matrices, padded to
# 128-lane widths.  Cached per L; baked in as constants under jit.
# ---------------------------------------------------------------------------
@functools.lru_cache(maxsize=None)
def _lfr_aux_np(L):
    n1 = (L - 7) // 3 + 1              # SoftPool(7, stride=3) output length
    n2 = (n1 - 1) // 2 + 1             # Conv1d(k=3, s=2, p=1) output length
    n1p = max(128, -(-n1 // 128) * 128)
    n2p = max(128, -(-n2 // 128) * 128)

    pool = np.zeros((L, n1p), np.float32)
    for j in range(n1):
        pool[3 * j: 3 * j + 7, j] = 1.0   # 1/7 cancels in the SoftPool ratio
    pool[0, n1:] = 1.0                    # keep padded denominators non-zero

    sel2 = np.zeros((3, n1p, n2p), np.float32)
    sel3 = np.zeros((3, n2p, n2p), np.float32)
    for k in range(3):
        for l in range(n2):
            i = 2 * l + k - 1
            if 0 <= i < n1:
                sel2[k, i, l] = 1.0
            i = l + k - 1
            if 0 <= i < n2:
                sel3[k, i, l] = 1.0

    interp = np.zeros((n2p, L), np.float32)
    scale = n2 / L
    for o in range(L):
        src = max((o + 0.5) * scale - 0.5, 0.0)           # align_corners=False
        i0 = min(int(math.floor(src)), n2 - 1)
        i1 = i0 + 1 if i0 < n2 - 1 else i0
        lam = src - i0
        interp[i0, o] += 1.0 - lam
        interp[i1, o] += lam
    return pool, sel2, sel3, interp, n1p, n2p


def lfr_forward(x, params, *, num_groups=None, mxu_dtype=jnp.bfloat16):
    """x: (B, C, L) float32; params = (w1, b1, w2, b2, w3, b3) PyTorch-shaped."""
    B, C, L = x.shape
    w1, b1, w2, b2, w3, b3 = params
    f = w1.shape[0]

    if num_groups is None:
        # >=2 "parallel" grid steps so v7x's two TensorCores each get a group.
        num_groups = 2 if B % 2 == 0 else 1
    assert B % num_groups == 0, (B, num_groups)
    G = B // num_groups

    pool_np, sel2_np, sel3_np, interp_np, n1p, n2p = _lfr_aux_np(L)
    pool = jnp.asarray(pool_np, mxu_dtype)
    sel2 = jnp.asarray(sel2_np, mxu_dtype)
    sel3 = jnp.asarray(sel3_np, mxu_dtype)
    interp = jnp.asarray(interp_np, mxu_dtype)

    # Flattened conv weights: W2f[o, k*f + i] = w2[o, i, k] (same for W3f).
    w1m = jnp.asarray(w1, mxu_dtype)                                   # (f, C)
    w2f = jnp.transpose(w2, (0, 2, 1)).reshape(f, 3 * f).astype(mxu_dtype)
    w3f = jnp.transpose(w3, (0, 2, 1)).reshape(C, 3 * f).astype(mxu_dtype)
    b1c = jnp.asarray(b1, jnp.float32).reshape(f, 1)
    b2c = jnp.asarray(b2, jnp.float32).reshape(f, 1)
    b3c = jnp.asarray(b3, jnp.float32).reshape(C, 1)

    itemsize = jnp.dtype(mxu_dtype).itemsize
    aux_bytes = itemsize * (w1m.size + w2f.size + w3f.size + pool.size
                            + sel2.size + sel3.size + interp.size) \
        + 4 * (b1c.size + b2c.size + b3c.size)
    flops = 2 * B * (f * C * L + 2 * f * L * n1p + 3 * f * n1p * n2p
                     + 3 * f * f * n2p + 3 * f * n2p * n2p
                     + 3 * C * f * n2p + C * n2p * L)
    transcendentals = B * (f * L + 2 * L + 2 * C * n2p + f * n1p)

    out = pl.pallas_call(
        _lfr_kernel,
        out_shape=jax.ShapeDtypeStruct((B, C, L), jnp.float32),
        grid=(num_groups,),
        in_specs=[
            pl.BlockSpec((G, C, L), lambda g: (g, 0, 0)),
            _const_spec(w1m.shape), _const_spec(b1c.shape), _const_spec(pool.shape),
            _const_spec(w2f.shape), _const_spec(b2c.shape), _const_spec(sel2.shape),
            _const_spec(w3f.shape), _const_spec(b3c.shape), _const_spec(sel3.shape),
            _const_spec(interp.shape),
        ],
        out_specs=pl.BlockSpec((G, C, L), lambda g: (g, 0, 0)),
        compiler_params=pltpu.CompilerParams(
            dimension_semantics=("parallel",),
            vmem_limit_bytes=32 * 1024 * 1024),
        cost_estimate=pl.CostEstimate(
            flops=int(flops),
            transcendentals=int(transcendentals),
            bytes_accessed=int(2 * B * C * L * 4 + aux_bytes)),
    )(x.astype(jnp.float32), w1m, b1c, pool, w2f, b2c, sel2, w3f, b3c, sel3,
      interp)
    return out


# ---------------------------------------------------------------------------
# Pure-JAX f32 reference (independent formulation) for a correctness check.
# ---------------------------------------------------------------------------
def lfr_reference(x, params):
    w1, b1, w2, b2, w3, b3 = params
    B, C, L = x.shape
    f = w1.shape[0]
    g = jax.nn.sigmoid(x[:, :1, :])

    y = jnp.einsum('fc,bcl->bfl', w1, x) + b1[None, :, None]
    xe = jnp.exp(jnp.clip(y, -10.0, 10.0))
    n1 = (L - 7) // 3 + 1
    idx = 3 * jnp.arange(n1)[:, None] + jnp.arange(7)[None, :]
    num = (xe * y)[..., idx].mean(-1)
    den = xe[..., idx].mean(-1)
    y = num / den                                          # (B, f, n1)

    n2 = (n1 - 1) // 2 + 1
    yp = jnp.pad(y, ((0, 0), (0, 0), (1, 1)))
    z = jnp.broadcast_to(b2[None, :, None], (B, f, n2)).astype(jnp.float32)
    for k in range(3):
        z = z + jnp.einsum('oi,bil->bol', w2[:, :, k], yp[:, :, k:k + 2 * n2 - 1:2])

    zp = jnp.pad(z, ((0, 0), (0, 0), (1, 1)))
    u = jnp.broadcast_to(b3[None, :, None], (B, C, n2)).astype(jnp.float32)
    for k in range(3):
        u = u + jnp.einsum('oi,bil->bol', w3[:, :, k], zp[:, :, k:k + n2])
    w_sig = jax.nn.sigmoid(u)

    scale = n2 / L
    src = jnp.maximum((jnp.arange(L) + 0.5) * scale - 0.5, 0.0)
    i0 = jnp.clip(jnp.floor(src).astype(jnp.int32), 0, n2 - 1)
    i1 = jnp.minimum(i0 + 1, n2 - 1)
    lam = (src - i0).astype(jnp.float32)
    w_full = w_sig[..., i0] * (1.0 - lam) + w_sig[..., i1] * lam
    return x * w_full * g


def init_lfr_params(key, channels, f=LFR_F):
    ks = jax.random.split(key, 6)

    def rnd(k, shape, scale):
        return jax.random.normal(k, shape, jnp.float32) * scale

    w1 = rnd(ks[0], (f, channels), 0.08)        # Conv1d(C, f, 1) weight (squeezed)
    b1 = rnd(ks[1], (f,), 0.08)
    w2 = rnd(ks[2], (f, f, 3), 0.08)            # Conv1d(f, f, 3, s=2, p=1)
    b2 = rnd(ks[3], (f,), 0.08)
    w3 = rnd(ks[4], (channels, f, 3), 0.08)     # Conv1d(f, C, 3, p=1)
    b3 = rnd(ks[5], (channels,), 0.08)
    return (w1, b1, w2, b2, w3, b3)


if __name__ == "__main__":
    # Small shapes consistent with the module: x is (batch, channels, length).
    # L = 128 keeps the output store lane-dense; L >= 7 needed for SoftPool(7,3).
    B, C, L = 8, 64, 128

    key = jax.random.PRNGKey(0)
    kx, kp = jax.random.split(key)
    x = jax.random.normal(kx, (B, C, L), jnp.float32)
    params = init_lfr_params(kp, C)

    fwd = jax.jit(lfr_forward)
    out = jax.block_until_ready(fwd(x, params))

    assert out.shape == (B, C, L), out.shape
    assert bool(jnp.all(jnp.isfinite(out)))

    ref = lfr_reference(x, params)
    max_err = float(jnp.max(jnp.abs(out - ref)))
    mean_err = float(jnp.mean(jnp.abs(out - ref)))
    # bf16 MXU operands + approx EUP reciprocals vs the pure-f32 reference
    # (see review correctness notes); real indexing/semantics bugs are O(0.1+).
    assert max_err < 6e-2, f"max abs diff vs reference: {max_err}"
    assert mean_err < 1e-2, f"mean abs diff vs reference: {mean_err}"

    print("KERNEL_OK")
</pallas_src>

<mosaic_0001>
module attributes {stable_mosaic.version = 11 : i64} {
  func.func @_lfr_kernel(%arg0: i32, %arg1: memref<4x64x128xf32, #tpu.memory_space<vmem>>, %arg2: memref<16x64xbf16, #tpu.memory_space<vmem>>, %arg3: memref<16x1xf32, #tpu.memory_space<vmem>>, %arg4: memref<128x128xbf16, #tpu.memory_space<vmem>>, %arg5: memref<16x48xbf16, #tpu.memory_space<vmem>>, %arg6: memref<16x1xf32, #tpu.memory_space<vmem>>, %arg7: memref<3x128x128xbf16, #tpu.memory_space<vmem>>, %arg8: memref<64x48xbf16, #tpu.memory_space<vmem>>, %arg9: memref<64x1xf32, #tpu.memory_space<vmem>>, %arg10: memref<3x128x128xbf16, #tpu.memory_space<vmem>>, %arg11: memref<128x128xbf16, #tpu.memory_space<vmem>>, %arg12: memref<4x64x128xf32, #tpu.memory_space<vmem>>) attributes {dimension_semantics = [#tpu.dimension_semantics<parallel>], iteration_bounds = array<i64: 2>, scalar_prefetch = 0 : i64, scratch_operands = 0 : i64, tpu.core_type = #tpu.core_type<tc>, window_params = [{transform_indices = @transform_0, window_bounds = array<i64: 4, 64, 128>}, {pipeline_mode = #tpu.pipeline_mode<synchronous>, transform_indices = @transform_1, window_bounds = array<i64: 16, 64>}, {pipeline_mode = #tpu.pipeline_mode<synchronous>, transform_indices = @transform_2, window_bounds = array<i64: 16, 1>}, {pipeline_mode = #tpu.pipeline_mode<synchronous>, transform_indices = @transform_3, window_bounds = array<i64: 128, 128>}, {pipeline_mode = #tpu.pipeline_mode<synchronous>, transform_indices = @transform_4, window_bounds = array<i64: 16, 48>}, {pipeline_mode = #tpu.pipeline_mode<synchronous>, transform_indices = @transform_5, window_bounds = array<i64: 16, 1>}, {pipeline_mode = #tpu.pipeline_mode<synchronous>, transform_indices = @transform_6, window_bounds = array<i64: 3, 128, 128>}, {pipeline_mode = #tpu.pipeline_mode<synchronous>, transform_indices = @transform_7, window_bounds = array<i64: 64, 48>}, {pipeline_mode = #tpu.pipeline_mode<synchronous>, transform_indices = @transform_8, window_bounds = array<i64: 64, 1>}, {pipeline_mode = #tpu.pipeline_mode<synchronous>, transform_indices = @transform_9, window_bounds = array<i64: 3, 128, 128>}, {pipeline_mode = #tpu.pipeline_mode<synchronous>, transform_indices = @transform_10, window_bounds = array<i64: 128, 128>}, {transform_indices = @transform_11, window_bounds = array<i64: 4, 64, 128>}]} {
    %c0 = arith.constant 0 : index
    %c0_0 = arith.constant 0 : index
    %0 = vector.load %arg2[%c0, %c0_0] : memref<16x64xbf16, #tpu.memory_space<vmem>>, vector<16x64xbf16>
    %c0_1 = arith.constant 0 : index
    %c0_2 = arith.constant 0 : index
    %1 = vector.load %arg3[%c0_1, %c0_2] : memref<16x1xf32, #tpu.memory_space<vmem>>, vector<16x1xf32>
    %c0_3 = arith.constant 0 : index
    %c0_4 = arith.constant 0 : index
    %2 = vector.load %arg4[%c0_3, %c0_4] : memref<128x128xbf16, #tpu.memory_space<vmem>>, vector<128x128xbf16>
    %c0_5 = arith.constant 0 : index
    %c0_6 = arith.constant 0 : index
    %3 = vector.load %arg5[%c0_5, %c0_6] : memref<16x48xbf16, #tpu.memory_space<vmem>>, vector<16x48xbf16>
    %c0_7 = arith.constant 0 : index
    %c0_8 = arith.constant 0 : index
    %4 = vector.load %arg6[%c0_7, %c0_8] : memref<16x1xf32, #tpu.memory_space<vmem>>, vector<16x1xf32>
    %c0_9 = arith.constant 0 : index
    %c0_10 = arith.constant 0 : index
    %5 = vector.load %arg8[%c0_9, %c0_10] : memref<64x48xbf16, #tpu.memory_space<vmem>>, vector<64x48xbf16>
    %c0_11 = arith.constant 0 : index
    %c0_12 = arith.constant 0 : index
    %6 = vector.load %arg9[%c0_11, %c0_12] : memref<64x1xf32, #tpu.memory_space<vmem>>, vector<64x1xf32>
    %c0_13 = arith.constant 0 : index
    %c0_14 = arith.constant 0 : index
    %7 = vector.load %arg11[%c0_13, %c0_14] : memref<128x128xbf16, #tpu.memory_space<vmem>>, vector<128x128xbf16>
    %c0_15 = arith.constant 0 : index
    %c0_16 = arith.constant 0 : index
    %c0_17 = arith.constant 0 : index
    %8 = vector.load %arg7[%c0_15, %c0_16, %c0_17] : memref<3x128x128xbf16, #tpu.memory_space<vmem>>, vector<1x128x128xbf16>
    %9 = vector.shape_cast %8 : vector<1x128x128xbf16> to vector<128x128xbf16>
    %c1 = arith.constant 1 : index
    %c0_18 = arith.constant 0 : index
    %c0_19 = arith.constant 0 : index
    %10 = vector.load %arg7[%c1, %c0_18, %c0_19] : memref<3x128x128xbf16, #tpu.memory_space<vmem>>, vector<1x128x128xbf16>
    %11 = vector.shape_cast %10 : vector<1x128x128xbf16> to vector<128x128xbf16>
    %c2 = arith.constant 2 : index
    %c0_20 = arith.constant 0 : index
    %c0_21 = arith.constant 0 : index
    %12 = vector.load %arg7[%c2, %c0_20, %c0_21] : memref<3x128x128xbf16, #tpu.memory_space<vmem>>, vector<1x128x128xbf16>
    %13 = vector.shape_cast %12 : vector<1x128x128xbf16> to vector<128x128xbf16>
    %c0_22 = arith.constant 0 : index
    %c0_23 = arith.constant 0 : index
    %c0_24 = arith.constant 0 : index
    %14 = vector.load %arg10[%c0_22, %c0_23, %c0_24] : memref<3x128x128xbf16, #tpu.memory_space<vmem>>, vector<1x128x128xbf16>
    %15 = vector.shape_cast %14 : vector<1x128x128xbf16> to vector<128x128xbf16>
    %c1_25 = arith.constant 1 : index
    %c0_26 = arith.constant 0 : index
    %c0_27 = arith.constant 0 : index
    %16 = vector.load %arg10[%c1_25, %c0_26, %c0_27] : memref<3x128x128xbf16, #tpu.memory_space<vmem>>, vector<1x128x128xbf16>
    %17 = vector.shape_cast %16 : vector<1x128x128xbf16> to vector<128x128xbf16>
    %c2_28 = arith.constant 2 : index
    %c0_29 = arith.constant 0 : index
    %c0_30 = arith.constant 0 : index
    %18 = vector.load %arg10[%c2_28, %c0_29, %c0_30] : memref<3x128x128xbf16, #tpu.memory_space<vmem>>, vector<1x128x128xbf16>
    %19 = vector.shape_cast %18 : vector<1x128x128xbf16> to vector<128x128xbf16>
    %c0_31 = arith.constant 0 : index
    %c0_32 = arith.constant 0 : index
    %c0_33 = arith.constant 0 : index
    %20 = vector.load %arg1[%c0_31, %c0_32, %c0_33] : memref<4x64x128xf32, #tpu.memory_space<vmem>>, vector<1x64x128xf32>
    %21 = vector.shape_cast %20 : vector<1x64x128xf32> to vector<64x128xf32>
    %22 = vector.extract_strided_slice %21 {offsets = [0, 0], sizes = [1, 128], strides = [1, 1]} : vector<64x128xf32> to vector<1x128xf32>
    %cst = arith.constant 0.000000e+00 : f32
    %23 = vector.broadcast %cst : f32 to vector<1x128xf32>
    %24 = arith.subf %23, %22 : vector<1x128xf32>
    %25 = math.exp %24 : vector<1x128xf32>
    %cst_34 = arith.constant 1.000000e+00 : f32
    %26 = vector.broadcast %cst_34 : f32 to vector<1x128xf32>
    %27 = arith.addf %26, %25 : vector<1x128xf32>
    %28 = tpu.reciprocal %27 {approx = true} : vector<1x128xf32> -> vector<1x128xf32>
    %29 = arith.truncf %21 : vector<64x128xf32> to vector<64x128xbf16>
    %cst_35 = arith.constant dense<0.000000e+00> : vector<16x128xf32>
    %30 = tpu.matmul %0, %29, %cst_35 {dimension_numbers = #tpu.dot_dimension_numbers<[1], [0], [0], [1], [0, 0, 1, 1], [], []>} : vector<16x64xbf16>, vector<64x128xbf16>, vector<16x128xf32> -> vector<16x128xf32>
    %31 = vector.broadcast %1 : vector<16x1xf32> to vector<16x128xf32>
    %32 = arith.addf %30, %31 : vector<16x128xf32>
    %cst_36 = arith.constant -1.000000e+01 : f32
    %cst_37 = arith.constant 1.000000e+01 : f32
    %33 = vector.broadcast %cst_36 : f32 to vector<16x128xf32>
    %34 = arith.maximumf %33, %32 : vector<16x128xf32>
    %35 = vector.broadcast %cst_37 : f32 to vector<16x128xf32>
    %36 = arith.minimumf %35, %34 : vector<16x128xf32>
    %37 = math.exp %36 : vector<16x128xf32>
    %38 = arith.mulf %37, %32 : vector<16x128xf32>
    %39 = tpu.concatenate %38, %37 in 0 : vector<16x128xf32>, vector<16x128xf32> -> vector<32x128xf32>
    %40 = arith.truncf %39 : vector<32x128xf32> to vector<32x128xbf16>
    %cst_38 = arith.constant dense<0.000000e+00> : vector<32x128xf32>
    %41 = tpu.matmul %40, %2, %cst_38 {dimension_numbers = #tpu.dot_dimension_numbers<[1], [0], [0], [1], [0, 0, 1, 1], [], []>} : vector<32x128xbf16>, vector<128x128xbf16>, vector<32x128xf32> -> vector<32x128xf32>
    %42 = vector.extract_strided_slice %41 {offsets = [0, 0], sizes = [16, 128], strides = [1, 1]} : vector<32x128xf32> to vector<16x128xf32>
    %43 = vector.extract_strided_slice %41 {offsets = [16, 0], sizes = [16, 128], strides = [1, 1]} : vector<32x128xf32> to vector<16x128xf32>
    %44 = tpu.reciprocal %43 {approx = true} : vector<16x128xf32> -> vector<16x128xf32>
    %45 = arith.mulf %42, %44 : vector<16x128xf32>
    %46 = arith.truncf %45 : vector<16x128xf32> to vector<16x128xbf16>
    %cst_39 = arith.constant dense<0.000000e+00> : vector<16x128xf32>
    %47 = tpu.matmul %46, %9, %cst_39 {dimension_numbers = #tpu.dot_dimension_numbers<[1], [0], [0], [1], [0, 0, 1, 1], [], []>} : vector<16x128xbf16>, vector<128x128xbf16>, vector<16x128xf32> -> vector<16x128xf32>
    %cst_40 = arith.constant dense<0.000000e+00> : vector<16x128xf32>
    %48 = tpu.matmul %46, %11, %cst_40 {dimension_numbers = #tpu.dot_dimension_numbers<[1], [0], [0], [1], [0, 0, 1, 1], [], []>} : vector<16x128xbf16>, vector<128x128xbf16>, vector<16x128xf32> -> vector<16x128xf32>
    %cst_41 = arith.constant dense<0.000000e+00> : vector<16x128xf32>
    %49 = tpu.matmul %46, %13, %cst_41 {dimension_numbers = #tpu.dot_dimension_numbers<[1], [0], [0], [1], [0, 0, 1, 1], [], []>} : vector<16x128xbf16>, vector<128x128xbf16>, vector<16x128xf32> -> vector<16x128xf32>
    %50 = tpu.concatenate %47, %48, %49 in 0 : vector<16x128xf32>, vector<16x128xf32>, vector<16x128xf32> -> vector<48x128xf32>
    %51 = arith.truncf %50 : vector<48x128xf32> to vector<48x128xbf16>
    %cst_42 = arith.constant dense<0.000000e+00> : vector<16x128xf32>
    %52 = tpu.matmul %3, %51, %cst_42 {dimension_numbers = #tpu.dot_dimension_numbers<[1], [0], [0], [1], [0, 0, 1, 1], [], []>} : vector<16x48xbf16>, vector<48x128xbf16>, vector<16x128xf32> -> vector<16x128xf32>
    %53 = vector.broadcast %4 : vector<16x1xf32> to vector<16x128xf32>
    %54 = arith.addf %52, %53 : vector<16x128xf32>
    %55 = arith.truncf %54 : vector<16x128xf32> to vector<16x128xbf16>
    %cst_43 = arith.constant dense<0.000000e+00> : vector<16x128xf32>
    %56 = tpu.matmul %55, %15, %cst_43 {dimension_numbers = #tpu.dot_dimension_numbers<[1], [0], [0], [1], [0, 0, 1, 1], [], []>} : vector<16x128xbf16>, vector<128x128xbf16>, vector<16x128xf32> -> vector<16x128xf32>
    %cst_44 = arith.constant dense<0.000000e+00> : vector<16x128xf32>
    %57 = tpu.matmul %55, %17, %cst_44 {dimension_numbers = #tpu.dot_dimension_numbers<[1], [0], [0], [1], [0, 0, 1, 1], [], []>} : vector<16x128xbf16>, vector<128x128xbf16>, vector<16x128xf32> -> vector<16x128xf32>
    %cst_45 = arith.constant dense<0.000000e+00> : vector<16x128xf32>
    %58 = tpu.matmul %55, %19, %cst_45 {dimension_numbers = #tpu.dot_dimension_numbers<[1], [0], [0], [1], [0, 0, 1, 1], [], []>} : vector<16x128xbf16>, vector<128x128xbf16>, vector<16x128xf32> -> vector<16x128xf32>
    %59 = tpu.concatenate %56, %57, %58 in 0 : vector<16x128xf32>, vector<16x128xf32>, vector<16x128xf32> -> vector<48x128xf32>
    %60 = arith.truncf %59 : vector<48x128xf32> to vector<48x128xbf16>
    %cst_46 = arith.constant dense<0.000000e+00> : vector<64x128xf32>
    %61 = tpu.matmul %5, %60, %cst_46 {dimension_numbers = #tpu.dot_dimension_numbers<[1], [0], [0], [1], [0, 0, 1, 1], [], []>} : vector<64x48xbf16>, vector<48x128xbf16>, vector<64x128xf32> -> vector<64x128xf32>
    %62 = vector.broadcast %6 : vector<64x1xf32> to vector<64x128xf32>
    %63 = arith.addf %61, %62 : vector<64x128xf32>
    %cst_47 = arith.constant 0.000000e+00 : f32
    %64 = vector.broadcast %cst_47 : f32 to vector<64x128xf32>
    %65 = arith.subf %64, %63 : vector<64x128xf32>
    %66 = math.exp %65 : vector<64x128xf32>
    %cst_48 = arith.constant 1.000000e+00 : f32
    %67 = vector.broadcast %cst_48 : f32 to vector<64x128xf32>
    %68 = arith.addf %67, %66 : vector<64x128xf32>
    %69 = tpu.reciprocal %68 {approx = true} : vector<64x128xf32> -> vector<64x128xf32>
    %70 = arith.truncf %69 : vector<64x128xf32> to vector<64x128xbf16>
    %cst_49 = arith.constant dense<0.000000e+00> : vector<64x128xf32>
    %71 = tpu.matmul %70, %7, %cst_49 {dimension_numbers = #tpu.dot_dimension_numbers<[1], [0], [0], [1], [0, 0, 1, 1], [], []>} : vector<64x128xbf16>, vector<128x128xbf16>, vector<64x128xf32> -> vector<64x128xf32>
    %72 = arith.mulf %21, %71 : vector<64x128xf32>
    %73 = vector.broadcast %28 : vector<1x128xf32> to vector<64x128xf32>
    %74 = arith.mulf %72, %73 : vector<64x128xf32>
    %c0_50 = arith.constant 0 : index
    %c0_51 = arith.constant 0 : index
    %c0_52 = arith.constant 0 : index
    %75 = vector.load %arg12[%c0_50, %c0_51, %c0_52] : memref<4x64x128xf32, #tpu.memory_space<vmem>>, vector<1x64x128xf32>
    %76 = vector.shape_cast %75 : vector<1x64x128xf32> to vector<64x128xf32>
    %77 = vector.shape_cast %74 : vector<64x128xf32> to vector<1x64x128xf32>
    tpu.vector_store %arg12[%c0_50, %c0_51, %c0_52], %77 {strides = array<i32>} : memref<4x64x128xf32, #tpu.memory_space<vmem>>, vector<1x64x128xf32>,
    %c1_53 = arith.constant 1 : index
    %c0_54 = arith.constant 0 : index
    %c0_55 = arith.constant 0 : index
    %78 = vector.load %arg1[%c1_53, %c0_54, %c0_55] : memref<4x64x128xf32, #tpu.memory_space<vmem>>, vector<1x64x128xf32>
    %79 = vector.shape_cast %78 : vector<1x64x128xf32> to vector<64x128xf32>
    %80 = vector.extract_strided_slice %79 {offsets = [0, 0], sizes = [1, 128], strides = [1, 1]} : vector<64x128xf32> to vector<1x128xf32>
    %cst_56 = arith.constant 0.000000e+00 : f32
    %81 = vector.broadcast %cst_56 : f32 to vector<1x128xf32>
    %82 = arith.subf %81, %80 : vector<1x128xf32>
    %83 = math.exp %82 : vector<1x128xf32>
    %cst_57 = arith.constant 1.000000e+00 : f32
    %84 = vector.broadcast %cst_57 : f32 to vector<1x128xf32>
    %85 = arith.addf %84, %83 : vector<1x128xf32>
    %86 = tpu.reciprocal %85 {approx = true} : vector<1x128xf32> -> vector<1x128xf32>
    %87 = arith.truncf %79 : vector<64x128xf32> to vector<64x128xbf16>
    %cst_58 = arith.constant dense<0.000000e+00> : vector<16x128xf32>
    %88 = tpu.matmul %0, %87, %cst_58 {dimension_numbers = #tpu.dot_dimension_numbers<[1], [0], [0], [1], [0, 0, 1, 1], [], []>} : vector<16x64xbf16>, vector<64x128xbf16>, vector<16x128xf32> -> vector<16x128xf32>
    %89 = vector.broadcast %1 : vector<16x1xf32> to vector<16x128xf32>
    %90 = arith.addf %88, %89 : vector<16x128xf32>
    %cst_59 = arith.constant -1.000000e+01 : f32
    %cst_60 = arith.constant 1.000000e+01 : f32
    %91 = vector.broadcast %cst_59 : f32 to vector<16x128xf32>
    %92 = arith.maximumf %91, %90 : vector<16x128xf32>
    %93 = vector.broadcast %cst_60 : f32 to vector<16x128xf32>
    %94 = arith.minimumf %93, %92 : vector<16x128xf32>
    %95 = math.exp %94 : vector<16x128xf32>
    %96 = arith.mulf %95, %90 : vector<16x128xf32>
    %97 = tpu.concatenate %96, %95 in 0 : vector<16x128xf32>, vector<16x128xf32> -> vector<32x128xf32>
    %98 = arith.truncf %97 : vector<32x128xf32> to vector<32x128xbf16>
    %cst_61 = arith.constant dense<0.000000e+00> : vector<32x128xf32>
    %99 = tpu.matmul %98, %2, %cst_61 {dimension_numbers = #tpu.dot_dimension_numbers<[1], [0], [0], [1], [0, 0, 1, 1], [], []>} : vector<32x128xbf16>, vector<128x128xbf16>, vector<32x128xf32> -> vector<32x128xf32>
    %100 = vector.extract_strided_slice %99 {offsets = [0, 0], sizes = [16, 128], strides = [1, 1]} : vector<32x128xf32> to vector<16x128xf32>
    %101 = vector.extract_strided_slice %99 {offsets = [16, 0], sizes = [16, 128], strides = [1, 1]} : vector<32x128xf32> to vector<16x128xf32>
    %102 = tpu.reciprocal %101 {approx = true} : vector<16x128xf32> -> vector<16x128xf32>
    %103 = arith.mulf %100, %102 : vector<16x128xf32>
    %104 = arith.truncf %103 : vector<16x128xf32> to vector<16x128xbf16>
    %cst_62 = arith.constant dense<0.000000e+00> : vector<16x128xf32>
    %105 = tpu.matmul %104, %9, %cst_62 {dimension_numbers = #tpu.dot_dimension_numbers<[1], [0], [0], [1], [0, 0, 1, 1], [], []>} : vector<16x128xbf16>, vector<128x128xbf16>, vector<16x128xf32> -> vector<16x128xf32>
    %cst_63 = arith.constant dense<0.000000e+00> : vector<16x128xf32>
    %106 = tpu.matmul %104, %11, %cst_63 {dimension_numbers = #tpu.dot_dimension_numbers<[1], [0], [0], [1], [0, 0, 1, 1], [], []>} : vector<16x128xbf16>, vector<128x128xbf16>, vector<16x128xf32> -> vector<16x128xf32>
    %cst_64 = arith.constant dense<0.000000e+00> : vector<16x128xf32>
    %107 = tpu.matmul %104, %13, %cst_64 {dimension_numbers = #tpu.dot_dimension_numbers<[1], [0], [0], [1], [0, 0, 1, 1], [], []>} : vector<16x128xbf16>, vector<128x128xbf16>, vector<16x128xf32> -> vector<16x128xf32>
    %108 = tpu.concatenate %105, %106, %107 in 0 : vector<16x128xf32>, vector<16x128xf32>, vector<16x128xf32> -> vector<48x128xf32>
    %109 = arith.truncf %108 : vector<48x128xf32> to vector<48x128xbf16>
    %cst_65 = arith.constant dense<0.000000e+00> : vector<16x128xf32>
    %110 = tpu.matmul %3, %109, %cst_65 {dimension_numbers = #tpu.dot_dimension_numbers<[1], [0], [0], [1], [0, 0, 1, 1], [], []>} : vector<16x48xbf16>, vector<48x128xbf16>, vector<16x128xf32> -> vector<16x128xf32>
    %111 = vector.broadcast %4 : vector<16x1xf32> to vector<16x128xf32>
    %112 = arith.addf %110, %111 : vector<16x128xf32>
    %113 = arith.truncf %112 : vector<16x128xf32> to vector<16x128xbf16>
    %cst_66 = arith.constant dense<0.000000e+00> : vector<16x128xf32>
    %114 = tpu.matmul %113, %15, %cst_66 {dimension_numbers = #tpu.dot_dimension_numbers<[1], [0], [0], [1], [0, 0, 1, 1], [], []>} : vector<16x128xbf16>, vector<128x128xbf16>, vector<16x128xf32> -> vector<16x128xf32>
    %cst_67 = arith.constant dense<0.000000e+00> : vector<16x128xf32>
    %115 = tpu.matmul %113, %17, %cst_67 {dimension_numbers = #tpu.dot_dimension_numbers<[1], [0], [0], [1], [0, 0, 1, 1], [], []>} : vector<16x128xbf16>, vector<128x128xbf16>, vector<16x128xf32> -> vector<16x128xf32>
    %cst_68 = arith.constant dense<0.000000e+00> : vector<16x128xf32>
    %116 = tpu.matmul %113, %19, %cst_68 {dimension_numbers = #tpu.dot_dimension_numbers<[1], [0], [0], [1], [0, 0, 1, 1], [], []>} : vector<16x128xbf16>, vector<128x128xbf16>, vector<16x128xf32> -> vector<16x128xf32>
    %117 = tpu.concatenate %114, %115, %116 in 0 : vector<16x128xf32>, vector<16x128xf32>, vector<16x128xf32> -> vector<48x128xf32>
    %118 = arith.truncf %117 : vector<48x128xf32> to vector<48x128xbf16>
    %cst_69 = arith.constant dense<0.000000e+00> : vector<64x128xf32>
    %119 = tpu.matmul %5, %118, %cst_69 {dimension_numbers = #tpu.dot_dimension_numbers<[1], [0], [0], [1], [0, 0, 1, 1], [], []>} : vector<64x48xbf16>, vector<48x128xbf16>, vector<64x128xf32> -> vector<64x128xf32>
    %120 = vector.broadcast %6 : vector<64x1xf32> to vector<64x128xf32>
    %121 = arith.addf %119, %120 : vector<64x128xf32>
    %cst_70 = arith.constant 0.000000e+00 : f32
    %122 = vector.broadcast %cst_70 : f32 to vector<64x128xf32>
    %123 = arith.subf %122, %121 : vector<64x128xf32>
    %124 = math.exp %123 : vector<64x128xf32>
    %cst_71 = arith.constant 1.000000e+00 : f32
    %125 = vector.broadcast %cst_71 : f32 to vector<64x128xf32>
    %126 = arith.addf %125, %124 : vector<64x128xf32>
    %127 = tpu.reciprocal %126 {approx = true} : vector<64x128xf32> -> vector<64x128xf32>
    %128 = arith.truncf %127 : vector<64x128xf32> to vector<64x128xbf16>
    %cst_72 = arith.constant dense<0.000000e+00> : vector<64x128xf32>
    %129 = tpu.matmul %128, %7, %cst_72 {dimension_numbers = #tpu.dot_dimension_numbers<[1], [0], [0], [1], [0, 0, 1, 1], [], []>} : vector<64x128xbf16>, vector<128x128xbf16>, vector<64x128xf32> -> vector<64x128xf32>
    %130 = arith.mulf %79, %129 : vector<64x128xf32>
    %131 = vector.broadcast %86 : vector<1x128xf32> to vector<64x128xf32>
    %132 = arith.mulf %130, %131 : vector<64x128xf32>
    %c1_73 = arith.constant 1 : index
    %c0_74 = arith.constant 0 : index
    %c0_75 = arith.constant 0 : index
    %133 = vector.load %arg12[%c1_73, %c0_74, %c0_75] : memref<4x64x128xf32, #tpu.memory_space<vmem>>, vector<1x64x128xf32>
    %134 = vector.shape_cast %133 : vector<1x64x128xf32> to vector<64x128xf32>
    %135 = vector.shape_cast %132 : vector<64x128xf32> to vector<1x64x128xf32>
    tpu.vector_store %arg12[%c1_73, %c0_74, %c0_75], %135 {strides = array<i32>} : memref<4x64x128xf32, #tpu.memory_space<vmem>>, vector<1x64x128xf32>,
    %c2_76 = arith.constant 2 : index
    %c0_77 = arith.constant 0 : index
    %c0_78 = arith.constant 0 : index
    %136 = vector.load %arg1[%c2_76, %c0_77, %c0_78] : memref<4x64x128xf32, #tpu.memory_space<vmem>>, vector<1x64x128xf32>
    %137 = vector.shape_cast %136 : vector<1x64x128xf32> to vector<64x128xf32>
    %138 = vector.extract_strided_slice %137 {offsets = [0, 0], sizes = [1, 128], strides = [1, 1]} : vector<64x128xf32> to vector<1x128xf32>
    %cst_79 = arith.constant 0.000000e+00 : f32
    %139 = vector.broadcast %cst_79 : f32 to vector<1x128xf32>
    %140 = arith.subf %139, %138 : vector<1x128xf32>
    %141 = math.exp %140 : vector<1x128xf32>
    %cst_80 = arith.constant 1.000000e+00 : f32
    %142 = vector.broadcast %cst_80 : f32 to vector<1x128xf32>
    %143 = arith.addf %142, %141 : vector<1x128xf32>
    %144 = tpu.reciprocal %143 {approx = true} : vector<1x128xf32> -> vector<1x128xf32>
    %145 = arith.truncf %137 : vector<64x128xf32> to vector<64x128xbf16>
    %cst_81 = arith.constant dense<0.000000e+00> : vector<16x128xf32>
    %146 = tpu.matmul %0, %145, %cst_81 {dimension_numbers = #tpu.dot_dimension_numbers<[1], [0], [0], [1], [0, 0, 1, 1], [], []>} : vector<16x64xbf16>, vector<64x128xbf16>, vector<16x128xf32> -> vector<16x128xf32>
    %147 = vector.broadcast %1 : vector<16x1xf32> to vector<16x128xf32>
    %148 = arith.addf %146, %147 : vector<16x128xf32>
    %cst_82 = arith.constant -1.000000e+01 : f32
    %cst_83 = arith.constant 1.000000e+01 : f32
    %149 = vector.broadcast %cst_82 : f32 to vector<16x128xf32>
    %150 = arith.maximumf %149, %148 : vector<16x128xf32>
    %151 = vector.broadcast %cst_83 : f32 to vector<16x128xf32>
    %152 = arith.minimumf %151, %150 : vector<16x128xf32>
    %153 = math.exp %152 : vector<16x128xf32>
    %154 = arith.mulf %153, %148 : vector<16x128xf32>
    %155 = tpu.concatenate %154, %153 in 0 : vector<16x128xf32>, vector<16x128xf32> -> vector<32x128xf32>
    %156 = arith.truncf %155 : vector<32x128xf32> to vector<32x128xbf16>
    %cst_84 = arith.constant dense<0.000000e+00> : vector<32x128xf32>
    %157 = tpu.matmul %156, %2, %cst_84 {dimension_numbers = #tpu.dot_dimension_numbers<[1], [0], [0], [1], [0, 0, 1, 1], [], []>} : vector<32x128xbf16>, vector<128x128xbf16>, vector<32x128xf32> -> vector<32x128xf32>
    %158 = vector.extract_strided_slice %157 {offsets = [0, 0], sizes = [16, 128], strides = [1, 1]} : vector<32x128xf32> to vector<16x128xf32>
    %159 = vector.extract_strided_slice %157 {offsets = [16, 0], sizes = [16, 128], strides = [1, 1]} : vector<32x128xf32> to vector<16x128xf32>
    %160 = tpu.reciprocal %159 {approx = true} : vector<16x128xf32> -> vector<16x128xf32>
    %161 = arith.mulf %158, %160 : vector<16x128xf32>
    %162 = arith.truncf %161 : vector<16x128xf32> to vector<16x128xbf16>
    %cst_85 = arith.constant dense<0.000000e+00> : vector<16x128xf32>
    %163 = tpu.matmul %162, %9, %cst_85 {dimension_numbers = #tpu.dot_dimension_numbers<[1], [0], [0], [1], [0, 0, 1, 1], [], []>} : vector<16x128xbf16>, vector<128x128xbf16>, vector<16x128xf32> -> vector<16x128xf32>
    %cst_86 = arith.constant dense<0.000000e+00> : vector<16x128xf32>
    %164 = tpu.matmul %162, %11, %cst_86 {dimension_numbers = #tpu.dot_dimension_numbers<[1], [0], [0], [1], [0, 0, 1, 1], [], []>} : vector<16x128xbf16>, vector<128x128xbf16>, vector<16x128xf32> -> vector<16x128xf32>
    %cst_87 = arith.constant dense<0.000000e+00> : vector<16x128xf32>
    %165 = tpu.matmul %162, %13, %cst_87 {dimension_numbers = #tpu.dot_dimension_numbers<[1], [0], [0], [1], [0, 0, 1, 1], [], []>} : vector<16x128xbf16>, vector<128x128xbf16>, vector<16x128xf32> -> vector<16x128xf32>
    %166 = tpu.concatenate %163, %164, %165 in 0 : vector<16x128xf32>, vector<16x128xf32>, vector<16x128xf32> -> vector<48x128xf32>
    %167 = arith.truncf %166 : vector<48x128xf32> to vector<48x128xbf16>
    %cst_88 = arith.constant dense<0.000000e+00> : vector<16x128xf32>
    %168 = tpu.matmul %3, %167, %cst_88 {dimension_numbers = #tpu.dot_dimension_numbers<[1], [0], [0], [1], [0, 0, 1, 1], [], []>} : vector<16x48xbf16>, vector<48x128xbf16>, vector<16x128xf32> -> vector<16x128xf32>
    %169 = vector.broadcast %4 : vector<16x1xf32> to vector<16x128xf32>
    %170 = arith.addf %168, %169 : vector<16x128xf32>
    %171 = arith.truncf %170 : vector<16x128xf32> to vector<16x128xbf16>
    %cst_89 = arith.constant dense<0.000000e+00> : vector<16x128xf32>
    %172 = tpu.matmul %171, %15, %cst_89 {dimension_numbers = #tpu.dot_dimension_numbers<[1], [0], [0], [1], [0, 0, 1, 1], [], []>} : vector<16x128xbf16>, vector<128x128xbf16>, vector<16x128xf32> -> vector<16x128xf32>
    %cst_90 = arith.constant dense<0.000000e+00> : vector<16x128xf32>
    %173 = tpu.matmul %171, %17, %cst_90 {dimension_numbers = #tpu.dot_dimension_numbers<[1], [0], [0], [1], [0, 0, 1, 1], [], []>} : vector<16x128xbf16>, vector<128x128xbf16>, vector<16x128xf32> -> vector<16x128xf32>
    %cst_91 = arith.constant dense<0.000000e+00> : vector<16x128xf32>
    %174 = tpu.matmul %171, %19, %cst_91 {dimension_numbers = #tpu.dot_dimension_numbers<[1], [0], [0], [1], [0, 0, 1, 1], [], []>} : vector<16x128xbf16>, vector<128x128xbf16>, vector<16x128xf32> -> vector<16x128xf32>
    %175 = tpu.concatenate %172, %173, %174 in 0 : vector<16x128xf32>, vector<16x128xf32>, vector<16x128xf32> -> vector<48x128xf32>
    %176 = arith.truncf %175 : vector<48x128xf32> to vector<48x128xbf16>
    %cst_92 = arith.constant dense<0.000000e+00> : vector<64x128xf32>
    %177 = tpu.matmul %5, %176, %cst_92 {dimension_numbers = #tpu.dot_dimension_numbers<[1], [0], [0], [1], [0, 0, 1, 1], [], []>} : vector<64x48xbf16>, vector<48x128xbf16>, vector<64x128xf32> -> vector<64x128xf32>
    %178 = vector.broadcast %6 : vector<64x1xf32> to vector<64x128xf32>
    %179 = arith.addf %177, %178 : vector<64x128xf32>
    %cst_93 = arith.constant 0.000000e+00 : f32
    %180 = vector.broadcast %cst_93 : f32 to vector<64x128xf32>
    %181 = arith.subf %180, %179 : vector<64x128xf32>
    %182 = math.exp %181 : vector<64x128xf32>
    %cst_94 = arith.constant 1.000000e+00 : f32
    %183 = vector.broadcast %cst_94 : f32 to vector<64x128xf32>
    %184 = arith.addf %183, %182 : vector<64x128xf32>
    %185 = tpu.reciprocal %184 {approx = true} : vector<64x128xf32> -> vector<64x128xf32>
    %186 = arith.truncf %185 : vector<64x128xf32> to vector<64x128xbf16>
    %cst_95 = arith.constant dense<0.000000e+00> : vector<64x128xf32>
    %187 = tpu.matmul %186, %7, %cst_95 {dimension_numbers = #tpu.dot_dimension_numbers<[1], [0], [0], [1], [0, 0, 1, 1], [], []>} : vector<64x128xbf16>, vector<128x128xbf16>, vector<64x128xf32> -> vector<64x128xf32>
    %188 = arith.mulf %137, %187 : vector<64x128xf32>
    %189 = vector.broadcast %144 : vector<1x128xf32> to vector<64x128xf32>
    %190 = arith.mulf %188, %189 : vector<64x128xf32>
    %c2_96 = arith.constant 2 : index
    %c0_97 = arith.constant 0 : index
    %c0_98 = arith.constant 0 : index
    %191 = vector.load %arg12[%c2_96, %c0_97, %c0_98] : memref<4x64x128xf32, #tpu.memory_space<vmem>>, vector<1x64x128xf32>
    %192 = vector.shape_cast %191 : vector<1x64x128xf32> to vector<64x128xf32>
    %193 = vector.shape_cast %190 : vector<64x128xf32> to vector<1x64x128xf32>
    tpu.vector_store %arg12[%c2_96, %c0_97, %c0_98], %193 {strides = array<i32>} : memref<4x64x128xf32, #tpu.memory_space<vmem>>, vector<1x64x128xf32>,
    %c3 = arith.constant 3 : index
    %c0_99 = arith.constant 0 : index
    %c0_100 = arith.constant 0 : index
    %194 = vector.load %arg1[%c3, %c0_99, %c0_100] : memref<4x64x128xf32, #tpu.memory_space<vmem>>, vector<1x64x128xf32>
    %195 = vector.shape_cast %194 : vector<1x64x128xf32> to vector<64x128xf32>
    %196 = vector.extract_strided_slice %195 {offsets = [0, 0], sizes = [1, 128], strides = [1, 1]} : vector<64x128xf32> to vector<1x128xf32>
    %cst_101 = arith.constant 0.000000e+00 : f32
    %197 = vector.broadcast %cst_101 : f32 to vector<1x128xf32>
    %198 = arith.subf %197, %196 : vector<1x128xf32>
    %199 = math.exp %198 : vector<1x128xf32>
    %cst_102 = arith.constant 1.000000e+00 : f32
    %200 = vector.broadcast %cst_102 : f32 to vector<1x128xf32>
    %201 = arith.addf %200, %199 : vector<1x128xf32>
    %202 = tpu.reciprocal %201 {approx = true} : vector<1x128xf32> -> vector<1x128xf32>
    %203 = arith.truncf %195 : vector<64x128xf32> to vector<64x128xbf16>
    %cst_103 = arith.constant dense<0.000000e+00> : vector<16x128xf32>
    %204 = tpu.matmul %0, %203, %cst_103 {dimension_numbers = #tpu.dot_dimension_numbers<[1], [0], [0], [1], [0, 0, 1, 1], [], []>} : vector<16x64xbf16>, vector<64x128xbf16>, vector<16x128xf32> -> vector<16x128xf32>
    %205 = vector.broadcast %1 : vector<16x1xf32> to vector<16x128xf32>
    %206 = arith.addf %204, %205 : vector<16x128xf32>
    %cst_104 = arith.constant -1.000000e+01 : f32
    %cst_105 = arith.constant 1.000000e+01 : f32
    %207 = vector.broadcast %cst_104 : f32 to vector<16x128xf32>
    %208 = arith.maximumf %207, %206 : vector<16x128xf32>
    %209 = vector.broadcast %cst_105 : f32 to vector<16x128xf32>
    %210 = arith.minimumf %209, %208 : vector<16x128xf32>
    %211 = math.exp %210 : vector<16x128xf32>
    %212 = arith.mulf %211, %206 : vector<16x128xf32>
    %213 = tpu.concatenate %212, %211 in 0 : vector<16x128xf32>, vector<16x128xf32> -> vector<32x128xf32>
    %214 = arith.truncf %213 : vector<32x128xf32> to vector<32x128xbf16>
    %cst_106 = arith.constant dense<0.000000e+00> : vector<32x128xf32>
    %215 = tpu.matmul %214, %2, %cst_106 {dimension_numbers = #tpu.dot_dimension_numbers<[1], [0], [0], [1], [0, 0, 1, 1], [], []>} : vector<32x128xbf16>, vector<128x128xbf16>, vector<32x128xf32> -> vector<32x128xf32>
    %216 = vector.extract_strided_slice %215 {offsets = [0, 0], sizes = [16, 128], strides = [1, 1]} : vector<32x128xf32> to vector<16x128xf32>
    %217 = vector.extract_strided_slice %215 {offsets = [16, 0], sizes = [16, 128], strides = [1, 1]} : vector<32x128xf32> to vector<16x128xf32>
    %218 = tpu.reciprocal %217 {approx = true} : vector<16x128xf32> -> vector<16x128xf32>
    %219 = arith.mulf %216, %218 : vector<16x128xf32>
    %220 = arith.truncf %219 : vector<16x128xf32> to vector<16x128xbf16>
    %cst_107 = arith.constant dense<0.000000e+00> : vector<16x128xf32>
    %221 = tpu.matmul %220, %9, %cst_107 {dimension_numbers = #tpu.dot_dimension_numbers<[1], [0], [0], [1], [0, 0, 1, 1], [], []>} : vector<16x128xbf16>, vector<128x128xbf16>, vector<16x128xf32> -> vector<16x128xf32>
    %cst_108 = arith.constant dense<0.000000e+00> : vector<16x128xf32>
    %222 = tpu.matmul %220, %11, %cst_108 {dimension_numbers = #tpu.dot_dimension_numbers<[1], [0], [0], [1], [0, 0, 1, 1], [], []>} : vector<16x128xbf16>, vector<128x128xbf16>, vector<16x128xf32> -> vector<16x128xf32>
    %cst_109 = arith.constant dense<0.000000e+00> : vector<16x128xf32>
    %223 = tpu.matmul %220, %13, %cst_109 {dimension_numbers = #tpu.dot_dimension_numbers<[1], [0], [0], [1], [0, 0, 1, 1], [], []>} : vector<16x128xbf16>, vector<128x128xbf16>, vector<16x128xf32> -> vector<16x128xf32>
    %224 = tpu.concatenate %221, %222, %223 in 0 : vector<16x128xf32>, vector<16x128xf32>, vector<16x128xf32> -> vector<48x128xf32>
    %225 = arith.truncf %224 : vector<48x128xf32> to vector<48x128xbf16>
    %cst_110 = arith.constant dense<0.000000e+00> : vector<16x128xf32>
    %226 = tpu.matmul %3, %225, %cst_110 {dimension_numbers = #tpu.dot_dimension_numbers<[1], [0], [0], [1], [0, 0, 1, 1], [], []>} : vector<16x48xbf16>, vector<48x128xbf16>, vector<16x128xf32> -> vector<16x128xf32>
    %227 = vector.broadcast %4 : vector<16x1xf32> to vector<16x128xf32>
    %228 = arith.addf %226, %227 : vector<16x128xf32>
    %229 = arith.truncf %228 : vector<16x128xf32> to vector<16x128xbf16>
    %cst_111 = arith.constant dense<0.000000e+00> : vector<16x128xf32>
    %230 = tpu.matmul %229, %15, %cst_111 {dimension_numbers = #tpu.dot_dimension_numbers<[1], [0], [0], [1], [0, 0, 1, 1], [], []>} : vector<16x128xbf16>, vector<128x128xbf16>, vector<16x128xf32> -> vector<16x128xf32>
    %cst_112 = arith.constant dense<0.000000e+00> : vector<16x128xf32>
    %231 = tpu.matmul %229, %17, %cst_112 {dimension_numbers = #tpu.dot_dimension_numbers<[1], [0], [0], [1], [0, 0, 1, 1], [], []>} : vector<16x128xbf16>, vector<128x128xbf16>, vector<16x128xf32> -> vector<16x128xf32>
    %cst_113 = arith.constant dense<0.000000e+00> : vector<16x128xf32>
    %232 = tpu.matmul %229, %19, %cst_113 {dimension_numbers = #tpu.dot_dimension_numbers<[1], [0], [0], [1], [0, 0, 1, 1], [], []>} : vector<16x128xbf16>, vector<128x128xbf16>, vector<16x128xf32> -> vector<16x128xf32>
    %233 = tpu.concatenate %230, %231, %232 in 0 : vector<16x128xf32>, vector<16x128xf32>, vector<16x128xf32> -> vector<48x128xf32>
    %234 = arith.truncf %233 : vector<48x128xf32> to vector<48x128xbf16>
    %cst_114 = arith.constant dense<0.000000e+00> : vector<64x128xf32>
    %235 = tpu.matmul %5, %234, %cst_114 {dimension_numbers = #tpu.dot_dimension_numbers<[1], [0], [0], [1], [0, 0, 1, 1], [], []>} : vector<64x48xbf16>, vector<48x128xbf16>, vector<64x128xf32> -> vector<64x128xf32>
    %236 = vector.broadcast %6 : vector<64x1xf32> to vector<64x128xf32>
    %237 = arith.addf %235, %236 : vector<64x128xf32>
    %cst_115 = arith.constant 0.000000e+00 : f32
    %238 = vector.broadcast %cst_115 : f32 to vector<64x128xf32>
    %239 = arith.subf %238, %237 : vector<64x128xf32>
    %240 = math.exp %239 : vector<64x128xf32>
    %cst_116 = arith.constant 1.000000e+00 : f32
    %241 = vector.broadcast %cst_116 : f32 to vector<64x128xf32>
    %242 = arith.addf %241, %240 : vector<64x128xf32>
    %243 = tpu.reciprocal %242 {approx = true} : vector<64x128xf32> -> vector<64x128xf32>
    %244 = arith.truncf %243 : vector<64x128xf32> to vector<64x128xbf16>
    %cst_117 = arith.constant dense<0.000000e+00> : vector<64x128xf32>
    %245 = tpu.matmul %244, %7, %cst_117 {dimension_numbers = #tpu.dot_dimension_numbers<[1], [0], [0], [1], [0, 0, 1, 1], [], []>} : vector<64x128xbf16>, vector<128x128xbf16>, vector<64x128xf32> -> vector<64x128xf32>
    %246 = arith.mulf %195, %245 : vector<64x128xf32>
    %247 = vector.broadcast %202 : vector<1x128xf32> to vector<64x128xf32>
    %248 = arith.mulf %246, %247 : vector<64x128xf32>
    %c3_118 = arith.constant 3 : index
    %c0_119 = arith.constant 0 : index
    %c0_120 = arith.constant 0 : index
    %249 = vector.load %arg12[%c3_118, %c0_119, %c0_120] : memref<4x64x128xf32, #tpu.memory_space<vmem>>, vector<1x64x128xf32>
    %250 = vector.shape_cast %249 : vector<1x64x128xf32> to vector<64x128xf32>
    %251 = vector.shape_cast %248 : vector<64x128xf32> to vector<1x64x128xf32>
    tpu.vector_store %arg12[%c3_118, %c0_119, %c0_120], %251 {strides = array<i32>} : memref<4x64x128xf32, #tpu.memory_space<vmem>>, vector<1x64x128xf32>,
    return
  }
  func.func @transform_0(%arg0: i32) -> (i32, i32, i32) {
    %c0_i32 = arith.constant 0 : i32
    %c0_i32_0 = arith.constant 0 : i32
    %c0_i32_1 = arith.constant 0 : i32
    return %arg0, %c0_i32, %c0_i32_0 : i32, i32, i32
  }
  func.func @transform_1(%arg0: i32) -> (i32, i32) {
    %c0_i32 = arith.constant 0 : i32
    %c0_i32_0 = arith.constant 0 : i32
    %c0_i32_1 = arith.constant 0 : i32
    return %c0_i32, %c0_i32_0 : i32, i32
  }
  func.func @transform_2(%arg0: i32) -> (i32, i32) {
    %c0_i32 = arith.constant 0 : i32
    %c0_i32_0 = arith.constant 0 : i32
    %c0_i32_1 = arith.constant 0 : i32
    return %c0_i32, %c0_i32_0 : i32, i32
  }
  func.func @transform_3(%arg0: i32) -> (i32, i32) {
    %c0_i32 = arith.constant 0 : i32
    %c0_i32_0 = arith.constant 0 : i32
    %c0_i32_1 = arith.constant 0 : i32
    return %c0_i32, %c0_i32_0 : i32, i32
  }
  func.func @transform_4(%arg0: i32) -> (i32, i32) {
    %c0_i32 = arith.constant 0 : i32
    %c0_i32_0 = arith.constant 0 : i32
    %c0_i32_1 = arith.constant 0 : i32
    return %c0_i32, %c0_i32_0 : i32, i32
  }
  func.func @transform_5(%arg0: i32) -> (i32, i32) {
    %c0_i32 = arith.constant 0 : i32
    %c0_i32_0 = arith.constant 0 : i32
    %c0_i32_1 = arith.constant 0 : i32
    return %c0_i32, %c0_i32_0 : i32, i32
  }
  func.func @transform_6(%arg0: i32) -> (i32, i32, i32) {
    %c0_i32 = arith.constant 0 : i32
    %c0_i32_0 = arith.constant 0 : i32
    %c0_i32_1 = arith.constant 0 : i32
    %c0_i32_2 = arith.constant 0 : i32
    return %c0_i32, %c0_i32_0, %c0_i32_1 : i32, i32, i32
  }
  func.func @transform_7(%arg0: i32) -> (i32, i32) {
    %c0_i32 = arith.constant 0 : i32
    %c0_i32_0 = arith.constant 0 : i32
    %c0_i32_1 = arith.constant 0 : i32
    return %c0_i32, %c0_i32_0 : i32, i32
  }
  func.func @transform_8(%arg0: i32) -> (i32, i32) {
    %c0_i32 = arith.constant 0 : i32
    %c0_i32_0 = arith.constant 0 : i32
    %c0_i32_1 = arith.constant 0 : i32
    return %c0_i32, %c0_i32_0 : i32, i32
  }
  func.func @transform_9(%arg0: i32) -> (i32, i32, i32) {
    %c0_i32 = arith.constant 0 : i32
    %c0_i32_0 = arith.constant 0 : i32
    %c0_i32_1 = arith.constant 0 : i32
    %c0_i32_2 = arith.constant 0 : i32
    return %c0_i32, %c0_i32_0, %c0_i32_1 : i32, i32, i32
  }
  func.func @transform_10(%arg0: i32) -> (i32, i32) {
    %c0_i32 = arith.constant 0 : i32
    %c0_i32_0 = arith.constant 0 : i32
    %c0_i32_1 = arith.constant 0 : i32
    return %c0_i32, %c0_i32_0 : i32, i32
  }
  func.func @transform_11(%arg0: i32) -> (i32, i32, i32) {
    %c0_i32 = arith.constant 0 : i32
    %c0_i32_0 = arith.constant 0 : i32
    %c0_i32_1 = arith.constant 0 : i32
    return %arg0, %c0_i32, %c0_i32_0 : i32, i32, i32
  }
}

</mosaic_0001>

<bundles_post_ra>
// kernel: lfr_forward.1
= control target key start
LH: loop header
LB: loop body
LE: loop exit
PB: predicated region body
PF: predicated region fallthrough
CT: control target
= control target key end

     0   :  { %s7427_s0 = inlined_call_operand.hbm [shape: f32[8,64,128], index: 0, kind: input, shape index: {}]   ;;  %s7428_s1 = inlined_call_operand.vmem [shape: bf16[16,64], index: 1, kind: input, shape index: {}]   ;;  %s7429_s2 = inlined_call_operand.vmem [shape: f32[16,1], index: 2, kind: input, shape index: {}]   ;;  %s7430_s3 = inlined_call_operand.hbm [shape: bf16[128,128], index: 3, kind: input, shape index: {}]   ;;  %s7431_s4 = inlined_call_operand.vmem [shape: bf16[16,48], index: 4, kind: input, shape index: {}]   ;;  %s7432_s5 = inlined_call_operand.vmem [shape: f32[16,1], index: 5, kind: input, shape index: {}]   ;;  %s7433_s6 = inlined_call_operand.vmem [shape: bf16[3,128,128], index: 6, kind: input, shape index: {}]   ;;  %s7434_s7 = inlined_call_operand.vmem [shape: bf16[64,48], index: 7, kind: input, shape index: {}]   ;;  %s7435_s8 = inlined_call_operand.vmem [shape: f32[64,1], index: 8, kind: input, shape index: {}]   ;;  %s7436_s9 = inlined_call_operand.vmem [shape: bf16[3,128,128], index: 9, kind: input, shape index: {}]   ;;  %s7437_s10 = inlined_call_operand.hbm [shape: bf16[128,128], index: 10, kind: input, shape index: {}]   ;;  %s7438_s11 = inlined_call_operand.hbm [shape: f32[8,64,128], index: 11, kind: output, shape index: {}]  }
   0x1   :  { %7522 = sst [smem:[#allocation47_spill]] %s7430_s3 }
   0x2   :  { %7523 = sst [smem:[#allocation48_spill]] %s7437_s10 }
   0x3   :  { %16 = vsyncpa [#allocation3], 0 }
   0x4   :  { %18 = vsyncpa [#allocation3 + $0x1], 0 }
   0x5   :  { %19 = vsyncpa [#allocation6], 0 }
   0x6   :  { %20 = vsyncpa [#allocation4], 0 }
   0x7   :  { %22 = vsyncpa [#allocation4 + $0x1], 0  ;;  %s5733_s17 = smov 0   ;;  %s5735_s18 = smov 0  }
   0x8   :  { %s5737_s19 = smov 0   ;;  %s5739_s20 = smov 0  }
   0x9 LB: > { %7524 = sst [smem:[#allocation12_spill]] %s5654_s19  ;;  %s5754_s21 = sadd.s32 4294967295, %s5658_s20   ;;  %s5658_s20 = sphi %s5739_s20, %s7652_s20   ;;  %s5654_s19 = sphi %s5737_s19, %s7654_s19   ;;  %s5650_s18 = sphi %s5735_s18, %s7656_s18   ;;  %s5646_s17 = sphi %s5733_s17, %s7655_s17  }
   0xa   : > { %s3681_s22 = sadd.s32 4294967294, %s5658_s20   ;;  %p48_p0 = scmp.ne.s32.totalorder %s5650_s18, %s5646_s17 }
   0xb   : > { %p7439_p1 = scmp.eq.s32.totalorder %s5754_s21, 0  ;;  %p288_p3 = scmp.eq.s32.totalorder %s3681_s22, 1 }
   0xc   : > { %p3682_p5 = scmp.ge.s32.totalorder %s5658_s20, 1  ;;  %p295_p7 = scmp.lt.s32.totalorder %s5658_s20, 3 }
   0xd   : > { %p5763_p4 = por %p7439_p1, %p48_p0  ;;  %p5768_p6 = por %p288_p3, %p48_p0 }
   0xe   : > { %p5773_p8 = pnand %p3682_p5, %p295_p7  ;;  %s5660_s26 = smov [#allocation5]  }
   0xf   : > { %s7525_s23 = scalar_select %p5763_p4, 1, 0 }
  0x10   : > { %s7526_s24 = scalar_select %p5768_p6, 1, 0 }
  0x11   : > { %s7527_s25 = scalar_select %p5773_p8, 1, 0 }
  0x12   : > { %s313_s27 = sshll.u32 %s5660_s26, 4  ;;  %p5099_p9 = pneg %p5773_p8  ;;  %s314_s27 = int_to_ptr.vmem [resolvable:$true] %s313_s27 }
  0x13   : > { %s5661_s29 = smov [#allocation7]   ;;  %s5521_s12 = scalar_lea.vmem %s314_s27, 1024 }
  0x14   : > { %p5782_p11 = pnand %p5099_p9, %p7439_p1  ;;  %s344_s30 = sshll.u32 %s5661_s29, 4  ;;  %s345_s30 = int_to_ptr.vmem [resolvable:$true] %s344_s30 }
  0x15   : > { %p5522_p13 = scmp.ne.s32.totalorder %s314_s27, %s5521_s12  ;;  %p5529_p5 = scmp.lt.s32.totalorder %s314_s27, %s314_s27 }
  0x16   : > { %p5512_p12 = pneg %p5782_p11  ;;  %p5530_p7 = scmp.lt.s32.totalorder %s5521_s12, %s5521_s12 }
  0x18   : > { %p5524_p0 = pnand %p5522_p13, %p5512_p12  ;;  %p5531_p10 = por %p5530_p7, %p5529_p5 }
  0x1a   : > { %p5525_p3 = pneg %p5524_p0 }
  0x1c   : > { %p5532_p9 = pnand %p5531_p10, %p5525_p3 }
  0x1e   : > { %5535 = shalt.err (!%p5532_p9)
}
  0x1f   : > { %s5662_s13 = smov 64   ;;  %s5663_s14 = smov 4  }
  0x20   : > { %s7529_s3 = sld [smem:[#allocation47_spill]]  ;;  %s5547_s22 = scalar_lea.vmem %s345_s30, 1024 }
  0x21   : > { %p5548_p1 = scmp.ne.s32.totalorder %s345_s30, %s5547_s22  ;;  %p5555_p2 = scmp.lt.s32.totalorder %s345_s30, %s345_s30 }
  0x22   : > { %p5556_p6 = scmp.lt.s32.totalorder %s5547_s22, %s5547_s22 }
  0x23   : > { %p5550_p13 = pnand %p5548_p1, %p5512_p12 }
  0x24   : > { %p5557_p5 = por %p5556_p6, %p5555_p2 }
  0x25   : > { %p5551_p0 = pneg %p5550_p13 }
  0x26   : > { %5102 = dma.hbm_to_vmem [thread:$0]  (!%p5782_p11), %s7529_s3, 1024, %s314_s27, [#allocation6], %s5662_s13, %s5662_s13, %s5663_s14  }
  0x27   : > { %p5558_p10 = pnand %p5557_p5, %p5551_p0 }
  0x29   : > { %5561 = shalt.err (!%p5558_p10)
}
  0x2a   : > { %s7530_s10 = sld [smem:[#allocation48_spill]]  ;;  %s5805_s27 = sadd.s32 1, %s5658_s20  }
  0x2b   : > { %7531 = sst [smem:[#allocation13_spill]] %s5805_s27  ;;  %s35_s12 = sadd.s32 1, %s5654_s19 }
  0x2c   : > { %s32_s28 = ssub.s32 %s5658_s20, %s5805_s27  ;;  %p42_p1 = scmp.ne.s32.totalorder %s5654_s19, %s5650_s18 }
  0x2d   : > { %p33_p2 = scmp.eq.s32.totalorder %s32_s28, 0  ;;  %p43_p6 = scmp.eq.s32.totalorder %s5658_s20, 0 }
  0x2e   : > { %p7532_p12 = scmp.eq.s32.totalorder %s5754_s21, 1  ;;  %p5116_p7 = scmp.lt.s32.totalorder %s5658_s20, 2 }
  0x2f   : > { %s5821_s16 = scalar_select %p33_p2, %s5654_s19, %s35_s12  }
  0x30   : > { %5105 = dma.hbm_to_vmem [thread:$0]  (!%p5782_p11), %s7530_s10, 1024, %s345_s30, [#allocation6], %s5662_s13, %s5662_s13, %s5663_s14  }
  0x31   : > { %p5815_p3 = por %p7532_p12, %p42_p1  ;;  %7534 = sst [smem:[#allocation14_spill]] %s5821_s16 }
  0x32   : > { %p44_p9 = por %p43_p6, %p42_p1  ;;  %s358_s22 = sand.u32 1, %s5654_s19  }
  0x33   : > { %s7533_s15 = scalar_select %p5815_p3, 1, 0 }
  0x34   : > { %s3686_s26 = sshll.u32 %s358_s22, 8  ;;  %s3916_s30 = sshll.u32 %s5658_s20, 12 }
  0x35   : > { %s5828_s29 = scalar_lea.hbm %s7427_s0, %s3916_s30  ;;  %s362_s28 = scalar_lea.vmem [#allocation2], %s3686_s26 }
  0x36   : > { %s370_s3 = sshll.u32 %s362_s28, 4  ;;  %p5832_p11 = pnand %p5116_p7, %p44_p9  ;;  %s5830_s3 = int_to_ptr.vmem [resolvable:$true] %s370_s3 }
  0x37   : > { %s5836_s12 = scalar_lea.sflag [#allocation3], %s358_s22  ;;  %s5562_s16 = scalar_lea.hbm %s5828_s29, 4096 }
  0x38   : > { %p5563_p13 = scmp.ne.s32.totalorder %s5828_s29, %s5562_s16  ;;  %p5564_p0 = pneg %p5832_p11 }
  0x39   : > { %s5567_s26 = scalar_lea.hbm %s7427_s0, 8192  ;;  %p5568_p1 = scmp.lt.s32.totalorder %s5828_s29, %s7427_s0 }
  0x3a   : > { %p5565_p5 = pnand %p5564_p0, %p5563_p13  ;;  %p5569_p2 = scmp.lt.s32.totalorder %s5567_s26, %s5562_s16 }
  0x3c   : > { %p5566_p10 = pneg %p5565_p5  ;;  %p5570_p6 = por %p5569_p2, %p5568_p1 }
  0x3e   : > { %p5571_p12 = pnand %p5570_p6, %p5566_p10 }
  0x40   : > { %5574 = shalt.err (!%p5571_p12)
}
  0x41   : > { %s5575_s22 = scalar_lea.vmem %s5830_s3, 4096  ;;  %s5664_s19 = smov [#allocation2]  }
  0x42   : > { %p5576_p7 = scmp.ne.s32.totalorder %s5830_s3, %s5575_s22  ;;  %s5580_s27 = sshll.u32 %s5664_s19, 4  ;;  %s5581_s27 = int_to_ptr.vmem [resolvable:$false] %s5580_s27 }
  0x43   : > { %s5582_s30 = scalar_lea.vmem %s5581_s27, 8192  ;;  %p5583_p5 = scmp.lt.s32.totalorder %s5830_s3, %s5581_s27 }
  0x44   : > { %p5578_p9 = pnand %p5576_p7, %p5564_p0  ;;  %p5584_p3 = scmp.lt.s32.totalorder %s5582_s30, %s5575_s22 }
  0x46   : > { %p5579_p13 = pneg %p5578_p9  ;;  %p5585_p4 = por %p5584_p3, %p5583_p5 }
  0x48   : > { %p5586_p8 = pnand %p5585_p4, %p5579_p13 }
  0x4a   : > { %5589 = shalt.err (!%p5586_p8)
}
  0x4b   : > { %s5665_s16 = smov 128   ;;  %s5666_s13 = smov 8  }
  0x4c   : > { %5109 = dma.hbm_to_vmem [thread:$0]  (!%p5832_p11), %s5828_s29, 4096, %s5830_s3, %s5836_s12, %s5665_s16, %s5665_s16, %s5666_s13  }
  0x4d   : > { %p7536_p0 = scmp.ne.s32.totalorder %s7527_s25, 0 }
  0x4f   : > { %382 = sbr.rel (%p7536_p0) target bundleno = 4779 (0x12ab), region = 64 }
  0x54   : > { %s5860_s19 = sand.u32 1, %s5650_s18   ;;  %p7537_p4 = scmp.ne.s32.totalorder %s7525_s23, 0 }
  0x55   : > { %s3691_s27 = sshll.u32 %s5860_s19, 8  ;;  %s385_s26 = scalar_lea.sflag [#allocation3], %s5860_s19 }
  0x56   : > { %s5866_s14 = scalar_lea.vmem [#allocation2], %s3691_s27 }
  0x57   : > { %5633 = dma.done.wait (%p7537_p4), %s385_s26, 4096  }
  0x58   : > { %5635 = vsyncadd (%p7537_p4), %s385_s26, 4294963200  ;;  %p7538_p8 = scmp.eq.s32.totalorder %s5754_s21, 0 }
  0x5a   : > { %5637 = dma.done.wait (%p7538_p8), [#allocation6], 2048   ;;  %p7539_p3 = pmov %p7538_p8 }
  0x5b   : > { %v7458_v0 = vmov 0.0   ;;  %vm5668_vm0 = vmmov 0   ;;  %v5669_v1 = vmov 0   ;;  %v600_v2 = vld [vmem:[%s5866_s14 + $0x30] sm:$0xff]  ;;  %v601_v3 = vld [vmem:[%s5866_s14 + $0x38] sm:$0xff]  ;;  %v598_v4 = vld [vmem:[%s5866_s14 + $0x20] sm:$0xff] }
  0x5c   : > { %5639 = vsyncadd (%p7539_p3), [#allocation6], 4294965248  ;;  %4287 = vmatprep.subr.bf16.mxu1 %v7458_v0  ;;  %4295 = vmatprep.mubr.msk.bf16.mxu1 %vm5668_vm0, %v7458_v0  ;;  %v610_v5 = vpack.c.bf16 %v601_v3, %v600_v2  ;;  %v599_v6 = vld [vmem:[%s5866_s14 + $0x28] sm:$0xff]  ;;  %v440_v8 = vld [vmem:[%s7429_s2] sm:$0xff]  ;;  %vm626_vm1 = vcmask 523264   ;;  %vm1070_vm2 = vcmask 392192  }
  0x5d   : > { %5163 = vset.pattern.permute.xlu0 %v5669_v1  ;;  %4319 = vmatprep.subr.bf16.mxu0 %v7458_v0  ;;  %v609_v7 = vpack.c.bf16 %v599_v6, %v598_v4  ;;  %v596_v9 = vld [vmem:[%s5866_s14 + $0x10] sm:$0xff]  ;;  %v597_v10 = vld [vmem:[%s5866_s14 + $0x18] sm:$0xff]  ;;  %v441_v11 = vld [vmem:[%s7429_s2 + $0x8] sm:$0xff]  ;;  %s6522_s3 = scalar_lea.vmem [#allocation8], %s3691_s27  ;;  %s3918_s27 = sshll.u32 %s5754_s21, 12 }
  0x5e   : > { %4335 = vmatprep.mubr.msk.bf16.mxu0 %vm5668_vm0, %v7458_v0  ;;  %5164 = vset.pattern.permute.xlu1 %v5669_v1  ;;  %v594_v12 = vld [vmem:[%s5866_s14] sm:$0xff]  ;;  %v595_v13 = vld [vmem:[%s5866_s14 + $0x8] sm:$0xff]  ;;  %v608_v14 = vpack.c.bf16 %v597_v10, %v596_v9  ;;  %v472_v17 = vld [vmem:[%s7435_s8 + $0x10] sm:$0xff]  ;;  %s3589_s10 = sshll.u32 %s6522_s3, 4  ;;  %s7380_s29 = scalar_lea.hbm %s7438_s11, %s3918_s27  ;;  %s7382_s10 = int_to_ptr.vmem [resolvable:$true] %s3589_s10 }
  0x5f   : > { %4288 = vmatpush3.bf16.msra.mxu1 %v610_v5  ;;  %613 = vperm.xlu0 %5163, %v440_v8   ;;  %v470_v15 = vld [vmem:[%s7435_s8] sm:$0xff]  ;;  %v607_v16 = vpack.c.bf16 %v595_v13, %v594_v12  ;;  %v5913_v20 = vld [vmem:[#allocation5 + $0x38] sm:$0xff]   ;;  %v476_v21 = vld [vmem:[%s7435_s8 + $0x30] sm:$0xff]  ;;  %s3575_s21 = scalar_lea.sflag [#allocation4], %s5860_s19  ;;  %s5590_s12 = scalar_lea.vmem %s7382_s10, 4096 }
  0x60   : > { %4289 = vmatprep.subr.bf16.mxu1 %v7458_v0  ;;  %v5908_v18 = vld [vmem:[%s7428_s1] sm:$0xff]   ;;  %v5922_v22 = vld [vmem:[#allocation5 + $0x30] sm:$0xff]   ;;  %v5926_v23 = vld [vmem:[#allocation5 + $0x28] sm:$0xff]   ;;  %p5591_p11 = scmp.ne.s32.totalorder %s7382_s10, %s5590_s12  ;;  %p7649_p10 = scmp.ne.s32.totalorder %s7533_s15, 0 }
  0x61   : > { %v474_v19 = vld [vmem:[%s7435_s8 + $0x20] sm:$0xff]  ;;  %v5934_v25 = vld [vmem:[#allocation5 + $0x18] sm:$0xff]   ;;  %v5938_v26 = vld [vmem:[#allocation5 + $0x10] sm:$0xff]  }
  0x62   : > { %v5930_v24 = vld [vmem:[#allocation5 + $0x20] sm:$0xff]   ;;  %v5942_v27 = vld [vmem:[#allocation5 + $0x8] sm:$0xff]   ;;  %v5954_v29 = vld [vmem:[%s7433_s6 + $0x38] sm:$0xff]   ;;  %p5592_p1 = pnand %p5591_p11, %p7649_p10 }
  0x63   : > { %4290 = vmatpush3.bf16.msra.mxu1 %v609_v7  ;;  %618 = vperm.xlu0 %5163, %v441_v11   ;;  %v5946_v28 = vld [vmem:[#allocation5] sm:$0xff]   ;;  %v5960_v30 = vld [vmem:[%s7433_s6 + $0x30] sm:$0xff]   ;;  %v5967_v31 = vld [vmem:[%s7433_s6 + $0x28] sm:$0xff]  }
  0x64   : > { %4291 = vmatprep.subr.bf16.mxu1 %v7458_v0  ;;  %4320 = vmatpush3.bf16.msra.mxu0 %v5954_v29  ;;  %v5981_v49 = vld [vmem:[%s7433_s6 + $0x78] sm:$0xff]   ;;  %v5987_v51 = vld [vmem:[%s7433_s6 + $0x70] sm:$0xff]   ;;  %v5997_v52 = vld [vmem:[%s7433_s6 + $0x68] sm:$0xff]   ;;  %p5593_p2 = pneg %p5592_p1 }
  0x65   : > { %4321 = vmatprep.subr.bf16.mxu0 %v7458_v0  ;;  %v6003_v53 = vld [vmem:[%s7433_s6 + $0x20] sm:$0xff]   ;;  %v6017_v55 = vld [vmem:[%s7433_s6 + $0x18] sm:$0xff]   ;;  %v6031_v57 = vld [vmem:[%s7433_s6 + $0x10] sm:$0xff]  }
  0x66   : > { %v6009_v54 = vld [vmem:[%s7433_s6 + $0x60] sm:$0xff]   ;;  %v6023_v56 = vld [vmem:[%s7433_s6 + $0x58] sm:$0xff]   ;;  %v6037_v58 = vld [vmem:[%s7433_s6 + $0x50] sm:$0xff]  }
  0x67   : > { %4292 = vmatpush3.bf16.msra.mxu1 %v608_v14  ;;  %1388 = vperm.xlu0 %5163, %v470_v15   ;;  %v6045_v59 = vld [vmem:[%s7433_s6 + $0x8] sm:$0xff]   ;;  %v6059_v61 = vld [vmem:[%s7433_s6] sm:$0xff]   ;;  %v6074_v8 = vld [vmem:[%s7433_s6 + $0xb8] sm:$0xff]  }
  0x68   : > { %4293 = vmatprep.subr.bf16.mxu1 %v7458_v0  ;;  %4322 = vmatpush3.bf16.msra.mxu0 %v5960_v30  ;;  %v6051_v60 = vld [vmem:[%s7433_s6 + $0x48] sm:$0xff]   ;;  %v6065_v62 = vld [vmem:[%s7433_s6 + $0x40] sm:$0xff]   ;;  %v6080_v10 = vld [vmem:[%s7433_s6 + $0xb0] sm:$0xff]  }
  0x69   : > { %4323 = vmatprep.subr.bf16.mxu0 %v7458_v0  ;;  %v6091_v11 = vld [vmem:[%s7433_s6 + $0xa8] sm:$0xff]   ;;  %v6098_v12 = vld [vmem:[%s7433_s6 + $0xa0] sm:$0xff]   ;;  %v6105_v13 = vld [vmem:[%s7433_s6 + $0x98] sm:$0xff]  }
  0x6a   : > { %v6112_v14 = vld [vmem:[%s7433_s6 + $0x90] sm:$0xff]   ;;  %v6119_v15 = vld [vmem:[%s7433_s6 + $0x88] sm:$0xff]  }
  0x6b   : > { %4294 = vmatpush3.bf16.msra.mxu1 %v607_v16  ;;  %1398 = vperm.xlu0 %5163, %v472_v17   ;;  %v6126_v16 = vld [vmem:[%s7433_s6 + $0x80] sm:$0xff]  }
  0x6c   : > { %4299 = vmatprep.subr.bf16.mxu1 %v5913_v20  ;;  %4324 = vmatpush3.bf16.msra.mxu0 %v5967_v31  ;;  %v460_v17 = vld [vmem:[%s7432_s5] sm:$0xff] }
  0x6d   : > { %4325 = vmatprep.subr.bf16.mxu0 %v7458_v0  ;;  %1057 = vperm.xlu1 %5164, %v460_v17   ;;  %v6203_v17 = vld [vmem:[%s7436_s9 + $0x38] sm:$0xff]  }
  0x6e   : > { %4296 = vmatmul.mubr.msk.bf16.vlgmr.msra.gmra.mxu1 %vm626_vm1, %v5908_v18 }
  0x6f   : > { %4300 = vmatpush3.bf16.msra.mxu1 %v5913_v20  ;;  %1408 = vperm.xlu0 %5163, %v474_v19   ;;  %v461_v19 = vld [vmem:[%s7432_s5 + $0x8] sm:$0xff] }
  0x70   : > { %4301 = vmatprep.subr.bf16.mxu1 %v5922_v22  ;;  %4326 = vmatpush3.bf16.msra.mxu0 %v6003_v53 }
  0x71   : > { %4327 = vmatprep.subr.bf16.mxu0 %v7458_v0  ;;  %1062 = vperm.xlu1 %5164, %v461_v19   ;;  %v6212_v19 = vld [vmem:[%s7436_s9 + $0x30] sm:$0xff]  }
  0x73   : > { %1418 = vperm.xlu0 %5163, %v476_v21   ;;  %4302 = vmatpush3.bf16.msra.mxu1 %v5922_v22  ;;  %v6142_v21 = vld [vmem:[%s7436_s9 + $0x78] sm:$0xff]  }
  0x74   : > { %4303 = vmatprep.subr.bf16.mxu1 %v5926_v23  ;;  %4328 = vmatpush3.bf16.msra.mxu0 %v6017_v55 }
  0x75   : > { %4329 = vmatprep.subr.bf16.mxu0 %v7458_v0 }
  0x77   : > { %4304 = vmatpush3.bf16.msra.mxu1 %v5926_v23 }
  0x78   : > { %4305 = vmatprep.subr.bf16.mxu1 %v5930_v24  ;;  %4330 = vmatpush3.bf16.msra.mxu0 %v6031_v57 }
  0x79   : > { %4331 = vmatprep.subr.bf16.mxu0 %v7458_v0 }
  0x7b   : > { %4306 = vmatpush3.bf16.msra.mxu1 %v5930_v24 }
  0x7c   : > { %4307 = vmatprep.subr.bf16.mxu1 %v5934_v25  ;;  %4332 = vmatpush3.bf16.msra.mxu0 %v6045_v59 }
  0x7d   : > { %4333 = vmatprep.subr.bf16.mxu0 %v7458_v0 }
  0x7f   : > { %4308 = vmatpush3.bf16.msra.mxu1 %v5934_v25 }
  0x80   : > { %4309 = vmatprep.subr.bf16.mxu1 %v5938_v26  ;;  %4334 = vmatpush3.bf16.msra.mxu0 %v6059_v61 }
  0x81   : > { %4359 = vmatprep.subr.bf16.mxu0 %v7458_v0 }
  0x83   : > { %4310 = vmatpush3.bf16.msra.mxu1 %v5938_v26 }
  0x84   : > { %4311 = vmatprep.subr.bf16.mxu1 %v5942_v27 }
  0x87   : > { %4312 = vmatpush3.bf16.msra.mxu1 %v5942_v27 }
  0x88   : > { %4313 = vmatprep.subr.bf16.mxu1 %v5946_v28 }
  0x8b   : > { %4314 = vmatpush3.bf16.msra.mxu1 %v5946_v28 }
  0x8c   : > { %4339 = vmatprep.subr.bf16.mxu1 %v7458_v0 }
  0xda   : > { %v5972_v32 = vpop.permute.xlu0 %613 }
  0xdb   : > { %7540 = vst [vmem:[#allocation15_spill] sm:$0xff] %v5972_v32 }
  0xde   : > { %v5975_v37 = vpop.permute.xlu0 %618 }
  0xdf   : > { %7541 = vst [vmem:[#allocation16_spill] sm:$0xff] %v5975_v37 }
 0x12e   : > { %v664_v33 = vpop.f32.mrf.mxu1 }
 0x12f   : > { %v665_v34 = vadd.f32 %v664_v33, %v5972_v32  ;;  %v6149_v33 = vld [vmem:[%s7436_s9 + $0x70] sm:$0xff]  }
 0x130   : > { %v4297_v35 = vpop.f32.mrf.mxu1 }
 0x131   : > { %v3761_v36 = vclamps-f32 %v665_v34, 10.0  ;;  %v6159_v35 = vld [vmem:[%s7436_s9 + $0x68] sm:$0xff]  }
 0x132   : > { %v667_v38 = vpop.f32.mrf.mxu1 }
 0x133   : > { %v675_v39 = vmul.f32 1.442695, %v3761_v36  ;;  %v668_v40 = vadd.f32 %v667_v38, %v5975_v37  ;;  %v473_v36 = vld [vmem:[%s7435_s8 + $0x18] sm:$0xff]  ;;  %v6169_v38 = vld [vmem:[%s7436_s9 + $0x60] sm:$0xff]  }
 0x134   : > { %v4298_v41 = vpop.f32.mrf.mxu1 }
 0x135   : > { %v3762_v42 = vclamps-f32 %v668_v40, 10.0  ;;  %5235 = vpow2.f32 %v675_v39  ;;  %v475_v39 = vld [vmem:[%s7435_s8 + $0x28] sm:$0xff]  ;;  %v477_v41 = vld [vmem:[%s7435_s8 + $0x38] sm:$0xff] }
 0x137   : > { %v677_v43 = vmul.f32 1.442695, %v3762_v42  ;;  %v6189_v42 = vld [vmem:[%s7436_s9 + $0x50] sm:$0xff]  }
 0x139   : > { %5237 = vpow2.f32 %v677_v43 }
 0x142   : > { %v5236_v44 = vpop.eup %5235 }
 0x143   : > { %v679_v46 = vmul.f32 %v5236_v44, %v665_v34  ;;  %v471_v34 = vld [vmem:[%s7435_s8 + $0x8] sm:$0xff] }
 0x144   : > { %1393 = vperm.xlu1 %5164, %v471_v34   ;;  %v6221_v34 = vld [vmem:[%s7436_s9 + $0x28] sm:$0xff]  }
 0x146   : > { %v5238_v45 = vpop.eup %5237 }
 0x147   : > { %v680_v47 = vmul.f32 %v5238_v45, %v668_v40  ;;  %v682_v50 = vpack.c.bf16 %v5238_v45, %v5236_v44  ;;  %v6179_v40 = vld [vmem:[%s7436_s9 + $0x58] sm:$0xff]  }
 0x148   : > { %1403 = vperm.xlu1 %5164, %v473_v36   ;;  %v6228_v36 = vld [vmem:[%s7436_s9 + $0x20] sm:$0xff]  }
 0x149   : > { %v681_v48 = vpack.c.bf16 %v680_v47, %v679_v46 }
 0x14b   : > { %4315 = vmatprep.mubr.bf16.mxu1 %v681_v48 }
 0x14c   : > { %4316 = vmatmul.mubr.bf16.vlgmr.msra.gmra.mxu1 %v682_v50  ;;  %1413 = vperm.xlu1 %5164, %v475_v39   ;;  %v6235_v39 = vld [vmem:[%s7436_s9 + $0x18] sm:$0xff]  }
 0x14d   : > { %4340 = vmatpush3.bf16.msra.mxu1 %v5981_v49  ;;  %4355 = vmatprep.mubr.msk.bf16.mxu1 %vm5668_vm0, %v7458_v0 }
 0x14e   : > { %4341 = vmatprep.subr.bf16.mxu1 %v7458_v0 }
 0x150   : > { %1423 = vperm.xlu1 %5164, %v477_v41   ;;  %v6242_v41 = vld [vmem:[%s7436_s9 + $0x10] sm:$0xff]  }
 0x151   : > { %4342 = vmatpush3.bf16.msra.mxu1 %v5987_v51 }
 0x152   : > { %4343 = vmatprep.subr.bf16.mxu1 %v7458_v0 }
 0x155   : > { %4344 = vmatpush3.bf16.msra.mxu1 %v5997_v52 }
 0x156   : > { %4345 = vmatprep.subr.bf16.mxu1 %v7458_v0 }
 0x159   : > { %4346 = vmatpush3.bf16.msra.mxu1 %v6009_v54 }
 0x15a   : > { %4347 = vmatprep.subr.bf16.mxu1 %v7458_v0 }
 0x15d   : > { %4348 = vmatpush3.bf16.msra.mxu1 %v6023_v56 }
 0x15e   : > { %4349 = vmatprep.subr.bf16.mxu1 %v7458_v0 }
 0x161   : > { %4350 = vmatpush3.bf16.msra.mxu1 %v6037_v58 }
 0x162   : > { %4351 = vmatprep.subr.bf16.mxu1 %v7458_v0 }
 0x165   : > { %4352 = vmatpush3.bf16.msra.mxu1 %v6051_v60 }
 0x166   : > { %4353 = vmatprep.subr.bf16.mxu1 %v7458_v0 }
 0x169   : > { %4354 = vmatpush3.bf16.msra.mxu1 %v6065_v62 }
 0x16a   : > { %4379 = vmatprep.subr.bf16.mxu1 %v7458_v0 }
 0x20c   : > { %v4317_v63 = vpop.f32.mrf.mxu1 }
 0x20d   : > { %5239 = vrcp.f32 %v4317_v63 }
 0x20e   : > { %v765_v1 = vpop.f32.mrf.mxu1 }
 0x210   : > { %v4318_v2 = vpop.f32.mrf.mxu1 }
 0x211   : > { %5241 = vrcp.f32 %v4318_v2 }
 0x212   : > { %v768_v5 = vpop.f32.mrf.mxu1 }
 0x21a   : > { %v5240_v3 = vpop.eup %5239 }
 0x21b   : > { %v782_v6 = vmul.f32 %v5240_v3, %v765_v1 }
 0x21e   : > { %v5242_v4 = vpop.eup %5241 }
 0x21f   : > { %v783_v7 = vmul.f32 %v5242_v4, %v768_v5 }
 0x221   : > { %v784_v9 = vpack.c.bf16 %v783_v7, %v782_v6 }
 0x223   : > { %4336 = vmatmul.mubr.bf16.vlgmr.msra.gmra.mxu0 %v784_v9  ;;  %4356 = vmatmul.mubr.bf16.vlgmr.msra.gmra.mxu1 %v784_v9 }
 0x224   : > { %4360 = vmatpush3.bf16.msra.mxu0 %v6074_v8  ;;  %4375 = vmatprep.mubr.msk.bf16.mxu0 %vm5668_vm0, %v7458_v0 }
 0x225   : > { %4361 = vmatprep.subr.bf16.mxu0 %v7458_v0  ;;  %4385 = vmatprep.mubr.msk.bf16.mxu1 %vm5668_vm0, %v7458_v0 }
 0x228   : > { %4362 = vmatpush3.bf16.msra.mxu0 %v6080_v10 }
 0x229   : > { %4363 = vmatprep.subr.bf16.mxu0 %v7458_v0 }
 0x22c   : > { %4364 = vmatpush3.bf16.msra.mxu0 %v6091_v11 }
 0x22d   : > { %4365 = vmatprep.subr.bf16.mxu0 %v7458_v0 }
 0x230   : > { %4366 = vmatpush3.bf16.msra.mxu0 %v6098_v12 }
 0x231   : > { %4367 = vmatprep.subr.bf16.mxu0 %v7458_v0 }
 0x234   : > { %4368 = vmatpush3.bf16.msra.mxu0 %v6105_v13 }
 0x235   : > { %4369 = vmatprep.subr.bf16.mxu0 %v7458_v0 }
 0x238   : > { %4370 = vmatpush3.bf16.msra.mxu0 %v6112_v14 }
 0x239   : > { %4371 = vmatprep.subr.bf16.mxu0 %v7458_v0 }
 0x23c   : > { %4372 = vmatpush3.bf16.msra.mxu0 %v6119_v15 }
 0x23d   : > { %4373 = vmatprep.subr.bf16.mxu0 %v7458_v0 }
 0x240   : > { %4374 = vmatpush3.bf16.msra.mxu0 %v6126_v16 }
 0x241   : > { %4409 = vmatprep.subr.bf16.mxu0 %v7458_v0 }
 0x243   : > { %4376 = vmatmul.mubr.bf16.vlgmr.msra.gmra.mxu0 %v784_v9  ;;  %v6198_v9 = vld [vmem:[%s7431_s4] sm:$0xff]  }
 0x244   : > { %4425 = vmatprep.mubr.msk.bf16.mxu0 %vm5668_vm0, %v7458_v0  ;;  %4410 = vmatpush3.bf16.msra.mxu0 %v6142_v21 }
 0x245   : > { %4411 = vmatprep.subr.bf16.mxu0 %v7458_v0 }
 0x248   : > { %4412 = vmatpush3.bf16.msra.mxu0 %v6149_v33 }
 0x249   : > { %4413 = vmatprep.subr.bf16.mxu0 %v7458_v0 }
 0x24c   : > { %4414 = vmatpush3.bf16.msra.mxu0 %v6159_v35 }
 0x24d   : > { %4415 = vmatprep.subr.bf16.mxu0 %v7458_v0 }
 0x250   : > { %4416 = vmatpush3.bf16.msra.mxu0 %v6169_v38 }
 0x251   : > { %4417 = vmatprep.subr.bf16.mxu0 %v7458_v0 }
 0x254   : > { %4418 = vmatpush3.bf16.msra.mxu0 %v6179_v40 }
 0x255   : > { %4419 = vmatprep.subr.bf16.mxu0 %v7458_v0 }
 0x258   : > { %4420 = vmatpush3.bf16.msra.mxu0 %v6189_v42 }
 0x259   : > { %4421 = vmatprep.subr.bf16.mxu0 %v7458_v0 }
 0x2e3   : > { %v867_v43 = vpop.f32.mrf.mxu0  ;;  %v956_v44 = vpop.f32.mrf.mxu1 }
 0x2e5   : > { %v4337_v45 = vpop.f32.mrf.mxu0  ;;  %v4357_v46 = vpop.f32.mrf.mxu1 }
 0x2e6   : > { %v6263_v45 = vld [vmem:[%s7436_s9] sm:$0xff]  }
 0x2e7   : > { %v870_v47 = vpop.f32.mrf.mxu0  ;;  %v959_v48 = vpop.f32.mrf.mxu1  ;;  %v6269_v46 = vld [vmem:[%s7436_s9 + $0x40] sm:$0xff]  }
 0x2e8   : > { %v1053_v6 = vpack.c.bf16 %v959_v48, %v956_v44  ;;  %v1052_v7 = vpack.c.bf16 %v870_v47, %v867_v43  ;;  %v6250_v43 = vld [vmem:[%s7436_s9 + $0x8] sm:$0xff]   ;;  %v6274_v47 = vpop.permute.xlu1 %1057 }
 0x2e9   : > { %v4338_v50 = vpop.f32.mrf.mxu0  ;;  %v4358_v63 = vpop.f32.mrf.mxu1  ;;  %v6255_v44 = vld [vmem:[%s7436_s9 + $0x48] sm:$0xff]   ;;  %7542 = vst [vmem:[#allocation17_spill] sm:$0xff] %v6274_v47 }
 0x2ea   : > { %4422 = vmatpush3.bf16.msra.mxu0 %v6255_v44 }
 0x2eb   : > { %4423 = vmatprep.subr.bf16.mxu0 %v7458_v0 }
 0x2ec   : > { %v6276_v63 = vpop.permute.xlu1 %1062 }
 0x2ed   : > { %7543 = vst [vmem:[#allocation18_spill] sm:$0xff] %v6276_v63 }
 0x2ee   : > { %4424 = vmatpush3.bf16.msra.mxu0 %v6269_v46 }
 0x303   : > { %v1045_v1 = vpop.f32.mrf.mxu0 }
 0x305   : > { %v4377_v2 = vpop.f32.mrf.mxu0 }
 0x307   : > { %v1048_v3 = vpop.f32.mrf.mxu0 }
 0x308   : > { %v1054_v4 = vpack.c.bf16 %v1048_v3, %v1045_v1 }
 0x309   : > { %v4378_v5 = vpop.f32.mrf.mxu0 }
 0x30a   : > { %4380 = vmatpush3.bf16.msra.mxu1 %v1054_v4  ;;  %v6283_v5 = vld [vmem:[%s7436_s9 + $0xb8] sm:$0xff]  }
 0x30b   : > { %4381 = vmatprep.subr.bf16.mxu1 %v7458_v0  ;;  %7544 = vst [vmem:[#allocation19_spill] sm:$0xff] %v6283_v5 }
 0x30e   : > { %4382 = vmatpush3.bf16.msra.mxu1 %v1053_v6 }
 0x30f   : > { %4383 = vmatprep.subr.bf16.mxu1 %v7458_v0 }
 0x312   : > { %4384 = vmatpush3.bf16.msra.mxu1 %v1052_v7  ;;  %v6289_v7 = vld [vmem:[%s7436_s9 + $0xb0] sm:$0xff]  }
 0x313   : > { %4389 = vmatprep.subr.bf16.mxu1 %v7458_v0  ;;  %7545 = vst [vmem:[#allocation20_spill] sm:$0xff] %v6289_v7 }
 0x315   : > { %4386 = vmatmul.mubr.msk.bf16.vlgmr.msra.gmra.mxu1 %vm1070_vm2, %v6198_v9 }
 0x316   : > { %4390 = vmatpush3.bf16.msra.mxu1 %v6203_v17  ;;  %4405 = vmatprep.mubr.msk.bf16.mxu1 %vm5668_vm0, %v7458_v0 }
 0x317   : > { %4391 = vmatprep.subr.bf16.mxu1 %v7458_v0 }
 0x31a   : > { %4392 = vmatpush3.bf16.msra.mxu1 %v6212_v19 }
 0x31b   : > { %4393 = vmatprep.subr.bf16.mxu1 %v7458_v0 }
 0x31e   : > { %4394 = vmatpush3.bf16.msra.mxu1 %v6221_v34 }
 0x31f   : > { %4395 = vmatprep.subr.bf16.mxu1 %v7458_v0 }
 0x322   : > { %4396 = vmatpush3.bf16.msra.mxu1 %v6228_v36 }
 0x323   : > { %4397 = vmatprep.subr.bf16.mxu1 %v7458_v0 }
 0x326   : > { %4398 = vmatpush3.bf16.msra.mxu1 %v6235_v39 }
 0x327   : > { %4399 = vmatprep.subr.bf16.mxu1 %v7458_v0 }
 0x32a   : > { %4400 = vmatpush3.bf16.msra.mxu1 %v6242_v41 }
 0x32b   : > { %4401 = vmatprep.subr.bf16.mxu1 %v7458_v0 }
 0x32e   : > { %4402 = vmatpush3.bf16.msra.mxu1 %v6250_v43 }
 0x32f   : > { %4403 = vmatprep.subr.bf16.mxu1 %v7458_v0 }
 0x332   : > { %4404 = vmatpush3.bf16.msra.mxu1 %v6263_v45 }
 0x333   : > { %4429 = vmatprep.subr.bf16.mxu1 %v7458_v0 }
 0x3d5   : > { %v1108_v48 = vpop.f32.mrf.mxu1 }
 0x3d6   : > { %v1109_v2 = vadd.f32 %v1108_v48, %v6274_v47  ;;  %v6298_v48 = vld [vmem:[%s7436_s9 + $0xa8] sm:$0xff]  }
 0x3d7   : > { %v4387_v50 = vpop.f32.mrf.mxu1  ;;  %7546 = vst [vmem:[#allocation21_spill] sm:$0xff] %v6298_v48 }
 0x3d8   : > { %v6305_v50 = vld [vmem:[%s7436_s9 + $0xa0] sm:$0xff]  }
 0x3d9   : > { %v1111_v1 = vpop.f32.mrf.mxu1  ;;  %7547 = vst [vmem:[#allocation22_spill] sm:$0xff] %v6305_v50 }
 0x3da   : > { %v1112_v3 = vadd.f32 %v1111_v1, %v6276_v63  ;;  %v6312_v1 = vld [vmem:[%s7436_s9 + $0x98] sm:$0xff]  }
 0x3db   : > { %v4388_v4 = vpop.f32.mrf.mxu1  ;;  %7548 = vst [vmem:[#allocation23_spill] sm:$0xff] %v6312_v1  ;;  %v3840_v63 = vld [vmem:[%s5866_s14 + $0x58] sm:$0xff] }
 0x3dc   : > { %v1115_v6 = vpack.c.bf16 %v1112_v3, %v1109_v2  ;;  %v6319_v2 = vld [vmem:[%s7436_s9 + $0x90] sm:$0xff]   ;;  %v6326_v3 = vld [vmem:[%s7436_s9 + $0x88] sm:$0xff]   ;;  %v6333_v4 = vld [vmem:[%s7436_s9 + $0x80] sm:$0xff]  }
 0x3dd   : > { %7549 = vst [vmem:[#allocation24_spill] sm:$0xff] %v6319_v2  ;;  %7550 = vst [vmem:[#allocation25_spill] sm:$0xff] %v6326_v3 }
 0x3de   : > { %4406 = vmatmul.mubr.bf16.vlgmr.msra.gmra.mxu1 %v1115_v6  ;;  %4426 = vmatmul.mubr.bf16.vlgmr.msra.gmra.mxu0 %v1115_v6  ;;  %7551 = vst [vmem:[#allocation26_spill] sm:$0xff] %v6333_v4 }
 0x3df   : > { %4430 = vmatpush3.bf16.msra.mxu1 %v6283_v5  ;;  %4445 = vmatprep.mubr.msk.bf16.mxu1 %vm5668_vm0, %v7458_v0  ;;  %v3839_v5 = vld [vmem:[%s5866_s14 + $0x50] sm:$0xff] }
 0x3e0   : > { %4431 = vmatprep.subr.bf16.mxu1 %v7458_v0  ;;  %v1723_v47 = vpack.c.bf16 %v3840_v63, %v3839_v5 }
 0x3e3   : > { %4432 = vmatpush3.bf16.msra.mxu1 %v6289_v7  ;;  %v3842_v7 = vld [vmem:[%s5866_s14 + $0x68] sm:$0xff] }
 0x3e4   : > { %4433 = vmatprep.subr.bf16.mxu1 %v7458_v0 }
 0x3e7   : > { %4434 = vmatpush3.bf16.msra.mxu1 %v6298_v48  ;;  %v3841_v48 = vld [vmem:[%s5866_s14 + $0x60] sm:$0xff] }
 0x3e8   : > { %4435 = vmatprep.subr.bf16.mxu1 %v7458_v0 }
 0x3eb   : > { %4436 = vmatpush3.bf16.msra.mxu1 %v6305_v50 }
 0x3ec   : > { %4437 = vmatprep.subr.bf16.mxu1 %v7458_v0 }
 0x3ef   : > { %4438 = vmatpush3.bf16.msra.mxu1 %v6312_v1  ;;  %v3843_v1 = vld [vmem:[%s5866_s14 + $0x70] sm:$0xff] }
 0x3f0   : > { %4439 = vmatprep.subr.bf16.mxu1 %v7458_v0 }
 0x3f3   : > { %4440 = vmatpush3.bf16.msra.mxu1 %v6319_v2  ;;  %v3844_v2 = vld [vmem:[%s5866_s14 + $0x78] sm:$0xff] }
 0x3f4   : > { %4441 = vmatprep.subr.bf16.mxu1 %v7458_v0  ;;  %v1725_v50 = vpack.c.bf16 %v3844_v2, %v3843_v1  ;;  %v3838_v1 = vld [vmem:[%s5866_s14 + $0x48] sm:$0xff] }
 0x3f7   : > { %4442 = vmatpush3.bf16.msra.mxu1 %v6326_v3  ;;  %v1724_v3 = vpack.c.bf16 %v3842_v7, %v3841_v48 }
 0x3f8   : > { %4443 = vmatprep.subr.bf16.mxu1 %v7458_v0 }
 0x3fb   : > { %4444 = vmatpush3.bf16.msra.mxu1 %v6333_v4  ;;  %v3837_v4 = vld [vmem:[%s5866_s14 + $0x40] sm:$0xff] }
 0x3fc   : > { %4487 = vmatprep.subr.bf16.mxu1 %v7458_v0  ;;  %v1722_v2 = vpack.c.bf16 %v3838_v1, %v3837_v4  ;;  %v6387_v1 = vld [vmem:[%s7434_s7 + $0x10] sm:$0xff]  }
 0x3fd   : > { %7554 = vst [vmem:[#allocation29_spill] sm:$0xff] %v6387_v1 }
 0x3fe   : > { %4446 = vmatmul.mubr.bf16.vlgmr.msra.gmra.mxu1 %v1115_v6 }
 0x3ff   : > { %4488 = vmatpush3.bf16.msra.mxu1 %v1725_v50  ;;  %4495 = vmatprep.mubr.msk.bf16.mxu1 %vm5668_vm0, %v7458_v0 }
 0x400   : > { %4489 = vmatprep.subr.bf16.mxu1 %v7458_v0 }
 0x403   : > { %4490 = vmatpush3.bf16.msra.mxu1 %v1724_v3  ;;  %v6382_v3 = vld [vmem:[%s7434_s7 + $0x8] sm:$0xff]  }
 0x404   : > { %4491 = vmatprep.subr.bf16.mxu1 %v7458_v0  ;;  %7553 = vst [vmem:[#allocation28_spill] sm:$0xff] %v6382_v3 }
 0x407   : > { %4492 = vmatpush3.bf16.msra.mxu1 %v1723_v47 }
 0x408   : > { %4493 = vmatprep.subr.bf16.mxu1 %v7458_v0 }
 0x40b   : > { %4494 = vmatpush3.bf16.msra.mxu1 %v1722_v2 }
 0x40c   : > { %4519 = vmatprep.subr.bf16.mxu1 %v7458_v0 }
 0x40e   : > { %4496 = vmatmul.mubr.msk.bf16.vlgmr.msra.gmra.mxu1 %vm626_vm1, %v5908_v18  ;;  %v6375_v18 = vld [vmem:[%s7434_s7] sm:$0xff]  }
 0x40f   : > { %4520 = vmatpush3.bf16.msra.mxu1 %v5954_v29  ;;  %4535 = vmatprep.mubr.msk.bf16.mxu1 %vm5668_vm0, %v7458_v0  ;;  %7552 = vst [vmem:[#allocation27_spill] sm:$0xff] %v6375_v18 }
 0x410   : > { %4521 = vmatprep.subr.bf16.mxu1 %v7458_v0  ;;  %4455 = vmatprep.mubr.msk.bf16.mxu0 %vm1070_vm2, %v6375_v18 }
 0x413   : > { %4522 = vmatpush3.bf16.msra.mxu1 %v5960_v30 }
 0x414   : > { %4523 = vmatprep.subr.bf16.mxu1 %v7458_v0 }
 0x417   : > { %4524 = vmatpush3.bf16.msra.mxu1 %v5967_v31 }
 0x418   : > { %4525 = vmatprep.subr.bf16.mxu1 %v7458_v0 }
 0x41b   : > { %4526 = vmatpush3.bf16.msra.mxu1 %v6003_v53 }
 0x41c   : > { %4527 = vmatprep.subr.bf16.mxu1 %v7458_v0 }
 0x41f   : > { %4528 = vmatpush3.bf16.msra.mxu1 %v6017_v55 }
 0x420   : > { %4529 = vmatprep.subr.bf16.mxu1 %v7458_v0 }
 0x423   : > { %4530 = vmatpush3.bf16.msra.mxu1 %v6031_v57 }
 0x424   : > { %4531 = vmatprep.subr.bf16.mxu1 %v7458_v0 }
 0x427   : > { %4532 = vmatpush3.bf16.msra.mxu1 %v6045_v59 }
 0x428   : > { %4533 = vmatprep.subr.bf16.mxu1 %v7458_v0 }
 0x42b   : > { %4534 = vmatpush3.bf16.msra.mxu1 %v6059_v61 }
 0x42c   : > { %4559 = vmatprep.subr.bf16.mxu1 %v7458_v0 }
 0x49e   : > { %v1198_v29 = vpop.f32.mrf.mxu1  ;;  %v1287_v30 = vpop.f32.mrf.mxu0 }
 0x4a0   : > { %v4407_v31 = vpop.f32.mrf.mxu1  ;;  %v4427_v53 = vpop.f32.mrf.mxu0 }
 0x4a2   : > { %v1201_v55 = vpop.f32.mrf.mxu1  ;;  %v1290_v57 = vpop.f32.mrf.mxu0 }
 0x4a3   : > { %v1384_v48 = vpack.c.bf16 %v1290_v57, %v1287_v30  ;;  %v1383_v50 = vpack.c.bf16 %v1201_v55, %v1198_v29 }
 0x4a4   : > { %v4408_v59 = vpop.f32.mrf.mxu1  ;;  %v4428_v47 = vpop.f32.mrf.mxu0 }
 0x4a5   : > { %v6398_v47 = vld [vmem:[%s7434_s7 + $0x18] sm:$0xff]  }
 0x4a6   : > { %7555 = vst [vmem:[#allocation30_spill] sm:$0xff] %v6398_v47 }
 0x4be   : > { %v1376_v63 = vpop.f32.mrf.mxu1 }
 0x4c0   : > { %v4447_v61 = vpop.f32.mrf.mxu1 }
 0x4c2   : > { %v1379_v5 = vpop.f32.mrf.mxu1 }
 0x4c3   : > { %v1385_v6 = vpack.c.bf16 %v1379_v5, %v1376_v63 }
 0x4c4   : > { %v4448_v7 = vpop.f32.mrf.mxu1 }
 0x4c5   : > { %4449 = vmatprep.subr.bf16.mxu0 %v1385_v6 }
 0x4c6   : > { %4450 = vmatpush3.bf16.msra.mxu0 %v1385_v6 }
 0x4c7   : > { %4451 = vmatprep.subr.bf16.mxu0 %v1384_v48 }
 0x4ca   : > { %4452 = vmatpush3.bf16.msra.mxu0 %v1384_v48 }
 0x4cb   : > { %4453 = vmatprep.subr.bf16.mxu0 %v1383_v50 }
 0x4ce   : > { %4454 = vmatpush3.bf16.msra.mxu0 %v1383_v50  ;;  %v1760_v4 = vpop.f32.mrf.mxu1 }
 0x4cf   : > { %v1761_v2 = vadd.f32 %v1760_v4, %v5972_v32  ;;  %v6416_v4 = vld [vmem:[#allocation7 + $0x38] sm:$0xff]  }
 0x4d0   : > { %v4497_v30 = vpop.f32.mrf.mxu1  ;;  %7556 = vst [vmem:[#allocation31_spill] sm:$0xff] %v6416_v4  ;;  %4463 = vmatprep.subr.bf16.mxu0 %v6416_v4 }
 0x4d1   : > { %v3846_v31 = vclamps-f32 %v1761_v2, 10.0  ;;  %4456 = vmatmul.mubr.msk.bf16.vlgmr.msra.gmra.mxu0 %vm1070_vm2, %v6382_v3  ;;  %v6420_v30 = vld [vmem:[#allocation7 + $0x30] sm:$0xff]  }
 0x4d2   : > { %v1763_v29 = vpop.f32.mrf.mxu1  ;;  %4459 = vmatprep.mubr.msk.bf16.mxu0 %vm1070_vm2, %v6387_v1  ;;  %4464 = vmatpush3.bf16.msra.mxu0 %v6416_v4  ;;  %7557 = vst [vmem:[#allocation32_spill] sm:$0xff] %v6420_v30 }
 0x4d3   : > { %v1771_v53 = vmul.f32 1.442695, %v3846_v31  ;;  %v1764_v55 = vadd.f32 %v1763_v29, %v5975_v37  ;;  %4465 = vmatprep.subr.bf16.mxu0 %v6420_v30  ;;  %v6428_v31 = vld [vmem:[#allocation7 + $0x20] sm:$0xff]   ;;  %v6432_v29 = vld [vmem:[#allocation7 + $0x18] sm:$0xff]  }
 0x4d4   : > { %v4498_v57 = vpop.f32.mrf.mxu1  ;;  %7559 = vst [vmem:[#allocation34_spill] sm:$0xff] %v6428_v31  ;;  %7560 = vst [vmem:[#allocation35_spill] sm:$0xff] %v6432_v29 }
 0x4d5   : > { %v3847_v59 = vclamps-f32 %v1764_v55, 10.0  ;;  %5243 = vpow2.f32 %v1771_v53  ;;  %v6436_v53 = vld [vmem:[#allocation7 + $0x10] sm:$0xff]   ;;  %v6443_v57 = vld [vmem:[#allocation7] sm:$0xff]  }
 0x4d6   : > { %4466 = vmatpush3.bf16.msra.mxu0 %v6420_v30  ;;  %7561 = vst [vmem:[#allocation36_spill] sm:$0xff] %v6436_v53  ;;  %7563 = vst [vmem:[#allocation38_spill] sm:$0xff] %v6443_v57 }
 0x4d7   : > { %v1773_v63 = vmul.f32 1.442695, %v3847_v59  ;;  %v6449_v59 = vpop.permute.xlu0 %1388 }
 0x4d8   : > { %7564 = vst [vmem:[#allocation39_spill] sm:$0xff] %v6449_v59 }
 0x4d9   : > { %5245 = vpow2.f32 %v1773_v63  ;;  %4460 = vmatmul.mubr.msk.bf16.gmra.mxu0 %vm1070_vm2, %v6398_v47  ;;  %v6451_v63 = vpop.permute.xlu1 %1393 }
 0x4da   : > { %7565 = vst [vmem:[#allocation40_spill] sm:$0xff] %v6451_v63 }
 0x4db   : > { %v6453_v48 = vpop.permute.xlu0 %1398 }
 0x4dc   : > { %7566 = vst [vmem:[#allocation41_spill] sm:$0xff] %v6453_v48 }
 0x4dd   : > { %v6455_v0 = vpop.permute.xlu1 %1403 }
 0x4de   : > { %7567 = vst [vmem:[#allocation42_spill] sm:$0xff] %v6455_v0 }
 0x4e1   : > { %v6462_v30 = vpop.permute.xlu1 %1413 }
 0x4e2   : > { %v6402_v61 = vpop.eup %5243  ;;  %7569 = vst [vmem:[#allocation44_spill] sm:$0xff] %v6462_v30 }
 0x4e3   : > { %v6407_v6 = vmul.f32 %v6402_v61, %v1761_v2  ;;  %v6424_v2 = vld [vmem:[#allocation7 + $0x28] sm:$0xff]  }
 0x4e4   : > { %7558 = vst [vmem:[#allocation33_spill] sm:$0xff] %v6424_v2  ;;  %4467 = vmatprep.subr.bf16.mxu0 %v6424_v2 }
 0x4e5   : > { %4468 = vmatpush3.bf16.msra.mxu0 %v6424_v2 }
 0x4e6   : > { %v6404_v5 = vpop.eup %5245  ;;  %4469 = vmatprep.subr.bf16.mxu0 %v6428_v31 }
 0x4e7   : > { %v6410_v7 = vmul.f32 %v6404_v5, %v1764_v55  ;;  %v6440_v55 = vld [vmem:[#allocation7 + $0x8] sm:$0xff]  }
 0x4e8   : > { %7562 = vst [vmem:[#allocation37_spill] sm:$0xff] %v6440_v55 }
 0x4e9   : > { %4470 = vmatpush3.bf16.msra.mxu0 %v6428_v31 }
 0x4ea   : > { %4471 = vmatprep.subr.bf16.mxu0 %v6432_v29 }
 0x4ed   : > { %4472 = vmatpush3.bf16.msra.mxu0 %v6432_v29  ;;  %v6458_v29 = vpop.permute.xlu0 %1408 }
 0x4ee   : > { %4473 = vmatprep.subr.bf16.mxu0 %v6436_v53  ;;  %7568 = vst [vmem:[#allocation43_spill] sm:$0xff] %v6458_v29 }
 0x4f1   : > { %4474 = vmatpush3.bf16.msra.mxu0 %v6436_v53  ;;  %v6465_v18 = vpop.permute.xlu0 %1418 }
 0x4f2   : > { %4475 = vmatprep.subr.bf16.mxu0 %v6440_v55  ;;  %7570 = vst [vmem:[#allocation45_spill] sm:$0xff] %v6465_v18 }
 0x4f5   : > { %4476 = vmatpush3.bf16.msra.mxu0 %v6440_v55 }
 0x4f6   : > { %4477 = vmatprep.subr.bf16.mxu0 %v6443_v57 }
 0x4f9   : > { %4478 = vmatpush3.bf16.msra.mxu0 %v6443_v57 }
 0x4fa   : > { %4499 = vmatprep.subr.bf16.mxu0 %v5913_v20 }
 0x591   : > { %v4457_v50 = vpop.f32.mrf.mxu0 }
 0x592   : > { %v1501_v53 = vadd.f32 %v4457_v50, %v6453_v48 }
 0x593   : > { %v1492_v55 = vpop.f32.mrf.mxu0 }
 0x594   : > { %v1525_v31 = vsub.f32 0.0, %v1501_v53  ;;  %v1493_v47 = vadd.f32 %v1492_v55, %v6449_v59  ;;  %v6469_v59 = vpop.permute.xlu1 %1423 }
 0x595   : > { %v4458_v57 = vpop.f32.mrf.mxu0 }
 0x596   : > { %v1523_v2 = vsub.f32 0.0, %v1493_v47  ;;  %v1504_v20 = vadd.f32 %v4458_v57, %v6455_v0  ;;  %v1535_v37 = vmul.f32 1.442695, %v1525_v31 }
 0x597   : > { %v1495_v1 = vpop.f32.mrf.mxu0 }
 0x598   : > { %v1531_v3 = vmul.f32 1.442695, %v1523_v2  ;;  %v1526_v4 = vsub.f32 0.0, %v1504_v20  ;;  %v1496_v32 = vadd.f32 %v1495_v1, %v6451_v63 }
 0x599   : > { %v4461_v50 = vpop.f32.mrf.mxu0 }
 0x59a   : > { %5247 = vpow2.f32 %v1531_v3  ;;  %v1537_v48 = vmul.f32 1.442695, %v1526_v4  ;;  %v1524_v53 = vsub.f32 0.0, %v1496_v32  ;;  %v1517_v55 = vadd.f32 %v4461_v50, %v6465_v18 }
 0x59b   : > { %5249 = vpow2.f32 %v1535_v37  ;;  %v1508_v47 = vpop.f32.mrf.mxu0 }
 0x59c   : > { %5251 = vpow2.f32 %v1537_v48  ;;  %v1533_v57 = vmul.f32 1.442695, %v1524_v53  ;;  %v1529_v0 = vsub.f32 0.0, %v1517_v55  ;;  %v1509_v31 = vadd.f32 %v1508_v47, %v6458_v29 }
 0x59d   : > { %v4462_v2 = vpop.f32.mrf.mxu0 }
 0x59e   : > { %5253 = vpow2.f32 %v1533_v57  ;;  %v1527_v1 = vsub.f32 0.0, %v1509_v31  ;;  %v1520_v20 = vadd.f32 %v4462_v2, %v6469_v59  ;;  %v1543_v63 = vmul.f32 1.442695, %v1529_v0 }
 0x59f   : > { %v1511_v3 = vpop.f32.mrf.mxu0 }
 0x5a0   : > { %v1539_v4 = vmul.f32 1.442695, %v1527_v1  ;;  %v1530_v32 = vsub.f32 0.0, %v1520_v20  ;;  %v1512_v50 = vadd.f32 %v1511_v3, %v6462_v30 }
 0x5a2   : > { %5255 = vpow2.f32 %v1539_v4  ;;  %v1545_v37 = vmul.f32 1.442695, %v1530_v32  ;;  %v1528_v48 = vsub.f32 0.0, %v1512_v50 }
 0x5a3   : > { %5257 = vpow2.f32 %v1543_v63 }
 0x5a4   : > { %5259 = vpow2.f32 %v1545_v37  ;;  %v1541_v53 = vmul.f32 1.442695, %v1528_v48 }
 0x5a6   : > { %5261 = vpow2.f32 %v1541_v53 }
 0x5a7   : > { %v5248_v55 = vpop.eup %5247 }
 0x5a8   : > { %v5250_v47 = vpop.eup %5249  ;;  %v1547_v29 = vadd.f32 1.0, %v5248_v55 }
 0x5a9   : > { %v5252_v57 = vpop.eup %5251  ;;  %v1549_v2 = vadd.f32 1.0, %v5250_v47 }
 0x5aa   : > { %v1550_v31 = vadd.f32 1.0, %v5252_v57  ;;  %5263 = vrcp.f32 %v1547_v29  ;;  %v6473_v57 = vld [vmem:[#allocation5 + $0x38] sm:$0xff]  }
 0x5ab   : > { %v5254_v18 = vpop.eup %5253 }
 0x5ac   : > { %v1548_v0 = vadd.f32 1.0, %v5254_v18  ;;  %5265 = vrcp.f32 %v1550_v31 }
 0x5ae   : > { %5267 = vrcp.f32 %v1548_v0 }
 0x5af   : > { %v5256_v1 = vpop.eup %5255  ;;  %5269 = vrcp.f32 %v1549_v2 }
 0x5b0   : > { %v5258_v20 = vpop.eup %5257  ;;  %v1551_v3 = vadd.f32 1.0, %v5256_v1 }
 0x5b1   : > { %v5260_v4 = vpop.eup %5259  ;;  %v1553_v50 = vadd.f32 1.0, %v5258_v20 }
 0x5b2   : > { %v1554_v63 = vadd.f32 1.0, %v5260_v4  ;;  %5271 = vrcp.f32 %v1551_v3  ;;  %v7571_v4 = vpack.c.bf16 %v6410_v7, %v6407_v6 }
 0x5b3   : > { %v5262_v32 = vpop.eup %5261 }
 0x5b4   : > { %v1552_v37 = vadd.f32 1.0, %v5262_v32  ;;  %5273 = vrcp.f32 %v1554_v63  ;;  %v5414_v32 = vld [vmem:[%s5866_s14 + $0x18] sm:$0xff] }
 0x5b6   : > { %5275 = vrcp.f32 %v1552_v37 }
 0x5b7   : > { %5277 = vrcp.f32 %v1553_v50  ;;  %v5264_v48 = vpop.eup %5263 }
 0x5b9   : > { %v5266_v53 = vpop.eup %5265 }
 0x5bb   : > { %v5268_v55 = vpop.eup %5267 }
 0x5bc   : > { %v5270_v29 = vpop.eup %5269  ;;  %v1563_v18 = vpack.c.bf16 %v5268_v55, %v5264_v48 }
 0x5bd   : > { %v1564_v47 = vpack.c.bf16 %v5266_v53, %v5270_v29  ;;  %v5415_v53 = vld [vmem:[%s5866_s14 + $0x8] sm:$0xff] }
 0x5be   : > { %4479 = vmatprep.mubr.bf16.mxu0 %v1563_v18 }
 0x5bf   : > { %4480 = vmatmul.mubr.bf16.vlgmr.msra.gmra.mxu0 %v1564_v47  ;;  %v5272_v31 = vpop.eup %5271  ;;  %v5416_v47 = vld [vmem:[%s5866_s14 + $0x30] sm:$0xff] }
 0x5c0   : > { %4500 = vmatpush3.bf16.msra.mxu0 %v6473_v57 }
 0x5c1   : > { %4501 = vmatprep.subr.bf16.mxu0 %v5922_v22  ;;  %v5274_v2 = vpop.eup %5273 }
 0x5c3   : > { %v5276_v0 = vpop.eup %5275 }
 0x5c4   : > { %v5278_v1 = vpop.eup %5277  ;;  %4502 = vmatpush3.bf16.msra.mxu0 %v5922_v22  ;;  %v1565_v20 = vpack.c.bf16 %v5276_v0, %v5272_v31  ;;  %v7572_v22 = vmov 0.0  }
 0x5c5   : > { %4503 = vmatprep.subr.bf16.mxu0 %v5926_v23  ;;  %v1566_v3 = vpack.c.bf16 %v5274_v2, %v5278_v1  ;;  %v5417_v1 = vld [vmem:[%s5866_s14 + $0x20] sm:$0xff] }
 0x5c6   : > { %4483 = vmatprep.mubr.bf16.mxu0 %v1565_v20 }
 0x5c7   : > { %4484 = vmatmul.mubr.bf16.gmra.mxu0 %v1566_v3 }
 0x5c8   : > { %4504 = vmatpush3.bf16.msra.mxu0 %v5926_v23  ;;  %4515 = vmatprep.mubr.bf16.mxu0 %v7571_v4  ;;  %v7573_v23 = vpack.c.bf16 %v6404_v5, %v6402_v61 }
 0x5c9   : > { %4505 = vmatprep.subr.bf16.mxu0 %v5930_v24 }
 0x5cc   : > { %4506 = vmatpush3.bf16.msra.mxu0 %v5930_v24  ;;  %v5412_v24 = vld [vmem:[%s5866_s14] sm:$0xff] }
 0x5cd   : > { %4507 = vmatprep.subr.bf16.mxu0 %v5934_v25 }
 0x5d0   : > { %4508 = vmatpush3.bf16.msra.mxu0 %v5934_v25  ;;  %v602_v25 = vsub.f32 0.0, %v5412_v24 }
 0x5d1   : > { %4509 = vmatprep.subr.bf16.mxu0 %v5938_v26 }
 0x5d4   : > { %4510 = vmatpush3.bf16.msra.mxu0 %v5938_v26  ;;  %v603_v26 = vmul.f32 1.442695, %v602_v25 }
 0x5d5   : > { %4511 = vmatprep.subr.bf16.mxu0 %v5942_v27 }
 0x5d6   : > { %5279 = vpow2.f32 %v603_v26 }
 0x5d8   : > { %4512 = vmatpush3.bf16.msra.mxu0 %v5942_v27 }
 0x5d9   : > { %4513 = vmatprep.subr.bf16.mxu0 %v5946_v28 }
 0x5dc   : > { %4514 = vmatpush3.bf16.msra.mxu0 %v5946_v28 }
 0x5dd   : > { %4539 = vmatprep.subr.bf16.mxu0 %v7572_v22 }
 0x5df   : > { %4516 = vmatmul.mubr.bf16.vlgmr.msra.gmra.mxu0 %v7573_v23  ;;  %v5418_v23 = vld [vmem:[%s5866_s14 + $0x38] sm:$0xff] }
 0x5e0   : > { %4540 = vmatpush3.bf16.msra.mxu0 %v5981_v49  ;;  %4555 = vmatprep.mubr.msk.bf16.mxu0 %vm5668_vm0, %v7572_v22  ;;  %v1688_v49 = vlaneseq }
 0x5e1   : > { %4541 = vmatprep.subr.bf16.mxu0 %v7572_v22 }
 0x5e3   : > { %v5280_v27 = vpop.eup %5279 }
 0x5e4   : > { %4542 = vmatpush3.bf16.msra.mxu0 %v5987_v51  ;;  %v605_v28 = vadd.f32 1.0, %v5280_v27  ;;  %v1689_v51 = vshrl.u32 %v1688_v49, 7  ;;  %v5419_v27 = vld [vmem:[%s5866_s14 + $0x28] sm:$0xff] }
 0x5e5   : > { %4543 = vmatprep.subr.bf16.mxu0 %v7572_v22 }
 0x5e6   : > { %5281 = vrcp.f32 %v605_v28 }
 0x5e8   : > { %4544 = vmatpush3.bf16.msra.mxu0 %v5997_v52  ;;  %v6516_v52 = vsub.s32 0, %v1689_v51 }
 0x5e9   : > { %4545 = vmatprep.subr.bf16.mxu0 %v7572_v22 }
 0x5ea   : > { %7574 = vst [vmem:[#allocation46_spill] sm:$0xff] %v6516_v52 }
 0x5ec   : > { %4546 = vmatpush3.bf16.msra.mxu0 %v6009_v54 }
 0x5ed   : > { %4547 = vmatprep.subr.bf16.mxu0 %v7572_v22 }
 0x5f0   : > { %4548 = vmatpush3.bf16.msra.mxu0 %v6023_v56 }
 0x5f1   : > { %4549 = vmatprep.subr.bf16.mxu0 %v7572_v22 }
 0x5f3   : > { %v5282_v54 = vpop.eup %5281 }
 0x5f4   : > { %4550 = vmatpush3.bf16.msra.mxu0 %v6037_v58  ;;  %v1691_v56 = vrot.slane %v5282_v54, %v6516_v52 }
 0x5f5   : > { %4551 = vmatprep.subr.bf16.mxu0 %v7572_v22 }
 0x5f8   : > { %4552 = vmatpush3.bf16.msra.mxu0 %v6051_v60  ;;  %v5413_v60 = vld [vmem:[%s5866_s14 + $0x10] sm:$0xff] }
 0x5f9   : > { %4553 = vmatprep.subr.bf16.mxu0 %v7572_v22 }
 0x5fc   : > { %4554 = vmatpush3.bf16.msra.mxu0 %v6065_v62 }
 0x5fd   : > { %4579 = vmatprep.subr.bf16.mxu0 %v7572_v22 }
 0x67f   : > { %v4481_v58 = vpop.f32.mrf.mxu0 }
 0x680   : > { %v1682_v62 = vmul.f32 %v5413_v60, %v4481_v58 }
 0x681   : > { %v1649_v61 = vpop.f32.mrf.mxu0 }
 0x682   : > { %v1694_v5 = vmul.f32 %v1691_v56, %v1682_v62  ;;  %v1680_v6 = vmul.f32 %v5412_v24, %v1649_v61 }
 0x683   : > { %v4482_v7 = vpop.f32.mrf.mxu0 }
 0x684   : > { %1702 = vst [vmem:[%s6522_s3 + $0x10] sm:$0xff] %v1694_v5  ;;  %v1692_v63 = vmul.f32 %v1691_v56, %v1680_v6  ;;  %v1683_v50 = vmul.f32 %v5414_v32, %v4482_v7  ;;  %v7580_v32 = vld [vmem:[#allocation21_spill] sm:$0xff] }
 0x685   : > { %v1652_v37 = vpop.f32.mrf.mxu0 }
 0x686   : > { %1700 = vst [vmem:[%s6522_s3] sm:$0xff] %v1692_v63  ;;  %v1695_v48 = vmul.f32 %v1691_v56, %v1683_v50  ;;  %v1681_v55 = vmul.f32 %v5415_v53, %v1652_v37  ;;  %v7581_v50 = vld [vmem:[#allocation22_spill] sm:$0xff]  ;;  %v7582_v37 = vld [vmem:[#allocation23_spill] sm:$0xff]  ;;  %v7584_v53 = vld [vmem:[#allocation25_spill] sm:$0xff] }
 0x687   : > { %v4485_v29 = vpop.f32.mrf.mxu0 }
 0x688   : > { %1703 = vst [vmem:[%s6522_s3 + $0x18] sm:$0xff] %v1695_v48  ;;  %v1693_v18 = vmul.f32 %v1691_v56, %v1681_v55  ;;  %v1686_v31 = vmul.f32 %v5416_v47, %v4485_v29  ;;  %v7583_v48 = vld [vmem:[#allocation24_spill] sm:$0xff]  ;;  %v3867_v55 = vld [vmem:[%s5866_s14 + $0xb0] sm:$0xff]  ;;  %v3868_v29 = vld [vmem:[%s5866_s14 + $0xb8] sm:$0xff] }
 0x689   : > { %v1665_v2 = vpop.f32.mrf.mxu0  ;;  %v2347_v47 = vpack.c.bf16 %v3868_v29, %v3867_v55 }
 0x68a   : > { %1701 = vst [vmem:[%s6522_s3 + $0x8] sm:$0xff] %v1693_v18  ;;  %v1698_v0 = vmul.f32 %v1691_v56, %v1686_v31  ;;  %v1684_v20 = vmul.f32 %v5417_v1, %v1665_v2  ;;  %v7585_v18 = vld [vmem:[#allocation26_spill] sm:$0xff]  ;;  %v3865_v31 = vld [vmem:[%s5866_s14 + $0xa0] sm:$0xff]  ;;  %v3866_v2 = vld [vmem:[%s5866_s14 + $0xa8] sm:$0xff] }
 0x68b   : > { %v4486_v3 = vpop.f32.mrf.mxu0  ;;  %v3863_v1 = vld [vmem:[%s5866_s14 + $0x90] sm:$0xff] }
 0x68c   : > { %1706 = vst [vmem:[%s6522_s3 + $0x30] sm:$0xff] %v1698_v0  ;;  %v1696_v4 = vmul.f32 %v1691_v56, %v1684_v20  ;;  %v1687_v24 = vmul.f32 %v5418_v23, %v4486_v3  ;;  %v2346_v0 = vpack.c.bf16 %v3866_v2, %v3865_v31  ;;  %v3864_v20 = vld [vmem:[%s5866_s14 + $0x98] sm:$0xff]  ;;  %v3862_v23 = vld [vmem:[%s5866_s14 + $0x88] sm:$0xff] }
 0x68d   : > { %v1668_v25 = vpop.f32.mrf.mxu0  ;;  %v2345_v3 = vpack.c.bf16 %v3864_v20, %v3863_v1  ;;  %v6697_v1 = vld [vmem:[%s7433_s6 + $0x78] sm:$0xff]   ;;  %v6708_v20 = vld [vmem:[%s7433_s6 + $0x70] sm:$0xff]  }
 0x68e   : > { %1704 = vst [vmem:[%s6522_s3 + $0x20] sm:$0xff] %v1696_v4  ;;  %v1699_v26 = vmul.f32 %v1691_v56, %v1687_v24  ;;  %v1685_v28 = vmul.f32 %v5419_v27, %v1668_v25  ;;  %v3861_v4 = vld [vmem:[%s5866_s14 + $0x80] sm:$0xff]  ;;  %v6646_v27 = vld [vmem:[#allocation5 + $0x28] sm:$0xff]  }
 0x68f   : > { %v2344_v24 = vpack.c.bf16 %v3862_v23, %v3861_v4  ;;  %v6637_v25 = vld [vmem:[%s7428_s1] sm:$0xff]   ;;  %v6729_v23 = vld [vmem:[%s7433_s6 + $0x58] sm:$0xff]  }
 0x690   : > { %1707 = vst [vmem:[%s6522_s3 + $0x38] sm:$0xff] %v1699_v26  ;;  %v1697_v49 = vmul.f32 %v1691_v56, %v1685_v28  ;;  %v6642_v26 = vld [vmem:[#allocation5 + $0x30] sm:$0xff]   ;;  %v6650_v28 = vld [vmem:[#allocation5 + $0x20] sm:$0xff]  }
 0x691   : > { %v6722_v4 = vld [vmem:[%s7433_s6 + $0x60] sm:$0xff]  }
 0x692   : > { %1705 = vst [vmem:[%s6522_s3 + $0x28] sm:$0xff] %v1697_v49  ;;  %v6654_v49 = vld [vmem:[#allocation5 + $0x18] sm:$0xff]  }
 0x69f   : > { %v4517_v51 = vpop.f32.mrf.mxu0 }
 0x6a0   : > { %5283 = vrcp.f32 %v4517_v51  ;;  %v6662_v51 = vld [vmem:[#allocation5 + $0x8] sm:$0xff]  }
 0x6a1   : > { %v1813_v54 = vpop.f32.mrf.mxu0 }
 0x6a3   : > { %v4518_v58 = vpop.f32.mrf.mxu0 }
 0x6a4   : > { %5285 = vrcp.f32 %v4518_v58 }
 0x6a5   : > { %v1816_v61 = vpop.f32.mrf.mxu0 }
 0x6ad   : > { %v5284_v60 = vpop.eup %5283 }
 0x6ae   : > { %v1830_v5 = vmul.f32 %v5284_v60, %v1813_v54  ;;  %v6666_v54 = vld [vmem:[#allocation5] sm:$0xff]  }
 0x6b1   : > { %v5286_v62 = vpop.eup %5285 }
 0x6b2   : > { %v1831_v6 = vmul.f32 %v5286_v62, %v1816_v61 }
 0x6b4   : > { %v1832_v7 = vpack.c.bf16 %v1831_v6, %v1830_v5 }
 0x6b6   : > { %4536 = vmatmul.mubr.bf16.vlgmr.msra.gmra.mxu1 %v1832_v7  ;;  %4556 = vmatmul.mubr.bf16.vlgmr.msra.gmra.mxu0 %v1832_v7 }
 0x6b7   : > { %4560 = vmatpush3.bf16.msra.mxu1 %v6074_v8  ;;  %4575 = vmatprep.mubr.msk.bf16.mxu1 %vm5668_vm0, %v7572_v22 }
 0x6b8   : > { %4561 = vmatprep.subr.bf16.mxu1 %v7572_v22  ;;  %4585 = vmatprep.mubr.msk.bf16.mxu0 %vm5668_vm0, %v7572_v22 }
 0x6bb   : > { %4562 = vmatpush3.bf16.msra.mxu1 %v6080_v10 }
 0x6bc   : > { %4563 = vmatprep.subr.bf16.mxu1 %v7572_v22 }
 0x6bf   : > { %4564 = vmatpush3.bf16.msra.mxu1 %v6091_v11 }
 0x6c0   : > { %4565 = vmatprep.subr.bf16.mxu1 %v7572_v22 }
 0x6c3   : > { %4566 = vmatpush3.bf16.msra.mxu1 %v6098_v12 }
 0x6c4   : > { %4567 = vmatprep.subr.bf16.mxu1 %v7572_v22 }
 0x6c7   : > { %4568 = vmatpush3.bf16.msra.mxu1 %v6105_v13 }
 0x6c8   : > { %4569 = vmatprep.subr.bf16.mxu1 %v7572_v22 }
 0x6cb   : > { %4570 = vmatpush3.bf16.msra.mxu1 %v6112_v14 }
 0x6cc   : > { %4571 = vmatprep.subr.bf16.mxu1 %v7572_v22 }
 0x6cf   : > { %4572 = vmatpush3.bf16.msra.mxu1 %v6119_v15 }
 0x6d0   : > { %4573 = vmatprep.subr.bf16.mxu1 %v7572_v22 }
 0x6d3   : > { %4574 = vmatpush3.bf16.msra.mxu1 %v6126_v16 }
 0x6d4   : > { %4589 = vmatprep.subr.bf16.mxu1 %v7572_v22 }
 0x6d6   : > { %4576 = vmatmul.mubr.bf16.vlgmr.msra.gmra.mxu1 %v1832_v7 }
 0x6d7   : > { %4590 = vmatpush3.bf16.msra.mxu1 %v6203_v17  ;;  %4605 = vmatprep.mubr.msk.bf16.mxu1 %vm5668_vm0, %v7572_v22 }
 0x6d8   : > { %4591 = vmatprep.subr.bf16.mxu1 %v7572_v22 }
 0x6db   : > { %4592 = vmatpush3.bf16.msra.mxu1 %v6212_v19 }
 0x6dc   : > { %4593 = vmatprep.subr.bf16.mxu1 %v7572_v22 }
 0x6df   : > { %4594 = vmatpush3.bf16.msra.mxu1 %v6221_v34 }
 0x6e0   : > { %4595 = vmatprep.subr.bf16.mxu1 %v7572_v22 }
 0x6e3   : > { %4596 = vmatpush3.bf16.msra.mxu1 %v6228_v36 }
 0x6e4   : > { %4597 = vmatprep.subr.bf16.mxu1 %v7572_v22 }
 0x6e7   : > { %4598 = vmatpush3.bf16.msra.mxu1 %v6235_v39 }
 0x6e8   : > { %4599 = vmatprep.subr.bf16.mxu1 %v7572_v22 }
 0x6eb   : > { %4600 = vmatpush3.bf16.msra.mxu1 %v6242_v41 }
 0x6ec   : > { %4601 = vmatprep.subr.bf16.mxu1 %v7572_v22 }
 0x6ef   : > { %4602 = vmatpush3.bf16.msra.mxu1 %v6250_v43 }
 0x6f0   : > { %4603 = vmatprep.subr.bf16.mxu1 %v7572_v22 }
 0x6f3   : > { %4604 = vmatpush3.bf16.msra.mxu1 %v6263_v45  ;;  %v7576_v45 = vld [vmem:[#allocation18_spill] sm:$0xff] }
 0x6f4   : > { %4629 = vmatprep.subr.bf16.mxu1 %v7572_v22 }
 0x776   : > { %v1867_v8 = vpop.f32.mrf.mxu1  ;;  %v1908_v10 = vpop.f32.mrf.mxu0 }
 0x778   : > { %v4537_v11 = vpop.f32.mrf.mxu1  ;;  %v4557_v12 = vpop.f32.mrf.mxu0 }
 0x77a   : > { %v1870_v13 = vpop.f32.mrf.mxu1  ;;  %v1911_v14 = vpop.f32.mrf.mxu0 }
 0x77b   : > { %v1957_v41 = vpack.c.bf16 %v1911_v14, %v1908_v10  ;;  %v1956_v43 = vpack.c.bf16 %v1870_v13, %v1867_v8 }
 0x77c   : > { %v4538_v15 = vpop.f32.mrf.mxu1  ;;  %v4558_v16 = vpop.f32.mrf.mxu0 }
 0x796   : > { %v1949_v17 = vpop.f32.mrf.mxu1 }
 0x798   : > { %v4577_v19 = vpop.f32.mrf.mxu1 }
 0x799   : > { %v7586_v19 = vld [vmem:[#allocation15_spill] sm:$0xff] }
 0x79a   : > { %v1952_v34 = vpop.f32.mrf.mxu1 }
 0x79b   : > { %v1958_v36 = vpack.c.bf16 %v1952_v34, %v1949_v17 }
 0x79c   : > { %v4578_v39 = vpop.f32.mrf.mxu1 }
 0x79d   : > { %4580 = vmatpush3.bf16.msra.mxu0 %v1958_v36  ;;  %v7587_v36 = vld [vmem:[#allocation31_spill] sm:$0xff] }
 0x79e   : > { %4581 = vmatprep.subr.bf16.mxu0 %v7572_v22 }
 0x7a1   : > { %4582 = vmatpush3.bf16.msra.mxu0 %v1957_v41 }
 0x7a2   : > { %4583 = vmatprep.subr.bf16.mxu0 %v7572_v22 }
 0x7a5   : > { %4584 = vmatpush3.bf16.msra.mxu0 %v1956_v43  ;;  %v7588_v43 = vld [vmem:[#allocation28_spill] sm:$0xff] }
 0x7a6   : > { %4609 = vmatprep.subr.bf16.mxu0 %v7572_v22 }
 0x7a8   : > { %4586 = vmatmul.mubr.msk.bf16.vlgmr.msra.gmra.mxu0 %vm1070_vm2, %v6198_v9 }
 0x7a9   : > { %4610 = vmatpush3.bf16.msra.mxu0 %v6142_v21  ;;  %4625 = vmatprep.mubr.msk.bf16.mxu0 %vm5668_vm0, %v7572_v22 }
 0x7aa   : > { %4611 = vmatprep.subr.bf16.mxu0 %v7572_v22 }
 0x7ad   : > { %4612 = vmatpush3.bf16.msra.mxu0 %v6149_v33 }
 0x7ae   : > { %4613 = vmatprep.subr.bf16.mxu0 %v7572_v22 }
 0x7b1   : > { %4614 = vmatpush3.bf16.msra.mxu0 %v6159_v35 }
 0x7b2   : > { %4615 = vmatprep.subr.bf16.mxu0 %v7572_v22 }
 0x7b5   : > { %4616 = vmatpush3.bf16.msra.mxu0 %v6169_v38  ;;  %v7575_v38 = vld [vmem:[#allocation17_spill] sm:$0xff] }
 0x7b6   : > { %4617 = vmatprep.subr.bf16.mxu0 %v7572_v22 }
 0x7b9   : > { %4618 = vmatpush3.bf16.msra.mxu0 %v6179_v40 }
 0x7ba   : > { %4619 = vmatprep.subr.bf16.mxu0 %v7572_v22 }
 0x7bd   : > { %4620 = vmatpush3.bf16.msra.mxu0 %v6189_v42  ;;  %v7577_v42 = vld [vmem:[#allocation19_spill] sm:$0xff] }
 0x7be   : > { %4621 = vmatprep.subr.bf16.mxu0 %v7572_v22 }
 0x7c1   : > { %4622 = vmatpush3.bf16.msra.mxu0 %v6255_v44  ;;  %v7578_v44 = vld [vmem:[#allocation27_spill] sm:$0xff] }
 0x7c2   : > { %4623 = vmatprep.subr.bf16.mxu0 %v7572_v22 }
 0x7c5   : > { %4624 = vmatpush3.bf16.msra.mxu0 %v6269_v46  ;;  %v7579_v46 = vld [vmem:[#allocation20_spill] sm:$0xff] }
 0x868   : > { %v1993_v21 = vpop.f32.mrf.mxu0 }
 0x869   : > { %v1994_v9 = vadd.f32 %v1993_v21, %v7575_v38 }
 0x86a   : > { %v4587_v33 = vpop.f32.mrf.mxu0 }
 0x86b   : > { %v7589_v33 = vld [vmem:[#allocation29_spill] sm:$0xff] }
 0x86c   : > { %v1996_v35 = vpop.f32.mrf.mxu0 }
 0x86d   : > { %v1997_v56 = vadd.f32 %v1996_v35, %v7576_v45 }
 0x86e   : > { %v4588_v40 = vpop.f32.mrf.mxu0 }
 0x86f   : > { %v2000_v63 = vpack.c.bf16 %v1997_v56, %v1994_v9  ;;  %v7590_v9 = vld [vmem:[#allocation16_spill] sm:$0xff] }
 0x870   : > { %v7591_v40 = vld [vmem:[#allocation32_spill] sm:$0xff] }
 0x871   : > { %4606 = vmatmul.mubr.bf16.vlgmr.msra.gmra.mxu1 %v2000_v63  ;;  %4626 = vmatmul.mubr.bf16.vlgmr.msra.gmra.mxu0 %v2000_v63 }
 0x872   : > { %4630 = vmatpush3.bf16.msra.mxu1 %v7577_v42  ;;  %4645 = vmatprep.mubr.msk.bf16.mxu1 %vm5668_vm0, %v7572_v22 }
 0x873   : > { %4631 = vmatprep.subr.bf16.mxu1 %v7572_v22  ;;  %4655 = vmatprep.mubr.msk.bf16.mxu0 %vm1070_vm2, %v7578_v44 }
 0x876   : > { %4632 = vmatpush3.bf16.msra.mxu1 %v7579_v46  ;;  %v7592_v46 = vld [vmem:[#allocation33_spill] sm:$0xff] }
 0x877   : > { %4633 = vmatprep.subr.bf16.mxu1 %v7572_v22 }
 0x87a   : > { %4634 = vmatpush3.bf16.msra.mxu1 %v7580_v32  ;;  %v7593_v32 = vld [vmem:[#allocation30_spill] sm:$0xff] }
 0x87b   : > { %4635 = vmatprep.subr.bf16.mxu1 %v7572_v22 }
 0x87e   : > { %4636 = vmatpush3.bf16.msra.mxu1 %v7581_v50  ;;  %v7594_v50 = vld [vmem:[#allocation34_spill] sm:$0xff] }
 0x87f   : > { %4637 = vmatprep.subr.bf16.mxu1 %v7572_v22 }
 0x882   : > { %4638 = vmatpush3.bf16.msra.mxu1 %v7582_v37  ;;  %v7595_v37 = vld [vmem:[#allocation35_spill] sm:$0xff] }
 0x883   : > { %4639 = vmatprep.subr.bf16.mxu1 %v7572_v22 }
 0x886   : > { %4640 = vmatpush3.bf16.msra.mxu1 %v7583_v48  ;;  %v7596_v48 = vld [vmem:[#allocation36_spill] sm:$0xff] }
 0x887   : > { %4641 = vmatprep.subr.bf16.mxu1 %v7572_v22 }
 0x88a   : > { %4642 = vmatpush3.bf16.msra.mxu1 %v7584_v53 }
 0x88b   : > { %4643 = vmatprep.subr.bf16.mxu1 %v7572_v22 }
 0x88e   : > { %4644 = vmatpush3.bf16.msra.mxu1 %v7585_v18 }
 0x88f   : > { %4687 = vmatprep.subr.bf16.mxu1 %v7572_v22 }
 0x891   : > { %4646 = vmatmul.mubr.bf16.vlgmr.msra.gmra.mxu1 %v2000_v63 }
 0x892   : > { %4688 = vmatpush3.bf16.msra.mxu1 %v2347_v47  ;;  %4695 = vmatprep.mubr.msk.bf16.mxu1 %vm5668_vm0, %v7572_v22  ;;  %v7597_v47 = vld [vmem:[#allocation37_spill] sm:$0xff] }
 0x893   : > { %4689 = vmatprep.subr.bf16.mxu1 %v7572_v22 }
 0x896   : > { %4690 = vmatpush3.bf16.msra.mxu1 %v2346_v0  ;;  %v7598_v0 = vld [vmem:[#allocation38_spill] sm:$0xff] }
 0x897   : > { %4691 = vmatprep.subr.bf16.mxu1 %v7572_v22 }
 0x89a   : > { %4692 = vmatpush3.bf16.msra.mxu1 %v2345_v3  ;;  %v6715_v3 = vld [vmem:[%s7433_s6 + $0x68] sm:$0xff]  }
 0x89b   : > { %4693 = vmatprep.subr.bf16.mxu1 %v7572_v22 }
 0x89e   : > { %4694 = vmatpush3.bf16.msra.mxu1 %v2344_v24  ;;  %v6736_v24 = vld [vmem:[%s7433_s6 + $0x50] sm:$0xff]  }
 0x89f   : > { %4699 = vmatprep.subr.bf16.mxu1 %v6473_v57 }
 0x8a1   : > { %4696 = vmatmul.mubr.msk.bf16.vlgmr.msra.gmra.mxu1 %vm626_vm1, %v6637_v25 }
 0x8a2   : > { %4700 = vmatpush3.bf16.msra.mxu1 %v6473_v57  ;;  %v6658_v57 = vld [vmem:[#allocation5 + $0x10] sm:$0xff]  }
 0x8a3   : > { %4701 = vmatprep.subr.bf16.mxu1 %v6642_v26 }
 0x8a6   : > { %4702 = vmatpush3.bf16.msra.mxu1 %v6642_v26 }
 0x8a7   : > { %4703 = vmatprep.subr.bf16.mxu1 %v6646_v27 }
 0x8aa   : > { %4704 = vmatpush3.bf16.msra.mxu1 %v6646_v27 }
 0x8ab   : > { %4705 = vmatprep.subr.bf16.mxu1 %v6650_v28 }
 0x8ae   : > { %4706 = vmatpush3.bf16.msra.mxu1 %v6650_v28 }
 0x8af   : > { %4707 = vmatprep.subr.bf16.mxu1 %v6654_v49 }
 0x8b2   : > { %4708 = vmatpush3.bf16.msra.mxu1 %v6654_v49 }
 0x8b3   : > { %4709 = vmatprep.subr.bf16.mxu1 %v6658_v57 }
 0x8b6   : > { %4710 = vmatpush3.bf16.msra.mxu1 %v6658_v57 }
 0x8b7   : > { %4711 = vmatprep.subr.bf16.mxu1 %v6662_v51 }
 0x8ba   : > { %4712 = vmatpush3.bf16.msra.mxu1 %v6662_v51 }
 0x8bb   : > { %4713 = vmatprep.subr.bf16.mxu1 %v6666_v54 }
 0x8be   : > { %4714 = vmatpush3.bf16.msra.mxu1 %v6666_v54 }
 0x8bf   : > { %4739 = vmatprep.subr.bf16.mxu1 %v7572_v22 }
 0x931   : > { %v2035_v58 = vpop.f32.mrf.mxu1  ;;  %v2076_v60 = vpop.f32.mrf.mxu0 }
 0x933   : > { %v4607_v62 = vpop.f32.mrf.mxu1  ;;  %v4627_v61 = vpop.f32.mrf.mxu0 }
 0x934   : > { %v7599_v61 = vld [vmem:[#allocation41_spill] sm:$0xff] }
 0x935   : > { %v2038_v5 = vpop.f32.mrf.mxu1  ;;  %v2079_v6 = vpop.f32.mrf.mxu0 }
 0x936   : > { %v2125_v15 = vpack.c.bf16 %v2079_v6, %v2076_v60  ;;  %v2124_v16 = vpack.c.bf16 %v2038_v5, %v2035_v58  ;;  %v6743_v58 = vld [vmem:[%s7433_s6 + $0x48] sm:$0xff]   ;;  %v6750_v60 = vld [vmem:[%s7433_s6 + $0x40] sm:$0xff]  }
 0x937   : > { %v4608_v7 = vpop.f32.mrf.mxu1  ;;  %v4628_v8 = vpop.f32.mrf.mxu0 }
 0x938   : > { %v7600_v8 = vld [vmem:[#allocation39_spill] sm:$0xff] }
 0x951   : > { %v2117_v10 = vpop.f32.mrf.mxu1 }
 0x953   : > { %v4647_v11 = vpop.f32.mrf.mxu1 }
 0x955   : > { %v2120_v12 = vpop.f32.mrf.mxu1 }
 0x956   : > { %v2126_v13 = vpack.c.bf16 %v2120_v12, %v2117_v10 }
 0x957   : > { %v4648_v14 = vpop.f32.mrf.mxu1 }
 0x958   : > { %4649 = vmatprep.subr.bf16.mxu0 %v2126_v13  ;;  %v7601_v14 = vld [vmem:[#allocation42_spill] sm:$0xff] }
 0x959   : > { %4650 = vmatpush3.bf16.msra.mxu0 %v2126_v13 }
 0x95a   : > { %4651 = vmatprep.subr.bf16.mxu0 %v2125_v15 }
 0x95d   : > { %4652 = vmatpush3.bf16.msra.mxu0 %v2125_v15 }
 0x95e   : > { %4653 = vmatprep.subr.bf16.mxu0 %v2124_v16 }
 0x961   : > { %4654 = vmatpush3.bf16.msra.mxu0 %v2124_v16  ;;  %v2382_v17 = vpop.f32.mrf.mxu1 }
 0x962   : > { %v2383_v34 = vadd.f32 %v2382_v17, %v7586_v19  ;;  %4663 = vmatprep.subr.bf16.mxu0 %v7587_v36 }
 0x963   : > { %v4697_v39 = vpop.f32.mrf.mxu1 }
 0x964   : > { %v3870_v41 = vclamps-f32 %v2383_v34, 10.0  ;;  %4656 = vmatmul.mubr.msk.bf16.vlgmr.msra.gmra.mxu0 %vm1070_vm2, %v7588_v43 }
 0x965   : > { %v2385_v21 = vpop.f32.mrf.mxu1  ;;  %4659 = vmatprep.mubr.msk.bf16.mxu0 %vm1070_vm2, %v7589_v33  ;;  %4664 = vmatpush3.bf16.msra.mxu0 %v7587_v36  ;;  %v7602_v36 = vld [vmem:[#allocation40_spill] sm:$0xff]  ;;  %v7603_v33 = vld [vmem:[#allocation45_spill] sm:$0xff] }
 0x966   : > { %v2393_v35 = vmul.f32 1.442695, %v3870_v41  ;;  %v2386_v56 = vadd.f32 %v2385_v21, %v7590_v9  ;;  %4665 = vmatprep.subr.bf16.mxu0 %v7591_v40 }
 0x967   : > { %v4698_v63 = vpop.f32.mrf.mxu1 }
 0x968   : > { %v3871_v42 = vclamps-f32 %v2386_v56, 10.0  ;;  %5287 = vpow2.f32 %v2393_v35 }
 0x969   : > { %4666 = vmatpush3.bf16.msra.mxu0 %v7591_v40 }
 0x96a   : > { %v2395_v44 = vmul.f32 1.442695, %v3871_v42  ;;  %4667 = vmatprep.subr.bf16.mxu0 %v7592_v46  ;;  %v7604_v42 = vld [vmem:[#allocation43_spill] sm:$0xff] }
 0x96c   : > { %5289 = vpow2.f32 %v2395_v44  ;;  %4660 = vmatmul.mubr.msk.bf16.gmra.mxu0 %vm1070_vm2, %v7593_v32 }
 0x96d   : > { %4668 = vmatpush3.bf16.msra.mxu0 %v7592_v46 }
 0x96e   : > { %4669 = vmatprep.subr.bf16.mxu0 %v7594_v50 }
 0x971   : > { %4670 = vmatpush3.bf16.msra.mxu0 %v7594_v50 }
 0x972   : > { %4671 = vmatprep.subr.bf16.mxu0 %v7595_v37 }
 0x975   : > { %4672 = vmatpush3.bf16.msra.mxu0 %v7595_v37  ;;  %v5288_v53 = vpop.eup %5287 }
 0x976   : > { %4673 = vmatprep.subr.bf16.mxu0 %v7596_v48  ;;  %v2397_v29 = vmul.f32 %v5288_v53, %v2383_v34 }
 0x979   : > { %v5290_v55 = vpop.eup %5289  ;;  %4674 = vmatpush3.bf16.msra.mxu0 %v7596_v48 }
 0x97a   : > { %v2398_v18 = vmul.f32 %v5290_v55, %v2386_v56  ;;  %4675 = vmatprep.subr.bf16.mxu0 %v7597_v47  ;;  %v2400_v2 = vpack.c.bf16 %v5290_v55, %v5288_v53 }
 0x97c   : > { %v2399_v31 = vpack.c.bf16 %v2398_v18, %v2397_v29 }
 0x97d   : > { %4676 = vmatpush3.bf16.msra.mxu0 %v7597_v47 }
 0x97e   : > { %4715 = vmatprep.mubr.bf16.mxu1 %v2399_v31  ;;  %4677 = vmatprep.subr.bf16.mxu0 %v7598_v0 }
 0x97f   : > { %4716 = vmatmul.mubr.bf16.vlgmr.msra.gmra.mxu1 %v2400_v2 }
 0x980   : > { %4740 = vmatpush3.bf16.msra.mxu1 %v6697_v1  ;;  %4755 = vmatprep.mubr.msk.bf16.mxu1 %vm5668_vm0, %v7572_v22 }
 0x981   : > { %4741 = vmatprep.subr.bf16.mxu1 %v7572_v22  ;;  %4678 = vmatpush3.bf16.msra.mxu0 %v7598_v0 }
 0x982   : > { %4719 = vmatprep.subr.bf16.mxu0 %v7572_v22 }
 0x984   : > { %4742 = vmatpush3.bf16.msra.mxu1 %v6708_v20 }
 0x985   : > { %4743 = vmatprep.subr.bf16.mxu1 %v7572_v22 }
 0x988   : > { %4744 = vmatpush3.bf16.msra.mxu1 %v6715_v3 }
 0x989   : > { %4745 = vmatprep.subr.bf16.mxu1 %v7572_v22 }
 0x98c   : > { %4746 = vmatpush3.bf16.msra.mxu1 %v6722_v4 }
 0x98d   : > { %4747 = vmatprep.subr.bf16.mxu1 %v7572_v22 }
 0x990   : > { %4748 = vmatpush3.bf16.msra.mxu1 %v6729_v23 }
 0x991   : > { %4749 = vmatprep.subr.bf16.mxu1 %v7572_v22 }
 0x994   : > { %4750 = vmatpush3.bf16.msra.mxu1 %v6736_v24 }
 0x995   : > { %4751 = vmatprep.subr.bf16.mxu1 %v7572_v22 }
 0x998   : > { %4752 = vmatpush3.bf16.msra.mxu1 %v6743_v58 }
 0x999   : > { %4753 = vmatprep.subr.bf16.mxu1 %v7572_v22 }
 0x99c   : > { %4754 = vmatpush3.bf16.msra.mxu1 %v6750_v60 }
 0x99d   : > { %4779 = vmatprep.subr.bf16.mxu1 %v7572_v22 }
 0xa24   : > { %v4657_v62 = vpop.f32.mrf.mxu0 }
 0xa25   : > { %v2170_v5 = vadd.f32 %v4657_v62, %v7599_v61 }
 0xa26   : > { %v2161_v6 = vpop.f32.mrf.mxu0 }
 0xa27   : > { %v2194_v7 = vsub.f32 0.0, %v2170_v5  ;;  %v2162_v10 = vadd.f32 %v2161_v6, %v7600_v8 }
 0xa28   : > { %v4658_v11 = vpop.f32.mrf.mxu0 }
 0xa29   : > { %v2204_v12 = vmul.f32 1.442695, %v2194_v7  ;;  %v2192_v13 = vsub.f32 0.0, %v2162_v10  ;;  %v2173_v15 = vadd.f32 %v4658_v11, %v7601_v14 }
 0xa2a   : > { %v2164_v16 = vpop.f32.mrf.mxu0 }
 0xa2b   : > { %5291 = vpow2.f32 %v2204_v12  ;;  %v2200_v17 = vmul.f32 1.442695, %v2192_v13  ;;  %v2195_v34 = vsub.f32 0.0, %v2173_v15  ;;  %v2165_v39 = vadd.f32 %v2164_v16, %v7602_v36 }
 0xa2c   : > { %v4661_v41 = vpop.f32.mrf.mxu0 }
 0xa2d   : > { %5293 = vpow2.f32 %v2200_v17  ;;  %v2206_v43 = vmul.f32 1.442695, %v2195_v34  ;;  %v2193_v21 = vsub.f32 0.0, %v2165_v39  ;;  %v2186_v35 = vadd.f32 %v4661_v41, %v7603_v33 }
 0xa2e   : > { %v2177_v56 = vpop.f32.mrf.mxu0 }
 0xa2f   : > { %5295 = vpow2.f32 %v2206_v43  ;;  %v2202_v40 = vmul.f32 1.442695, %v2193_v21  ;;  %v2198_v63 = vsub.f32 0.0, %v2186_v35  ;;  %v2178_v44 = vadd.f32 %v2177_v56, %v7604_v42 }
 0xa30   : > { %v4662_v46 = vpop.f32.mrf.mxu0 }
 0xa31   : > { %5297 = vpow2.f32 %v2202_v40  ;;  %v2196_v32 = vsub.f32 0.0, %v2178_v44  ;;  %v2189_v50 = vadd.f32 %v4662_v46, %v6469_v59  ;;  %v2212_v37 = vmul.f32 1.442695, %v2198_v63 }
 0xa32   : > { %v2180_v48 = vpop.f32.mrf.mxu0 }
 0xa33   : > { %v2208_v53 = vmul.f32 1.442695, %v2196_v32  ;;  %v2199_v55 = vsub.f32 0.0, %v2189_v50  ;;  %v2181_v29 = vadd.f32 %v2180_v48, %v6462_v30 }
 0xa35   : > { %5299 = vpow2.f32 %v2208_v53  ;;  %v2214_v18 = vmul.f32 1.442695, %v2199_v55  ;;  %v2197_v47 = vsub.f32 0.0, %v2181_v29  ;;  %v6765_v29 = vld [vmem:[%s7433_s6 + $0x38] sm:$0xff]  }
 0xa36   : > { %5301 = vpow2.f32 %v2212_v37 }
 0xa37   : > { %5303 = vpow2.f32 %v2214_v18  ;;  %v2210_v31 = vmul.f32 1.442695, %v2197_v47 }
 0xa38   : > { %v5292_v2 = vpop.eup %5291 }
 0xa39   : > { %5305 = vpow2.f32 %v2210_v31  ;;  %v2218_v62 = vadd.f32 1.0, %v5292_v2 }
 0xa3a   : > { %v5294_v0 = vpop.eup %5293 }
 0xa3b   : > { %v2216_v5 = vadd.f32 1.0, %v5294_v0  ;;  %5307 = vrcp.f32 %v2218_v62  ;;  %v6772_v62 = vld [vmem:[%s7433_s6 + $0x30] sm:$0xff]  }
 0xa3c   : > { %v5296_v6 = vpop.eup %5295 }
 0xa3d   : > { %v2219_v7 = vadd.f32 1.0, %v5296_v6  ;;  %5309 = vrcp.f32 %v2216_v5 }
 0xa3e   : > { %v5298_v10 = vpop.eup %5297 }
 0xa3f   : > { %v2217_v11 = vadd.f32 1.0, %v5298_v10  ;;  %v4717_v12 = vpop.f32.mrf.mxu1  ;;  %5311 = vrcp.f32 %v2219_v7  ;;  %v6781_v7 = vld [vmem:[%s7433_s6 + $0x28] sm:$0xff]   ;;  %v6790_v10 = vld [vmem:[%s7433_s6 + $0x20] sm:$0xff]  }
 0xa41   : > { %5313 = vrcp.f32 %v2217_v11  ;;  %v2435_v13 = vpop.f32.mrf.mxu1  ;;  %v6797_v11 = vld [vmem:[%s7433_s6 + $0x18] sm:$0xff]  }
 0xa42   : > { %v5300_v15 = vpop.eup %5299  ;;  %5315 = vrcp.f32 %v4717_v12  ;;  %v6804_v12 = vld [vmem:[%s7433_s6 + $0x10] sm:$0xff]  }
 0xa43   : > { %v5302_v16 = vpop.eup %5301  ;;  %v2220_v17 = vadd.f32 1.0, %v5300_v15  ;;  %v4718_v34 = vpop.f32.mrf.mxu1  ;;  %v6818_v15 = vld [vmem:[%s7433_s6] sm:$0xff]  }
 0xa44   : > { %v5304_v39 = vpop.eup %5303  ;;  %5317 = vrcp.f32 %v4718_v34  ;;  %v2222_v21 = vadd.f32 1.0, %v5302_v16  ;;  %v6825_v16 = vld [vmem:[%s7433_s6 + $0xb8] sm:$0xff]   ;;  %v6841_v34 = vld [vmem:[%s7433_s6 + $0xa8] sm:$0xff]  }
 0xa45   : > { %v2223_v41 = vadd.f32 1.0, %v5304_v39  ;;  %5319 = vrcp.f32 %v2220_v17  ;;  %v2438_v48 = vpop.f32.mrf.mxu1  ;;  %v6834_v17 = vld [vmem:[%s7433_s6 + $0xb0] sm:$0xff]   ;;  %v6848_v39 = vld [vmem:[%s7433_s6 + $0xa0] sm:$0xff]  }
 0xa46   : > { %v5306_v43 = vpop.eup %5305 }
 0xa47   : > { %v2221_v35 = vadd.f32 1.0, %v5306_v43  ;;  %5321 = vrcp.f32 %v2223_v41  ;;  %v6855_v41 = vld [vmem:[%s7433_s6 + $0x98] sm:$0xff]   ;;  %v6862_v43 = vld [vmem:[%s7433_s6 + $0x90] sm:$0xff]  }
 0xa48   : > { %v5308_v56 = vpop.eup %5307 }
 0xa49   : > { %5323 = vrcp.f32 %v2221_v35  ;;  %v6876_v35 = vld [vmem:[%s7433_s6 + $0x80] sm:$0xff]  }
 0xa4a   : > { %5325 = vrcp.f32 %v2222_v21  ;;  %v5310_v40 = vpop.eup %5309  ;;  %v6869_v21 = vld [vmem:[%s7433_s6 + $0x88] sm:$0xff]   ;;  %7606 = vst [vmem:[#allocation18_spill] sm:$0xff] %v6876_v35 }
 0xa4b   : > { %7605 = vst [vmem:[#allocation17_spill] sm:$0xff] %v6869_v21 }
 0xa4c   : > { %v5312_v63 = vpop.eup %5311 }
 0xa4d   : > { %v2233_v50 = vpack.c.bf16 %v5312_v63, %v5308_v56  ;;  %v6883_v56 = vld [vmem:[%s7436_s9 + $0x38] sm:$0xff]   ;;  %v6899_v63 = vld [vmem:[%s7436_s9 + $0x28] sm:$0xff]  }
 0xa4e   : > { %v5314_v44 = vpop.eup %5313  ;;  %7607 = vst [vmem:[#allocation19_spill] sm:$0xff] %v6883_v56  ;;  %7609 = vst [vmem:[#allocation20_spill] sm:$0xff] %v6899_v63 }
 0xa4f   : > { %v5316_v46 = vpop.eup %5315  ;;  %v2232_v32 = vpack.c.bf16 %v5314_v44, %v5310_v40  ;;  %v6892_v40 = vld [vmem:[%s7436_s9 + $0x30] sm:$0xff]   ;;  %v6906_v44 = vld [vmem:[%s7436_s9 + $0x20] sm:$0xff]  }
 0xa50   : > { %v2452_v53 = vmul.f32 %v5316_v46, %v2435_v13  ;;  %v6811_v13 = vld [vmem:[%s7433_s6 + $0x8] sm:$0xff]   ;;  %7608 = vst [vmem:[#allocation27_spill] sm:$0xff] %v6892_v40  ;;  %7610 = vst [vmem:[#allocation21_spill] sm:$0xff] %v6906_v44  ;;  %v6913_v46 = vld [vmem:[%s7436_s9 + $0x18] sm:$0xff]  }
 0xa51   : > { %v5318_v37 = vpop.eup %5317  ;;  %4679 = vmatprep.mubr.bf16.mxu0 %v2232_v32  ;;  %7611 = vst [vmem:[#allocation22_spill] sm:$0xff] %v6913_v46  ;;  %v6920_v32 = vld [vmem:[%s7436_s9 + $0x10] sm:$0xff]  }
 0xa52   : > { %v2453_v55 = vmul.f32 %v5318_v37, %v2438_v48  ;;  %4680 = vmatmul.mubr.bf16.vlgmr.msra.gmra.mxu0 %v2233_v50  ;;  %v5320_v18 = vpop.eup %5319  ;;  %7612 = vst [vmem:[#allocation23_spill] sm:$0xff] %v6920_v32  ;;  %v6927_v50 = vld [vmem:[%s7436_s9 + $0x8] sm:$0xff]   ;;  %v6934_v37 = vld [vmem:[%s7436_s9] sm:$0xff]  }
 0xa53   : > { %4720 = vmatpush3.bf16.msra.mxu0 %v6765_v29  ;;  %7613 = vst [vmem:[#allocation24_spill] sm:$0xff] %v6927_v50  ;;  %7614 = vst [vmem:[#allocation25_spill] sm:$0xff] %v6934_v37  ;;  %v5460_v48 = vld [vmem:[%s5866_s14 + $0x40] sm:$0xff] }
 0xa54   : > { %v2454_v47 = vpack.c.bf16 %v2453_v55, %v2452_v53  ;;  %4721 = vmatprep.subr.bf16.mxu0 %v7572_v22  ;;  %v5322_v31 = vpop.eup %5321  ;;  %v1717_v53 = vsub.f32 0.0, %v5460_v48 }
 0xa56   : > { %v5324_v2 = vpop.eup %5323  ;;  %4756 = vmatmul.mubr.bf16.vlgmr.msra.gmra.mxu1 %v2454_v47  ;;  %v1718_v55 = vmul.f32 1.442695, %v1717_v53 }
 0xa57   : > { %v5326_v0 = vpop.eup %5325  ;;  %4722 = vmatpush3.bf16.msra.mxu0 %v6772_v62  ;;  %v2234_v5 = vpack.c.bf16 %v5324_v2, %v5320_v18  ;;  %4785 = vmatprep.mubr.msk.bf16.mxu1 %vm5668_vm0, %v7572_v22 }
 0xa58   : > { %4723 = vmatprep.subr.bf16.mxu0 %v7572_v22  ;;  %v2235_v6 = vpack.c.bf16 %v5322_v31, %v5326_v0  ;;  %5327 = vpow2.f32 %v1718_v55 }
 0xa59   : > { %4683 = vmatprep.mubr.bf16.mxu0 %v2234_v5  ;;  %v5461_v5 = vld [vmem:[%s5866_s14 + $0x50] sm:$0xff] }
 0xa5a   : > { %4684 = vmatmul.mubr.bf16.gmra.mxu0 %v2235_v6 }
 0xa5b   : > { %4724 = vmatpush3.bf16.msra.mxu0 %v6781_v7  ;;  %4735 = vmatprep.mubr.msk.bf16.mxu0 %vm5668_vm0, %v7572_v22 }
 0xa5c   : > { %4725 = vmatprep.subr.bf16.mxu0 %v7572_v22 }
 0xa5f   : > { %4726 = vmatpush3.bf16.msra.mxu0 %v6790_v10 }
 0xa60   : > { %4727 = vmatprep.subr.bf16.mxu0 %v7572_v22 }
 0xa63   : > { %4728 = vmatpush3.bf16.msra.mxu0 %v6797_v11 }
 0xa64   : > { %4729 = vmatprep.subr.bf16.mxu0 %v7572_v22 }
 0xa65   : > { %v5328_v18 = vpop.eup %5327 }
 0xa67   : > { %4730 = vmatpush3.bf16.msra.mxu0 %v6804_v12 }
 0xa68   : > { %4731 = vmatprep.subr.bf16.mxu0 %v7572_v22 }
 0xa6b   : > { %4732 = vmatpush3.bf16.msra.mxu0 %v6811_v13 }
 0xa6c   : > { %4733 = vmatprep.subr.bf16.mxu0 %v7572_v22 }
 0xa6f   : > { %4734 = vmatpush3.bf16.msra.mxu0 %v6818_v15 }
 0xa70   : > { %4759 = vmatprep.subr.bf16.mxu0 %v7572_v22 }
 0xa72   : > { %4736 = vmatmul.mubr.bf16.vlgmr.msra.gmra.mxu0 %v2454_v47 }
 0xa73   : > { %4760 = vmatpush3.bf16.msra.mxu0 %v6825_v16  ;;  %4775 = vmatprep.mubr.msk.bf16.mxu0 %vm5668_vm0, %v7572_v22 }
 0xa74   : > { %4761 = vmatprep.subr.bf16.mxu0 %v7572_v22 }
 0xa77   : > { %4762 = vmatpush3.bf16.msra.mxu0 %v6834_v17 }
 0xa78   : > { %4763 = vmatprep.subr.bf16.mxu0 %v7572_v22 }
 0xa7b   : > { %4764 = vmatpush3.bf16.msra.mxu0 %v6841_v34 }
 0xa7c   : > { %4765 = vmatprep.subr.bf16.mxu0 %v7572_v22 }
 0xa7f   : > { %4766 = vmatpush3.bf16.msra.mxu0 %v6848_v39 }
 0xa80   : > { %4767 = vmatprep.subr.bf16.mxu0 %v7572_v22 }
 0xa83   : > { %4768 = vmatpush3.bf16.msra.mxu0 %v6855_v41 }
 0xa84   : > { %4769 = vmatprep.subr.bf16.mxu0 %v7572_v22 }
 0xa87   : > { %4770 = vmatpush3.bf16.msra.mxu0 %v6862_v43 }
 0xa88   : > { %4771 = vmatprep.subr.bf16.mxu0 %v7572_v22 }
 0xa8b   : > { %4772 = vmatpush3.bf16.msra.mxu0 %v6869_v21 }
 0xa8c   : > { %4773 = vmatprep.subr.bf16.mxu0 %v7572_v22 }
 0xa8f   : > { %4774 = vmatpush3.bf16.msra.mxu0 %v6876_v35  ;;  %v5467_v35 = vld [vmem:[%s5866_s14 + $0x68] sm:$0xff] }
 0xa90   : > { %4789 = vmatprep.subr.bf16.mxu0 %v7572_v22 }
 0xa92   : > { %4776 = vmatmul.mubr.bf16.vlgmr.msra.gmra.mxu0 %v2454_v47  ;;  %v1720_v47 = vadd.f32 1.0, %v5328_v18 }
 0xa93   : > { %4790 = vmatpush3.bf16.msra.mxu0 %v6883_v56  ;;  %4805 = vmatprep.mubr.msk.bf16.mxu0 %vm5668_vm0, %v7572_v22 }
 0xa94   : > { %4791 = vmatprep.subr.bf16.mxu0 %v7572_v22  ;;  %5329 = vrcp.f32 %v1720_v47 }
 0xa97   : > { %4792 = vmatpush3.bf16.msra.mxu0 %v6892_v40 }
 0xa98   : > { %4793 = vmatprep.subr.bf16.mxu0 %v7572_v22 }
 0xa9b   : > { %4794 = vmatpush3.bf16.msra.mxu0 %v6899_v63 }
 0xa9c   : > { %4795 = vmatprep.subr.bf16.mxu0 %v7572_v22 }
 0xa9f   : > { %4796 = vmatpush3.bf16.msra.mxu0 %v6906_v44  ;;  %v5462_v44 = vld [vmem:[%s5866_s14 + $0x58] sm:$0xff] }
 0xaa0   : > { %4797 = vmatprep.subr.bf16.mxu0 %v7572_v22 }
 0xaa1   : > { %v5330_v31 = vpop.eup %5329 }
 0xaa2   : > { %v2312_v2 = vrot.slane %v5330_v31, %v6516_v52  ;;  %v5463_v52 = vld [vmem:[%s5866_s14 + $0x48] sm:$0xff] }
 0xaa3   : > { %4798 = vmatpush3.bf16.msra.mxu0 %v6913_v46 }
 0xaa4   : > { %4799 = vmatprep.subr.bf16.mxu0 %v7572_v22 }
 0xaa7   : > { %4800 = vmatpush3.bf16.msra.mxu0 %v6920_v32 }
 0xaa8   : > { %4801 = vmatprep.subr.bf16.mxu0 %v7572_v22 }
 0xaab   : > { %4802 = vmatpush3.bf16.msra.mxu0 %v6927_v50 }
 0xaac   : > { %4803 = vmatprep.subr.bf16.mxu0 %v7572_v22 }
 0xaaf   : > { %4804 = vmatpush3.bf16.msra.mxu0 %v6934_v37 }
 0xab0   : > { %4829 = vmatprep.subr.bf16.mxu0 %v7572_v22 }
 0xb12   : > { %v4681_v0 = vpop.f32.mrf.mxu0 }
 0xb13   : > { %v2303_v6 = vmul.f32 %v5461_v5, %v4681_v0 }
 0xb14   : > { %v2270_v37 = vpop.f32.mrf.mxu0 }
 0xb15   : > { %v2315_v50 = vmul.f32 %v2312_v2, %v2303_v6  ;;  %v2301_v32 = vmul.f32 %v5460_v48, %v2270_v37  ;;  %v5464_v48 = vld [vmem:[%s5866_s14 + $0x70] sm:$0xff] }
 0xb16   : > { %v4682_v46 = vpop.f32.mrf.mxu0  ;;  %v2530_v53 = vpop.f32.mrf.mxu1 }
 0xb17   : > { %3855 = vst [vmem:[%s6522_s3 + $0x50] sm:$0xff] %v2315_v50  ;;  %v2313_v55 = vmul.f32 %v2312_v2, %v2301_v32  ;;  %v2304_v18 = vmul.f32 %v5462_v44, %v4682_v46 }
 0xb18   : > { %v2273_v47 = vpop.f32.mrf.mxu0  ;;  %v4757_v63 = vpop.f32.mrf.mxu1 }
 0xb19   : > { %3853 = vst [vmem:[%s6522_s3 + $0x40] sm:$0xff] %v2313_v55  ;;  %v2316_v31 = vmul.f32 %v2312_v2, %v2304_v18  ;;  %v2302_v0 = vmul.f32 %v5463_v52, %v2273_v47  ;;  %v5465_v55 = vld [vmem:[%s5866_s14 + $0x60] sm:$0xff]  ;;  %v5466_v47 = vld [vmem:[%s5866_s14 + $0x78] sm:$0xff] }
 0xb1a   : > { %v4685_v5 = vpop.f32.mrf.mxu0  ;;  %v2533_v6 = vpop.f32.mrf.mxu1 }
 0xb1b   : > { %3856 = vst [vmem:[%s6522_s3 + $0x58] sm:$0xff] %v2316_v31  ;;  %v2314_v37 = vmul.f32 %v2312_v2, %v2302_v0  ;;  %v2307_v50 = vmul.f32 %v5464_v48, %v4685_v5  ;;  %v2579_v32 = vpack.c.bf16 %v2533_v6, %v2530_v53 }
 0xb1c   : > { %v2286_v44 = vpop.f32.mrf.mxu0  ;;  %v4758_v46 = vpop.f32.mrf.mxu1 }
 0xb1d   : > { %3854 = vst [vmem:[%s6522_s3 + $0x48] sm:$0xff] %v2314_v37  ;;  %v2319_v63 = vmul.f32 %v2312_v2, %v2307_v50  ;;  %v2305_v18 = vmul.f32 %v5465_v55, %v2286_v44 }
 0xb1e   : > { %v4686_v40 = vpop.f32.mrf.mxu0 }
 0xb1f   : > { %3859 = vst [vmem:[%s6522_s3 + $0x70] sm:$0xff] %v2319_v63  ;;  %v2317_v52 = vmul.f32 %v2312_v2, %v2305_v18  ;;  %v2308_v56 = vmul.f32 %v5466_v47, %v4686_v40  ;;  %v6977_v40 = vld [vmem:[%s7436_s9 + $0x70] sm:$0xff]   ;;  %v6998_v18 = vld [vmem:[%s7436_s9 + $0x58] sm:$0xff]   ;;  %v7012_v47 = vld [vmem:[%s7436_s9 + $0x48] sm:$0xff]  }
 0xb20   : > { %v2289_v31 = vpop.f32.mrf.mxu0 }
 0xb21   : > { %3857 = vst [vmem:[%s6522_s3 + $0x60] sm:$0xff] %v2317_v52  ;;  %v2320_v0 = vmul.f32 %v2312_v2, %v2308_v56  ;;  %v2306_v5 = vmul.f32 %v5467_v35, %v2289_v31  ;;  %v6961_v35 = vld [vmem:[%s7431_s4] sm:$0xff]   ;;  %v7005_v52 = vld [vmem:[%s7436_s9 + $0x50] sm:$0xff]  }
 0xb22   : > { %v7019_v31 = vld [vmem:[%s7436_s9 + $0x40] sm:$0xff]  }
 0xb23   : > { %3860 = vst [vmem:[%s6522_s3 + $0x78] sm:$0xff] %v2320_v0  ;;  %v2318_v53 = vmul.f32 %v2312_v2, %v2306_v5  ;;  %v6984_v2 = vld [vmem:[%s7436_s9 + $0x68] sm:$0xff]  }
 0xb25   : > { %3858 = vst [vmem:[%s6522_s3 + $0x68] sm:$0xff] %v2318_v53 }
 0xb32   : > { %v2489_v6 = vpop.f32.mrf.mxu0 }
 0xb34   : > { %v4737_v48 = vpop.f32.mrf.mxu0 }
 0xb36   : > { %v2492_v37 = vpop.f32.mrf.mxu0 }
 0xb37   : > { %v2578_v56 = vpack.c.bf16 %v2492_v37, %v2489_v6 }
 0xb38   : > { %v4738_v46 = vpop.f32.mrf.mxu0 }
 0xb52   : > { %v2571_v50 = vpop.f32.mrf.mxu0 }
 0xb54   : > { %v4777_v21 = vpop.f32.mrf.mxu0 }
 0xb55   : > { %v6968_v21 = vld [vmem:[%s7436_s9 + $0x78] sm:$0xff]  }
 0xb56   : > { %v2574_v44 = vpop.f32.mrf.mxu0 }
 0xb57   : > { %v2580_v55 = vpack.c.bf16 %v2574_v44, %v2571_v50  ;;  %v7027_v50 = vld [vmem:[%s7436_s9 + $0xb8] sm:$0xff]   ;;  %v7036_v44 = vld [vmem:[%s7434_s7] sm:$0xff]  }
 0xb58   : > { %v4778_v63 = vpop.f32.mrf.mxu0 }
 0xb59   : > { %4780 = vmatpush3.bf16.msra.mxu1 %v2580_v55  ;;  %v7043_v55 = vld [vmem:[%s7436_s9 + $0xb0] sm:$0xff]   ;;  %v7050_v63 = vld [vmem:[%s7436_s9 + $0xa8] sm:$0xff]  }
 0xb5a   : > { %4781 = vmatprep.subr.bf16.mxu1 %v7572_v22  ;;  %7615 = vst [vmem:[#allocation26_spill] sm:$0xff] %v7043_v55  ;;  %7616 = vst [vmem:[#allocation15_spill] sm:$0xff] %v7050_v63 }
 0xb5d   : > { %4782 = vmatpush3.bf16.msra.mxu1 %v2579_v32  ;;  %v6991_v32 = vld [vmem:[%s7436_s9 + $0x60] sm:$0xff]  }
 0xb5e   : > { %4783 = vmatprep.subr.bf16.mxu1 %v7572_v22 }
 0xb61   : > { %4784 = vmatpush3.bf16.msra.mxu1 %v2578_v56  ;;  %v7057_v56 = vld [vmem:[%s7436_s9 + $0xa0] sm:$0xff]  }
 0xb62   : > { %4809 = vmatprep.subr.bf16.mxu1 %v7572_v22  ;;  %7617 = vst [vmem:[#allocation31_spill] sm:$0xff] %v7057_v56 }
 0xb64   : > { %4786 = vmatmul.mubr.msk.bf16.vlgmr.msra.gmra.mxu1 %vm1070_vm2, %v6961_v35 }
 0xb65   : > { %4810 = vmatpush3.bf16.msra.mxu1 %v6968_v21  ;;  %4825 = vmatprep.mubr.msk.bf16.mxu1 %vm5668_vm0, %v7572_v22 }
 0xb66   : > { %4811 = vmatprep.subr.bf16.mxu1 %v7572_v22 }
 0xb69   : > { %4812 = vmatpush3.bf16.msra.mxu1 %v6977_v40 }
 0xb6a   : > { %4813 = vmatprep.subr.bf16.mxu1 %v7572_v22 }
 0xb6d   : > { %4814 = vmatpush3.bf16.msra.mxu1 %v6984_v2 }
 0xb6e   : > { %4815 = vmatprep.subr.bf16.mxu1 %v7572_v22 }
 0xb71   : > { %4816 = vmatpush3.bf16.msra.mxu1 %v6991_v32 }
 0xb72   : > { %4817 = vmatprep.subr.bf16.mxu1 %v7572_v22 }
 0xb75   : > { %4818 = vmatpush3.bf16.msra.mxu1 %v6998_v18 }
 0xb76   : > { %4819 = vmatprep.subr.bf16.mxu1 %v7572_v22 }
 0xb79   : > { %4820 = vmatpush3.bf16.msra.mxu1 %v7005_v52 }
 0xb7a   : > { %4821 = vmatprep.subr.bf16.mxu1 %v7572_v22 }
 0xb7d   : > { %4822 = vmatpush3.bf16.msra.mxu1 %v7012_v47 }
 0xb7e   : > { %4823 = vmatprep.subr.bf16.mxu1 %v7572_v22 }
 0xb81   : > { %4824 = vmatpush3.bf16.msra.mxu1 %v7019_v31 }
 0xc24   : > { %v2615_v0 = vpop.f32.mrf.mxu1 }
 0xc25   : > { %v2616_v6 = vadd.f32 %v2615_v0, %v7575_v38  ;;  %v7064_v0 = vld [vmem:[%s7436_s9 + $0x98] sm:$0xff]  }
 0xc26   : > { %v4787_v5 = vpop.f32.mrf.mxu1  ;;  %7618 = vst [vmem:[#allocation28_spill] sm:$0xff] %v7064_v0 }
 0xc27   : > { %v7071_v5 = vld [vmem:[%s7436_s9 + $0x90] sm:$0xff]  }
 0xc28   : > { %v2618_v53 = vpop.f32.mrf.mxu1  ;;  %7619 = vst [vmem:[#allocation29_spill] sm:$0xff] %v7071_v5 }
 0xc29   : > { %v2619_v48 = vadd.f32 %v2618_v53, %v7576_v45  ;;  %v7078_v53 = vld [vmem:[%s7436_s9 + $0x88] sm:$0xff]  }
 0xc2a   : > { %v4788_v37 = vpop.f32.mrf.mxu1  ;;  %7620 = vst [vmem:[#allocation16_spill] sm:$0xff] %v7078_v53 }
 0xc2b   : > { %v2622_v46 = vpack.c.bf16 %v2619_v48, %v2616_v6  ;;  %v3891_v6 = vld [vmem:[%s5866_s14 + $0xf0] sm:$0xff]  ;;  %v3892_v48 = vld [vmem:[%s5866_s14 + $0xf8] sm:$0xff]  ;;  %v7087_v37 = vld [vmem:[%s7436_s9 + $0x80] sm:$0xff]  }
 0xc2d   : > { %4806 = vmatmul.mubr.bf16.vlgmr.msra.gmra.mxu0 %v2622_v46  ;;  %4826 = vmatmul.mubr.bf16.vlgmr.msra.gmra.mxu1 %v2622_v46 }
 0xc2e   : > { %4830 = vmatpush3.bf16.msra.mxu0 %v7027_v50  ;;  %4845 = vmatprep.mubr.msk.bf16.mxu0 %vm5668_vm0, %v7572_v22 }
 0xc2f   : > { %4831 = vmatprep.subr.bf16.mxu0 %v7572_v22  ;;  %4855 = vmatprep.mubr.msk.bf16.mxu1 %vm1070_vm2, %v7036_v44 }
 0xc32   : > { %4832 = vmatpush3.bf16.msra.mxu0 %v7043_v55  ;;  %v7100_v55 = vld [vmem:[%s5866_s14 + $0xd8] sm:$0xff] }
 0xc33   : > { %4833 = vmatprep.subr.bf16.mxu0 %v7572_v22  ;;  %7622 = vst [vmem:[#allocation33_spill] sm:$0xff] %v7100_v55 }
 0xc36   : > { %4834 = vmatpush3.bf16.msra.mxu0 %v7050_v63  ;;  %v7097_v63 = vld [vmem:[%s5866_s14 + $0xd0] sm:$0xff] }
 0xc37   : > { %4835 = vmatprep.subr.bf16.mxu0 %v7572_v22  ;;  %7621 = vst [vmem:[#allocation32_spill] sm:$0xff] %v7097_v63 }
 0xc3a   : > { %4836 = vmatpush3.bf16.msra.mxu0 %v7057_v56  ;;  %v3890_v56 = vld [vmem:[%s5866_s14 + $0xe8] sm:$0xff] }
 0xc3b   : > { %4837 = vmatprep.subr.bf16.mxu0 %v7572_v22 }
 0xc3e   : > { %4838 = vmatpush3.bf16.msra.mxu0 %v7064_v0  ;;  %v3889_v0 = vld [vmem:[%s5866_s14 + $0xe0] sm:$0xff] }
 0xc3f   : > { %4839 = vmatprep.subr.bf16.mxu0 %v7572_v22 }
 0xc42   : > { %4840 = vmatpush3.bf16.msra.mxu0 %v7071_v5  ;;  %v2969_v5 = vpack.c.bf16 %v3892_v48, %v3891_v6  ;;  %v2967_v6 = vpack.c.bf16 %v7100_v55, %v7097_v63  ;;  %v7106_v48 = vld [vmem:[%s5866_s14 + $0xc0] sm:$0xff] }
 0xc43   : > { %4841 = vmatprep.subr.bf16.mxu0 %v7572_v22  ;;  %7623 = vst [vmem:[#allocation30_spill] sm:$0xff] %v7106_v48 }
 0xc46   : > { %4842 = vmatpush3.bf16.msra.mxu0 %v7078_v53  ;;  %v2968_v53 = vpack.c.bf16 %v3890_v56, %v3889_v0  ;;  %v5486_v0 = vld [vmem:[#allocation5 + $0x38] sm:$0xff]  }
 0xc47   : > { %4843 = vmatprep.subr.bf16.mxu0 %v7572_v22 }
 0xc4a   : > { %4844 = vmatpush3.bf16.msra.mxu0 %v7087_v37 }
 0xc4b   : > { %4887 = vmatprep.subr.bf16.mxu0 %v7572_v22 }
 0xc4d   : > { %4846 = vmatmul.mubr.bf16.vlgmr.msra.gmra.mxu0 %v2622_v46  ;;  %v7109_v46 = vld [vmem:[%s5866_s14 + $0xc8] sm:$0xff] }
 0xc4e   : > { %4888 = vmatpush3.bf16.msra.mxu0 %v2969_v5  ;;  %4895 = vmatprep.mubr.msk.bf16.mxu0 %vm5668_vm0, %v7572_v22  ;;  %7624 = vst [vmem:[#allocation34_spill] sm:$0xff] %v7109_v46  ;;  %v2966_v56 = vpack.c.bf16 %v7109_v46, %v7106_v48  ;;  %v7182_v48 = vld [vmem:[#allocation7] sm:$0xff]  }
 0xc4f   : > { %4889 = vmatprep.subr.bf16.mxu0 %v7572_v22 }
 0xc52   : > { %4890 = vmatpush3.bf16.msra.mxu0 %v2968_v53 }
 0xc53   : > { %4891 = vmatprep.subr.bf16.mxu0 %v7572_v22 }
 0xc56   : > { %4892 = vmatpush3.bf16.msra.mxu0 %v2967_v6 }
 0xc57   : > { %4893 = vmatprep.subr.bf16.mxu0 %v7572_v22 }
 0xc5a   : > { %4894 = vmatpush3.bf16.msra.mxu0 %v2966_v56 }
 0xc5b   : > { %4899 = vmatprep.subr.bf16.mxu0 %v5486_v0 }
 0xc5d   : > { %4896 = vmatmul.mubr.msk.bf16.vlgmr.msra.gmra.mxu0 %vm626_vm1, %v6637_v25 }
 0xc5e   : > { %4900 = vmatpush3.bf16.msra.mxu0 %v5486_v0 }
 0xc5f   : > { %4901 = vmatprep.subr.bf16.mxu0 %v6642_v26 }
 0xc62   : > { %4902 = vmatpush3.bf16.msra.mxu0 %v6642_v26 }
 0xc63   : > { %4903 = vmatprep.subr.bf16.mxu0 %v6646_v27 }
 0xc66   : > { %4904 = vmatpush3.bf16.msra.mxu0 %v6646_v27 }
 0xc67   : > { %4905 = vmatprep.subr.bf16.mxu0 %v6650_v28 }
 0xc6a   : > { %4906 = vmatpush3.bf16.msra.mxu0 %v6650_v28 }
 0xc6b   : > { %4907 = vmatprep.subr.bf16.mxu0 %v6654_v49 }
 0xc6e   : > { %4908 = vmatpush3.bf16.msra.mxu0 %v6654_v49 }
 0xc6f   : > { %4909 = vmatprep.subr.bf16.mxu0 %v6658_v57 }
 0xc72   : > { %4910 = vmatpush3.bf16.msra.mxu0 %v6658_v57 }
 0xc73   : > { %4911 = vmatprep.subr.bf16.mxu0 %v6662_v51 }
 0xc76   : > { %4912 = vmatpush3.bf16.msra.mxu0 %v6662_v51 }
 0xc77   : > { %4913 = vmatprep.subr.bf16.mxu0 %v6666_v54 }
 0xc7a   : > { %4914 = vmatpush3.bf16.msra.mxu0 %v6666_v54 }
 0xc7b   : > { %4939 = vmatprep.subr.bf16.mxu0 %v7572_v22 }
 0xced   : > { %v2657_v25 = vpop.f32.mrf.mxu0  ;;  %v2698_v26 = vpop.f32.mrf.mxu1 }
 0xcef   : > { %v4807_v27 = vpop.f32.mrf.mxu0  ;;  %v4827_v28 = vpop.f32.mrf.mxu1 }
 0xcf0   : > { %v7132_v28 = vld [vmem:[#allocation7 + $0x38] sm:$0xff]  }
 0xcf1   : > { %v2660_v5 = vpop.f32.mrf.mxu0  ;;  %v2701_v49 = vpop.f32.mrf.mxu1 }
 0xcf2   : > { %v2747_v51 = vpack.c.bf16 %v2701_v49, %v2698_v26  ;;  %v2746_v54 = vpack.c.bf16 %v2660_v5, %v2657_v25  ;;  %v7145_v25 = vld [vmem:[%s7434_s7 + $0x10] sm:$0xff]  }
 0xcf3   : > { %v4808_v53 = vpop.f32.mrf.mxu0  ;;  %v4828_v6 = vpop.f32.mrf.mxu1  ;;  %v7151_v26 = vld [vmem:[#allocation7 + $0x30] sm:$0xff]  }
 0xd0d   : > { %v2739_v56 = vpop.f32.mrf.mxu0 }
 0xd0f   : > { %v4847_v57 = vpop.f32.mrf.mxu0 }
 0xd10   : > { %v7155_v57 = vld [vmem:[#allocation7 + $0x28] sm:$0xff]  }
 0xd11   : > { %v2742_v0 = vpop.f32.mrf.mxu0 }
 0xd12   : > { %v2748_v46 = vpack.c.bf16 %v2742_v0, %v2739_v56  ;;  %v7161_v0 = vld [vmem:[%s7434_s7 + $0x18] sm:$0xff]  }
 0xd13   : > { %v4848_v55 = vpop.f32.mrf.mxu0 }
 0xd14   : > { %4849 = vmatprep.subr.bf16.mxu1 %v2748_v46  ;;  %v7138_v55 = vld [vmem:[%s7434_s7 + $0x8] sm:$0xff]  }
 0xd15   : > { %4850 = vmatpush3.bf16.msra.mxu1 %v2748_v46 }
 0xd16   : > { %4851 = vmatprep.subr.bf16.mxu1 %v2747_v51 }
 0xd19   : > { %4852 = vmatpush3.bf16.msra.mxu1 %v2747_v51  ;;  %v7170_v51 = vld [vmem:[#allocation7 + $0x18] sm:$0xff]  }
 0xd1a   : > { %4853 = vmatprep.subr.bf16.mxu1 %v2746_v54 }
 0xd1d   : > { %4854 = vmatpush3.bf16.msra.mxu1 %v2746_v54  ;;  %v3004_v63 = vpop.f32.mrf.mxu0  ;;  %v7174_v54 = vld [vmem:[#allocation7 + $0x10] sm:$0xff]  }
 0xd1e   : > { %v3005_v27 = vadd.f32 %v3004_v63, %v7586_v19  ;;  %4863 = vmatprep.subr.bf16.mxu1 %v7132_v28 }
 0xd1f   : > { %v4897_v53 = vpop.f32.mrf.mxu0 }
 0xd20   : > { %v3894_v6 = vclamps-f32 %v3005_v27, 10.0  ;;  %4856 = vmatmul.mubr.msk.bf16.vlgmr.msra.gmra.mxu1 %vm1070_vm2, %v7138_v55 }
 0xd21   : > { %v3007_v46 = vpop.f32.mrf.mxu0  ;;  %4859 = vmatprep.mubr.msk.bf16.mxu1 %vm1070_vm2, %v7145_v25  ;;  %4864 = vmatpush3.bf16.msra.mxu1 %v7132_v28 }
 0xd22   : > { %v3015_v19 = vmul.f32 1.442695, %v3894_v6  ;;  %v3008_v63 = vadd.f32 %v3007_v46, %v7590_v9  ;;  %4865 = vmatprep.subr.bf16.mxu1 %v7151_v26  ;;  %v7166_v9 = vld [vmem:[#allocation7 + $0x20] sm:$0xff]  }
 0xd23   : > { %v4898_v5 = vpop.f32.mrf.mxu0 }
 0xd24   : > { %v3895_v49 = vclamps-f32 %v3008_v63, 10.0  ;;  %5331 = vpow2.f32 %v3015_v19  ;;  %v7178_v5 = vld [vmem:[#allocation7 + $0x8] sm:$0xff]  }
 0xd25   : > { %4866 = vmatpush3.bf16.msra.mxu1 %v7151_v26 }
 0xd26   : > { %v3017_v56 = vmul.f32 1.442695, %v3895_v49  ;;  %4867 = vmatprep.subr.bf16.mxu1 %v7155_v57 }
 0xd28   : > { %5333 = vpow2.f32 %v3017_v56  ;;  %4860 = vmatmul.mubr.msk.bf16.gmra.mxu1 %vm1070_vm2, %v7161_v0 }
 0xd29   : > { %4868 = vmatpush3.bf16.msra.mxu1 %v7155_v57 }
 0xd2a   : > { %4869 = vmatprep.subr.bf16.mxu1 %v7166_v9 }
 0xd2d   : > { %4870 = vmatpush3.bf16.msra.mxu1 %v7166_v9 }
 0xd2e   : > { %4871 = vmatprep.subr.bf16.mxu1 %v7170_v51 }
 0xd31   : > { %4872 = vmatpush3.bf16.msra.mxu1 %v7170_v51  ;;  %v5332_v53 = vpop.eup %5331 }
 0xd32   : > { %4873 = vmatprep.subr.bf16.mxu1 %v7174_v54  ;;  %v3019_v46 = vmul.f32 %v5332_v53, %v3005_v27 }
 0xd35   : > { %v5334_v6 = vpop.eup %5333  ;;  %4874 = vmatpush3.bf16.msra.mxu1 %v7174_v54 }
 0xd36   : > { %v3020_v19 = vmul.f32 %v5334_v6, %v3008_v63  ;;  %4875 = vmatprep.subr.bf16.mxu1 %v7178_v5  ;;  %v3022_v56 = vpack.c.bf16 %v5334_v6, %v5332_v53 }
 0xd38   : > { %v3021_v49 = vpack.c.bf16 %v3020_v19, %v3019_v46 }
 0xd39   : > { %4876 = vmatpush3.bf16.msra.mxu1 %v7178_v5 }
 0xd3a   : > { %4915 = vmatprep.mubr.bf16.mxu0 %v3021_v49  ;;  %4877 = vmatprep.subr.bf16.mxu1 %v7182_v48 }
 0xd3b   : > { %4916 = vmatmul.mubr.bf16.vlgmr.msra.gmra.mxu0 %v3022_v56 }
 0xd3c   : > { %4940 = vmatpush3.bf16.msra.mxu0 %v6697_v1  ;;  %4955 = vmatprep.mubr.msk.bf16.mxu0 %vm5668_vm0, %v7572_v22 }
 0xd3d   : > { %4941 = vmatprep.subr.bf16.mxu0 %v7572_v22  ;;  %4878 = vmatpush3.bf16.msra.mxu1 %v7182_v48 }
 0xd3e   : > { %4919 = vmatprep.subr.bf16.mxu1 %v7572_v22 }
 0xd40   : > { %4942 = vmatpush3.bf16.msra.mxu0 %v6708_v20 }
 0xd41   : > { %4943 = vmatprep.subr.bf16.mxu0 %v7572_v22 }
 0xd44   : > { %4944 = vmatpush3.bf16.msra.mxu0 %v6715_v3 }
 0xd45   : > { %4945 = vmatprep.subr.bf16.mxu0 %v7572_v22 }
 0xd48   : > { %4946 = vmatpush3.bf16.msra.mxu0 %v6722_v4 }
 0xd49   : > { %4947 = vmatprep.subr.bf16.mxu0 %v7572_v22 }
 0xd4c   : > { %4948 = vmatpush3.bf16.msra.mxu0 %v6729_v23 }
 0xd4d   : > { %4949 = vmatprep.subr.bf16.mxu0 %v7572_v22 }
 0xd50   : > { %4950 = vmatpush3.bf16.msra.mxu0 %v6736_v24 }
 0xd51   : > { %4951 = vmatprep.subr.bf16.mxu0 %v7572_v22 }
 0xd54   : > { %4952 = vmatpush3.bf16.msra.mxu0 %v6743_v58 }
 0xd55   : > { %4953 = vmatprep.subr.bf16.mxu0 %v7572_v22 }
 0xd58   : > { %4954 = vmatpush3.bf16.msra.mxu0 %v6750_v60 }
 0xd59   : > { %4979 = vmatprep.subr.bf16.mxu0 %v7572_v22 }
 0xde0   : > { %v4857_v1 = vpop.f32.mrf.mxu1 }
 0xde1   : > { %v2792_v20 = vadd.f32 %v4857_v1, %v7599_v61 }
 0xde2   : > { %v2783_v3 = vpop.f32.mrf.mxu1 }
 0xde3   : > { %v2816_v4 = vsub.f32 0.0, %v2792_v20  ;;  %v2784_v23 = vadd.f32 %v2783_v3, %v7600_v8 }
 0xde4   : > { %v4858_v27 = vpop.f32.mrf.mxu1 }
 0xde5   : > { %v2826_v63 = vmul.f32 1.442695, %v2816_v4  ;;  %v2814_v24 = vsub.f32 0.0, %v2784_v23  ;;  %v2795_v53 = vadd.f32 %v4858_v27, %v7601_v14 }
 0xde6   : > { %v2786_v6 = vpop.f32.mrf.mxu1 }
 0xde7   : > { %5335 = vpow2.f32 %v2826_v63  ;;  %v2822_v58 = vmul.f32 1.442695, %v2814_v24  ;;  %v2817_v46 = vsub.f32 0.0, %v2795_v53  ;;  %v2787_v60 = vadd.f32 %v2786_v6, %v7602_v36 }
 0xde8   : > { %v4861_v19 = vpop.f32.mrf.mxu1 }
 0xde9   : > { %5337 = vpow2.f32 %v2822_v58  ;;  %v2828_v49 = vmul.f32 1.442695, %v2817_v46  ;;  %v2815_v56 = vsub.f32 0.0, %v2787_v60  ;;  %v2808_v1 = vadd.f32 %v4861_v19, %v7603_v33 }
 0xdea   : > { %v2799_v20 = vpop.f32.mrf.mxu1 }
 0xdeb   : > { %5339 = vpow2.f32 %v2828_v49  ;;  %v2824_v3 = vmul.f32 1.442695, %v2815_v56  ;;  %v2820_v8 = vsub.f32 0.0, %v2808_v1  ;;  %v2800_v4 = vadd.f32 %v2799_v20, %v7604_v42 }
 0xdec   : > { %v4862_v23 = vpop.f32.mrf.mxu1 }
 0xded   : > { %5341 = vpow2.f32 %v2824_v3  ;;  %v2818_v27 = vsub.f32 0.0, %v2800_v4  ;;  %v2811_v63 = vadd.f32 %v4862_v23, %v6469_v59  ;;  %v2834_v24 = vmul.f32 1.442695, %v2820_v8 }
 0xdee   : > { %v2802_v53 = vpop.f32.mrf.mxu1 }
 0xdef   : > { %v2830_v6 = vmul.f32 1.442695, %v2818_v27  ;;  %v2821_v36 = vsub.f32 0.0, %v2811_v63  ;;  %v2803_v58 = vadd.f32 %v2802_v53, %v6462_v30 }
 0xdf1   : > { %5343 = vpow2.f32 %v2830_v6  ;;  %v2836_v46 = vmul.f32 1.442695, %v2821_v36  ;;  %v2819_v60 = vsub.f32 0.0, %v2803_v58 }
 0xdf2   : > { %5345 = vpow2.f32 %v2834_v24 }
 0xdf3   : > { %5347 = vpow2.f32 %v2836_v46  ;;  %v2832_v19 = vmul.f32 1.442695, %v2819_v60 }
 0xdf4   : > { %v5336_v49 = vpop.eup %5335 }
 0xdf5   : > { %5349 = vpow2.f32 %v2832_v19  ;;  %v2840_v1 = vadd.f32 1.0, %v5336_v49 }
 0xdf6   : > { %v5338_v56 = vpop.eup %5337 }
 0xdf7   : > { %v2838_v20 = vadd.f32 1.0, %v5338_v56  ;;  %5351 = vrcp.f32 %v2840_v1 }
 0xdf8   : > { %v5340_v3 = vpop.eup %5339 }
 0xdf9   : > { %v2841_v4 = vadd.f32 1.0, %v5340_v3  ;;  %5353 = vrcp.f32 %v2838_v20 }
 0xdfa   : > { %v5342_v23 = vpop.eup %5341 }
 0xdfb   : > { %v2839_v8 = vadd.f32 1.0, %v5342_v23  ;;  %v4917_v27 = vpop.f32.mrf.mxu0  ;;  %5355 = vrcp.f32 %v2841_v4 }
 0xdfd   : > { %5357 = vrcp.f32 %v2839_v8  ;;  %v3057_v63 = vpop.f32.mrf.mxu0 }
 0xdfe   : > { %v5344_v36 = vpop.eup %5343  ;;  %5359 = vrcp.f32 %v4917_v27 }
 0xdff   : > { %v5346_v24 = vpop.eup %5345  ;;  %v2842_v53 = vadd.f32 1.0, %v5344_v36  ;;  %v4918_v6 = vpop.f32.mrf.mxu0 }
 0xe00   : > { %v5348_v58 = vpop.eup %5347  ;;  %5361 = vrcp.f32 %v4918_v6  ;;  %v2844_v19 = vadd.f32 1.0, %v5346_v24 }
 0xe01   : > { %v2845_v46 = vadd.f32 1.0, %v5348_v58  ;;  %5363 = vrcp.f32 %v2842_v53  ;;  %v3060_v36 = vpop.f32.mrf.mxu0 }
 0xe02   : > { %v5350_v60 = vpop.eup %5349 }
 0xe03   : > { %v2843_v49 = vadd.f32 1.0, %v5350_v60  ;;  %5365 = vrcp.f32 %v2845_v46 }
 0xe04   : > { %v5352_v56 = vpop.eup %5351 }
 0xe05   : > { %5367 = vrcp.f32 %v2843_v49 }
 0xe06   : > { %5369 = vrcp.f32 %v2844_v19  ;;  %v5354_v1 = vpop.eup %5353 }
 0xe08   : > { %v5356_v20 = vpop.eup %5355 }
 0xe09   : > { %v2855_v8 = vpack.c.bf16 %v5356_v20, %v5352_v56  ;;  %v7635_v56 = vld [vmem:[#allocation46_spill] sm:$0xff] }
 0xe0a   : > { %v5358_v3 = vpop.eup %5357 }
 0xe0b   : > { %v5360_v4 = vpop.eup %5359  ;;  %v2854_v23 = vpack.c.bf16 %v5358_v3, %v5354_v1  ;;  %v5499_v3 = vld [vmem:[%s5866_s14 + $0x90] sm:$0xff] }
 0xe0c   : > { %v3074_v30 = vmul.f32 %v5360_v4, %v3057_v63 }
 0xe0d   : > { %v5362_v27 = vpop.eup %5361  ;;  %4879 = vmatprep.mubr.bf16.mxu1 %v2854_v23 }
 0xe0e   : > { %v3075_v6 = vmul.f32 %v5362_v27, %v3060_v36  ;;  %4880 = vmatmul.mubr.bf16.vlgmr.msra.gmra.mxu1 %v2855_v8  ;;  %v5364_v24 = vpop.eup %5363 }
 0xe0f   : > { %4920 = vmatpush3.bf16.msra.mxu1 %v6765_v29  ;;  %v7626_v29 = vld [vmem:[#allocation18_spill] sm:$0xff] }
 0xe10   : > { %v3076_v53 = vpack.c.bf16 %v3075_v6, %v3074_v30  ;;  %4921 = vmatprep.subr.bf16.mxu1 %v7572_v22  ;;  %v5366_v58 = vpop.eup %5365  ;;  %v7625_v30 = vld [vmem:[#allocation17_spill] sm:$0xff] }
 0xe12   : > { %v5368_v46 = vpop.eup %5367  ;;  %4956 = vmatmul.mubr.bf16.vlgmr.msra.gmra.mxu0 %v3076_v53 }
 0xe13   : > { %v5370_v60 = vpop.eup %5369  ;;  %4922 = vmatpush3.bf16.msra.mxu1 %v6772_v62  ;;  %v2856_v19 = vpack.c.bf16 %v5368_v46, %v5364_v24  ;;  %4985 = vmatprep.mubr.msk.bf16.mxu0 %vm5668_vm0, %v7572_v22  ;;  %v7627_v62 = vld [vmem:[#allocation19_spill] sm:$0xff] }
 0xe14   : > { %4923 = vmatprep.subr.bf16.mxu1 %v7572_v22  ;;  %v2857_v63 = vpack.c.bf16 %v5366_v58, %v5370_v60 }
 0xe15   : > { %4883 = vmatprep.mubr.bf16.mxu1 %v2856_v19 }
 0xe16   : > { %4884 = vmatmul.mubr.bf16.gmra.mxu1 %v2857_v63  ;;  %v5501_v63 = vld [vmem:[%s5866_s14 + $0x88] sm:$0xff] }
 0xe17   : > { %4924 = vmatpush3.bf16.msra.mxu1 %v6781_v7  ;;  %4935 = vmatprep.mubr.msk.bf16.mxu1 %vm5668_vm0, %v7572_v22  ;;  %v7628_v7 = vld [vmem:[#allocation27_spill] sm:$0xff] }
 0xe18   : > { %4925 = vmatprep.subr.bf16.mxu1 %v7572_v22 }
 0xe1b   : > { %4926 = vmatpush3.bf16.msra.mxu1 %v6790_v10  ;;  %v7629_v10 = vld [vmem:[#allocation20_spill] sm:$0xff] }
 0xe1c   : > { %4927 = vmatprep.subr.bf16.mxu1 %v7572_v22 }
 0xe1f   : > { %4928 = vmatpush3.bf16.msra.mxu1 %v6797_v11  ;;  %v7630_v11 = vld [vmem:[#allocation21_spill] sm:$0xff] }
 0xe20   : > { %4929 = vmatprep.subr.bf16.mxu1 %v7572_v22 }
 0xe23   : > { %4930 = vmatpush3.bf16.msra.mxu1 %v6804_v12  ;;  %v7631_v12 = vld [vmem:[#allocation22_spill] sm:$0xff] }
 0xe24   : > { %4931 = vmatprep.subr.bf16.mxu1 %v7572_v22 }
 0xe27   : > { %4932 = vmatpush3.bf16.msra.mxu1 %v6811_v13  ;;  %v7632_v13 = vld [vmem:[#allocation23_spill] sm:$0xff] }
 0xe28   : > { %4933 = vmatprep.subr.bf16.mxu1 %v7572_v22 }
 0xe2b   : > { %4934 = vmatpush3.bf16.msra.mxu1 %v6818_v15  ;;  %v7633_v15 = vld [vmem:[#allocation24_spill] sm:$0xff] }
 0xe2c   : > { %4959 = vmatprep.subr.bf16.mxu1 %v7572_v22 }
 0xe2e   : > { %4936 = vmatmul.mubr.bf16.vlgmr.msra.gmra.mxu1 %v3076_v53 }
 0xe2f   : > { %4960 = vmatpush3.bf16.msra.mxu1 %v6825_v16  ;;  %4975 = vmatprep.mubr.msk.bf16.mxu1 %vm5668_vm0, %v7572_v22  ;;  %v7634_v16 = vld [vmem:[#allocation25_spill] sm:$0xff] }
 0xe30   : > { %4961 = vmatprep.subr.bf16.mxu1 %v7572_v22 }
 0xe33   : > { %4962 = vmatpush3.bf16.msra.mxu1 %v6834_v17  ;;  %v5498_v17 = vld [vmem:[%s5866_s14 + $0x80] sm:$0xff] }
 0xe34   : > { %4963 = vmatprep.subr.bf16.mxu1 %v7572_v22 }
 0xe37   : > { %4964 = vmatpush3.bf16.msra.mxu1 %v6841_v34  ;;  %v2339_v34 = vsub.f32 0.0, %v5498_v17 }
 0xe38   : > { %4965 = vmatprep.subr.bf16.mxu1 %v7572_v22 }
 0xe3b   : > { %4966 = vmatpush3.bf16.msra.mxu1 %v6848_v39  ;;  %v2340_v39 = vmul.f32 1.442695, %v2339_v34 }
 0xe3c   : > { %4967 = vmatprep.subr.bf16.mxu1 %v7572_v22 }
 0xe3d   : > { %5371 = vpow2.f32 %v2340_v39 }
 0xe3f   : > { %4968 = vmatpush3.bf16.msra.mxu1 %v6855_v41 }
 0xe40   : > { %4969 = vmatprep.subr.bf16.mxu1 %v7572_v22 }
 0xe43   : > { %4970 = vmatpush3.bf16.msra.mxu1 %v6862_v43 }
 0xe44   : > { %4971 = vmatprep.subr.bf16.mxu1 %v7572_v22 }
 0xe47   : > { %4972 = vmatpush3.bf16.msra.mxu1 %v7625_v30 }
 0xe48   : > { %4973 = vmatprep.subr.bf16.mxu1 %v7572_v22 }
 0xe4a   : > { %v5372_v41 = vpop.eup %5371 }
 0xe4b   : > { %4974 = vmatpush3.bf16.msra.mxu1 %v7626_v29  ;;  %v2342_v43 = vadd.f32 1.0, %v5372_v41 }
 0xe4c   : > { %4989 = vmatprep.subr.bf16.mxu1 %v7572_v22 }
 0xe4d   : > { %5373 = vrcp.f32 %v2342_v43  ;;  %v5504_v43 = vld [vmem:[%s5866_s14 + $0xb8] sm:$0xff] }
 0xe4e   : > { %4976 = vmatmul.mubr.bf16.vlgmr.msra.gmra.mxu1 %v3076_v53  ;;  %v5500_v53 = vld [vmem:[%s5866_s14 + $0x98] sm:$0xff] }
 0xe4f   : > { %4990 = vmatpush3.bf16.msra.mxu1 %v7627_v62  ;;  %5005 = vmatprep.mubr.msk.bf16.mxu1 %vm5668_vm0, %v7572_v22 }
 0xe50   : > { %4991 = vmatprep.subr.bf16.mxu1 %v7572_v22 }
 0xe53   : > { %4992 = vmatpush3.bf16.msra.mxu1 %v7628_v7 }
 0xe54   : > { %4993 = vmatprep.subr.bf16.mxu1 %v7572_v22 }
 0xe57   : > { %4994 = vmatpush3.bf16.msra.mxu1 %v7629_v10  ;;  %v5502_v10 = vld [vmem:[%s5866_s14 + $0xb0] sm:$0xff] }
 0xe58   : > { %4995 = vmatprep.subr.bf16.mxu1 %v7572_v22 }
 0xe5a   : > { %v5374_v49 = vpop.eup %5373 }
 0xe5b   : > { %4996 = vmatpush3.bf16.msra.mxu1 %v7630_v11  ;;  %v2934_v1 = vrot.slane %v5374_v49, %v7635_v56 }
 0xe5c   : > { %4997 = vmatprep.subr.bf16.mxu1 %v7572_v22 }
 0xe5f   : > { %4998 = vmatpush3.bf16.msra.mxu1 %v7631_v12 }
 0xe60   : > { %4999 = vmatprep.subr.bf16.mxu1 %v7572_v22 }
 0xe63   : > { %5000 = vmatpush3.bf16.msra.mxu1 %v7632_v13 }
 0xe64   : > { %5001 = vmatprep.subr.bf16.mxu1 %v7572_v22 }
 0xe67   : > { %5002 = vmatpush3.bf16.msra.mxu1 %v7633_v15 }
 0xe68   : > { %5003 = vmatprep.subr.bf16.mxu1 %v7572_v22 }
 0xe6b   : > { %5004 = vmatpush3.bf16.msra.mxu1 %v7634_v16 }
 0xe6c   : > { %5029 = vmatprep.subr.bf16.mxu1 %v7572_v22 }
 0xece   : > { %v4881_v20 = vpop.f32.mrf.mxu1 }
 0xecf   : > { %v2925_v4 = vmul.f32 %v5499_v3, %v4881_v20 }
 0xed0   : > { %v2892_v23 = vpop.f32.mrf.mxu1 }
 0xed1   : > { %v2937_v8 = vmul.f32 %v2934_v1, %v2925_v4  ;;  %v2923_v27 = vmul.f32 %v5498_v17, %v2892_v23  ;;  %v5503_v17 = vld [vmem:[%s5866_s14 + $0xa0] sm:$0xff]  ;;  %v5505_v4 = vld [vmem:[%s5866_s14 + $0xa8] sm:$0xff] }
 0xed2   : > { %v4882_v36 = vpop.f32.mrf.mxu1  ;;  %v3152_v6 = vpop.f32.mrf.mxu0 }
 0xed3   : > { %3879 = vst [vmem:[%s6522_s3 + $0x90] sm:$0xff] %v2937_v8  ;;  %v2935_v24 = vmul.f32 %v2934_v1, %v2923_v27  ;;  %v2926_v58 = vmul.f32 %v5500_v53, %v4882_v36 }
 0xed4   : > { %v2895_v46 = vpop.f32.mrf.mxu1  ;;  %v4957_v60 = vpop.f32.mrf.mxu0 }
 0xed5   : > { %3877 = vst [vmem:[%s6522_s3 + $0x80] sm:$0xff] %v2935_v24  ;;  %v2938_v19 = vmul.f32 %v2934_v1, %v2926_v58  ;;  %v2924_v30 = vmul.f32 %v5501_v63, %v2895_v46 }
 0xed6   : > { %v4885_v29 = vpop.f32.mrf.mxu1  ;;  %v3155_v62 = vpop.f32.mrf.mxu0 }
 0xed7   : > { %3880 = vst [vmem:[%s6522_s3 + $0x98] sm:$0xff] %v2938_v19  ;;  %v2936_v7 = vmul.f32 %v2934_v1, %v2924_v30  ;;  %v2929_v11 = vmul.f32 %v5502_v10, %v4885_v29  ;;  %v3201_v12 = vpack.c.bf16 %v3155_v62, %v3152_v6 }
 0xed8   : > { %v2908_v13 = vpop.f32.mrf.mxu1  ;;  %v4958_v15 = vpop.f32.mrf.mxu0 }
 0xed9   : > { %3878 = vst [vmem:[%s6522_s3 + $0x88] sm:$0xff] %v2936_v7  ;;  %v2941_v16 = vmul.f32 %v2934_v1, %v2929_v11  ;;  %v2927_v34 = vmul.f32 %v5503_v17, %v2908_v13 }
 0xeda   : > { %v4886_v39 = vpop.f32.mrf.mxu1 }
 0xedb   : > { %3883 = vst [vmem:[%s6522_s3 + $0xb0] sm:$0xff] %v2941_v16  ;;  %v2939_v41 = vmul.f32 %v2934_v1, %v2927_v34  ;;  %v2930_v49 = vmul.f32 %v5504_v43, %v4886_v39 }
 0xedc   : > { %v2911_v20 = vpop.f32.mrf.mxu1 }
 0xedd   : > { %3881 = vst [vmem:[%s6522_s3 + $0xa0] sm:$0xff] %v2939_v41  ;;  %v2942_v3 = vmul.f32 %v2934_v1, %v2930_v49  ;;  %v2928_v23 = vmul.f32 %v5505_v4, %v2911_v20 }
 0xedf   : > { %3884 = vst [vmem:[%s6522_s3 + $0xb8] sm:$0xff] %v2942_v3  ;;  %v2940_v8 = vmul.f32 %v2934_v1, %v2928_v23 }
 0xee1   : > { %3882 = vst [vmem:[%s6522_s3 + $0xa8] sm:$0xff] %v2940_v8 }
 0xeee   : > { %v3111_v27 = vpop.f32.mrf.mxu1 }
 0xef0   : > { %v4937_v36 = vpop.f32.mrf.mxu1 }
 0xef2   : > { %v3114_v6 = vpop.f32.mrf.mxu1 }
 0xef3   : > { %v3200_v63 = vpack.c.bf16 %v3114_v6, %v3111_v27 }
 0xef4   : > { %v4938_v24 = vpop.f32.mrf.mxu1 }
 0xf0e   : > { %v3193_v53 = vpop.f32.mrf.mxu1 }
 0xf10   : > { %v4977_v58 = vpop.f32.mrf.mxu1 }
 0xf12   : > { %v3196_v46 = vpop.f32.mrf.mxu1 }
 0xf13   : > { %v3202_v60 = vpack.c.bf16 %v3196_v46, %v3193_v53 }
 0xf14   : > { %v4978_v19 = vpop.f32.mrf.mxu1 }
 0xf15   : > { %4980 = vmatpush3.bf16.msra.mxu0 %v3202_v60  ;;  %v7644_v19 = vld [vmem:[#allocation44_spill] sm:$0xff] }
 0xf16   : > { %4981 = vmatprep.subr.bf16.mxu0 %v7572_v22 }
 0xf19   : > { %4982 = vmatpush3.bf16.msra.mxu0 %v3201_v12 }
 0xf1a   : > { %4983 = vmatprep.subr.bf16.mxu0 %v7572_v22 }
 0xf1d   : > { %4984 = vmatpush3.bf16.msra.mxu0 %v3200_v63 }
 0xf1e   : > { %5009 = vmatprep.subr.bf16.mxu0 %v7572_v22 }
 0xf20   : > { %4986 = vmatmul.mubr.msk.bf16.vlgmr.msra.gmra.mxu0 %vm1070_vm2, %v6961_v35 }
 0xf21   : > { %5010 = vmatpush3.bf16.msra.mxu0 %v6968_v21  ;;  %5025 = vmatprep.mubr.msk.bf16.mxu0 %vm5668_vm0, %v7572_v22 }
 0xf22   : > { %5011 = vmatprep.subr.bf16.mxu0 %v7572_v22 }
 0xf25   : > { %5012 = vmatpush3.bf16.msra.mxu0 %v6977_v40 }
 0xf26   : > { %5013 = vmatprep.subr.bf16.mxu0 %v7572_v22 }
 0xf29   : > { %5014 = vmatpush3.bf16.msra.mxu0 %v6984_v2 }
 0xf2a   : > { %5015 = vmatprep.subr.bf16.mxu0 %v7572_v22 }
 0xf2d   : > { %5016 = vmatpush3.bf16.msra.mxu0 %v6991_v32 }
 0xf2e   : > { %5017 = vmatprep.subr.bf16.mxu0 %v7572_v22 }
 0xf31   : > { %5018 = vmatpush3.bf16.msra.mxu0 %v6998_v18 }
 0xf32   : > { %5019 = vmatprep.subr.bf16.mxu0 %v7572_v22 }
 0xf35   : > { %5020 = vmatpush3.bf16.msra.mxu0 %v7005_v52  ;;  %v7636_v52 = vld [vmem:[#allocation26_spill] sm:$0xff] }
 0xf36   : > { %5021 = vmatprep.subr.bf16.mxu0 %v7572_v22 }
 0xf39   : > { %5022 = vmatpush3.bf16.msra.mxu0 %v7012_v47  ;;  %v7639_v47 = vld [vmem:[#allocation28_spill] sm:$0xff] }
 0xf3a   : > { %5023 = vmatprep.subr.bf16.mxu0 %v7572_v22 }
 0xf3d   : > { %5024 = vmatpush3.bf16.msra.mxu0 %v7019_v31  ;;  %v7640_v31 = vld [vmem:[#allocation29_spill] sm:$0xff] }
 0xfe0   : > { %v3237_v35 = vpop.f32.mrf.mxu0 }
 0xfe1   : > { %v3238_v2 = vadd.f32 %v3237_v35, %v7575_v38  ;;  %v7637_v38 = vld [vmem:[#allocation15_spill] sm:$0xff] }
 0xfe2   : > { %v4987_v21 = vpop.f32.mrf.mxu0 }
 0xfe4   : > { %v3240_v40 = vpop.f32.mrf.mxu0 }
 0xfe5   : > { %v3241_v32 = vadd.f32 %v3240_v40, %v7576_v45  ;;  %v7638_v45 = vld [vmem:[#allocation31_spill] sm:$0xff] }
 0xfe6   : > { %v4988_v18 = vpop.f32.mrf.mxu0 }
 0xfe7   : > { %v3244_v1 = vpack.c.bf16 %v3241_v32, %v3238_v2 }
 0xfe9   : > { %5006 = vmatmul.mubr.bf16.vlgmr.msra.gmra.mxu1 %v3244_v1  ;;  %5026 = vmatmul.mubr.bf16.vlgmr.msra.gmra.mxu0 %v3244_v1 }
 0xfea   : > { %5030 = vmatpush3.bf16.msra.mxu1 %v7027_v50  ;;  %5045 = vmatprep.mubr.msk.bf16.mxu1 %vm5668_vm0, %v7572_v22  ;;  %v7641_v50 = vld [vmem:[#allocation16_spill] sm:$0xff] }
 0xfeb   : > { %5031 = vmatprep.subr.bf16.mxu1 %v7572_v22  ;;  %5055 = vmatprep.mubr.msk.bf16.mxu0 %vm1070_vm2, %v7036_v44 }
 0xfee   : > { %5032 = vmatpush3.bf16.msra.mxu1 %v7636_v52 }
 0xfef   : > { %5033 = vmatprep.subr.bf16.mxu1 %v7572_v22 }
 0xff2   : > { %5034 = vmatpush3.bf16.msra.mxu1 %v7637_v38 }
 0xff3   : > { %5035 = vmatprep.subr.bf16.mxu1 %v7572_v22 }
 0xff6   : > { %5036 = vmatpush3.bf16.msra.mxu1 %v7638_v45 }
 0xff7   : > { %5037 = vmatprep.subr.bf16.mxu1 %v7572_v22 }
 0xffa   : > { %5038 = vmatpush3.bf16.msra.mxu1 %v7639_v47 }
 0xffb   : > { %5039 = vmatprep.subr.bf16.mxu1 %v7572_v22 }
 0xffe   : > { %5040 = vmatpush3.bf16.msra.mxu1 %v7640_v31 }
 0xfff   : > { %5041 = vmatprep.subr.bf16.mxu1 %v7572_v22 }
0x1002   : > { %5042 = vmatpush3.bf16.msra.mxu1 %v7641_v50 }
0x1003   : > { %5043 = vmatprep.subr.bf16.mxu1 %v7572_v22 }
0x1006   : > { %5044 = vmatpush3.bf16.msra.mxu1 %v7087_v37 }
0x1009   : > { %5046 = vmatmul.mubr.bf16.vlgmr.msra.gmra.mxu1 %v3244_v1 }
0x10a9   : > { %v3279_v44 = vpop.f32.mrf.mxu1  ;;  %v3320_v30 = vpop.f32.mrf.mxu0 }
0x10ab   : > { %v5007_v29 = vpop.f32.mrf.mxu1  ;;  %v5027_v62 = vpop.f32.mrf.mxu0 }
0x10ad   : > { %v3282_v7 = vpop.f32.mrf.mxu1  ;;  %v3323_v10 = vpop.f32.mrf.mxu0 }
0x10ae   : > { %v3369_v39 = vpack.c.bf16 %v3323_v10, %v3320_v30  ;;  %v3368_v22 = vpack.c.bf16 %v3282_v7, %v3279_v44 }
0x10af   : > { %v5008_v11 = vpop.f32.mrf.mxu1  ;;  %v5028_v12 = vpop.f32.mrf.mxu0 }
0x10c9   : > { %v3361_v13 = vpop.f32.mrf.mxu1 }
0x10cb   : > { %v5047_v15 = vpop.f32.mrf.mxu1 }
0x10cd   : > { %v3364_v16 = vpop.f32.mrf.mxu1 }
0x10ce   : > { %v3370_v17 = vpack.c.bf16 %v3364_v16, %v3361_v13 }
0x10cf   : > { %v5048_v34 = vpop.f32.mrf.mxu1 }
0x10d0   : > { %5049 = vmatprep.subr.bf16.mxu0 %v3370_v17 }
0x10d1   : > { %5050 = vmatpush3.bf16.msra.mxu0 %v3370_v17 }
0x10d2   : > { %5051 = vmatprep.subr.bf16.mxu0 %v3369_v39 }
0x10d5   : > { %5052 = vmatpush3.bf16.msra.mxu0 %v3369_v39 }
0x10d6   : > { %5053 = vmatprep.subr.bf16.mxu0 %v3368_v22 }
0x10d9   : > { %5054 = vmatpush3.bf16.msra.mxu0 %v3368_v22 }
0x10da   : > { %5063 = vmatprep.subr.bf16.mxu0 %v7132_v28 }
0x10dc   : > { %5056 = vmatmul.mubr.msk.bf16.vlgmr.msra.gmra.mxu0 %vm1070_vm2, %v7138_v55 }
0x10dd   : > { %5059 = vmatprep.mubr.msk.bf16.mxu0 %vm1070_vm2, %v7145_v25  ;;  %5064 = vmatpush3.bf16.msra.mxu0 %v7132_v28 }
0x10de   : > { %5065 = vmatprep.subr.bf16.mxu0 %v7151_v26 }
0x10e1   : > { %5066 = vmatpush3.bf16.msra.mxu0 %v7151_v26  ;;  %v7642_v26 = vld [vmem:[#allocation39_spill] sm:$0xff] }
0x10e2   : > { %5067 = vmatprep.subr.bf16.mxu0 %v7155_v57 }
0x10e4   : > { %5060 = vmatmul.mubr.msk.bf16.gmra.mxu0 %vm1070_vm2, %v7161_v0 }
0x10e5   : > { %5068 = vmatpush3.bf16.msra.mxu0 %v7155_v57 }
0x10e6   : > { %5069 = vmatprep.subr.bf16.mxu0 %v7166_v9 }
0x10e9   : > { %5070 = vmatpush3.bf16.msra.mxu0 %v7166_v9 }
0x10ea   : > { %5071 = vmatprep.subr.bf16.mxu0 %v7170_v51 }
0x10ed   : > { %5072 = vmatpush3.bf16.msra.mxu0 %v7170_v51 }
0x10ee   : > { %5073 = vmatprep.subr.bf16.mxu0 %v7174_v54 }
0x10f1   : > { %5074 = vmatpush3.bf16.msra.mxu0 %v7174_v54 }
0x10f2   : > { %5075 = vmatprep.subr.bf16.mxu0 %v7178_v5 }
0x10f5   : > { %5076 = vmatpush3.bf16.msra.mxu0 %v7178_v5  ;;  %v7643_v5 = vld [vmem:[#allocation40_spill] sm:$0xff] }
0x10f6   : > { %5077 = vmatprep.subr.bf16.mxu0 %v7182_v48 }
0x10f9   : > { %5078 = vmatpush3.bf16.msra.mxu0 %v7182_v48 }
0x119c   : > { %v5057_v37 = vpop.f32.mrf.mxu0 }
0x119d   : > { %v3414_v28 = vadd.f32 %v5057_v37, %v7599_v61  ;;  %v7645_v37 = vld [vmem:[#allocation30_spill] sm:$0xff] }
0x119e   : > { %v3405_v55 = vpop.f32.mrf.mxu0 }
0x119f   : > { %v3438_v25 = vsub.f32 0.0, %v3414_v28  ;;  %v3406_v57 = vadd.f32 %v3405_v55, %v7642_v26  ;;  %v2961_v28 = vsub.f32 0.0, %v7645_v37 }
0x11a0   : > { %v5058_v0 = vpop.f32.mrf.mxu0 }
0x11a1   : > { %v3436_v9 = vsub.f32 0.0, %v3406_v57  ;;  %v3417_v51 = vadd.f32 %v5058_v0, %v7601_v14  ;;  %v3448_v54 = vmul.f32 1.442695, %v3438_v25  ;;  %v2962_v55 = vmul.f32 1.442695, %v2961_v28 }
0x11a2   : > { %v3408_v41 = vpop.f32.mrf.mxu0 }
0x11a3   : > { %v3444_v43 = vmul.f32 1.442695, %v3436_v9  ;;  %v3439_v49 = vsub.f32 0.0, %v3417_v51  ;;  %v3409_v20 = vadd.f32 %v3408_v41, %v7643_v5  ;;  %v7646_v51 = vld [vmem:[#allocation32_spill] sm:$0xff] }
0x11a4   : > { %v5061_v3 = vpop.f32.mrf.mxu0 }
0x11a5   : > { %5375 = vpow2.f32 %v3444_v43  ;;  %v3450_v48 = vmul.f32 1.442695, %v3439_v49  ;;  %v3437_v4 = vsub.f32 0.0, %v3409_v20  ;;  %v3430_v61 = vadd.f32 %v5061_v3, %v7603_v33  ;;  %v7647_v3 = vld [vmem:[#allocation33_spill] sm:$0xff] }
0x11a6   : > { %5377 = vpow2.f32 %v3448_v54  ;;  %v3421_v23 = vpop.f32.mrf.mxu0 }
0x11a7   : > { %5379 = vpow2.f32 %v3450_v48  ;;  %v3446_v8 = vmul.f32 1.442695, %v3437_v4  ;;  %v3442_v27 = vsub.f32 0.0, %v3430_v61  ;;  %v3422_v36 = vadd.f32 %v3421_v23, %v7604_v42  ;;  %v7648_v61 = vld [vmem:[#allocation34_spill] sm:$0xff] }
0x11a8   : > { %v5062_v14 = vpop.f32.mrf.mxu0 }
0x11a9   : > { %5381 = vpow2.f32 %v3446_v8  ;;  %v3440_v6 = vsub.f32 0.0, %v3422_v36  ;;  %v3433_v24 = vadd.f32 %v5062_v14, %v6469_v59  ;;  %v3456_v53 = vmul.f32 1.442695, %v3442_v27  ;;  %v5506_v36 = vld [vmem:[%s5866_s14 + $0xf0] sm:$0xff] }
0x11aa   : > { %v3424_v58 = vpop.f32.mrf.mxu0 }
0x11ab   : > { %v3452_v46 = vmul.f32 1.442695, %v3440_v6  ;;  %v3443_v60 = vsub.f32 0.0, %v3433_v24  ;;  %v3425_v63 = vadd.f32 %v3424_v58, %v7644_v19  ;;  %v5508_v19 = vld [vmem:[%s5866_s14 + $0xf8] sm:$0xff] }
0x11ad   : > { %5383 = vpow2.f32 %v3452_v46  ;;  %v3458_v33 = vmul.f32 1.442695, %v3443_v60  ;;  %v3441_v35 = vsub.f32 0.0, %v3425_v63 }
0x11ae   : > { %5385 = vpow2.f32 %v3456_v53  ;;  %v5507_v53 = vld [vmem:[%s5866_s14 + $0xe0] sm:$0xff] }
0x11af   : > { %5387 = vpow2.f32 %v3458_v33  ;;  %v3454_v21 = vmul.f32 1.442695, %v3441_v35 }
0x11b1   : > { %5389 = vpow2.f32 %v3454_v21  ;;  %v5509_v21 = vld [vmem:[%s5866_s14 + $0xe8] sm:$0xff]  ;;  %s5670_s14 = smov [#allocation8]  }
0x11b2   : > { %v5376_v40 = vpop.eup %5375  ;;  %s5594_s28 = sshll.u32 %s5670_s14, 4  ;;  %s5595_s28 = int_to_ptr.vmem [resolvable:$false] %s5594_s28 }
0x11b3   : > { %v5378_v42 = vpop.eup %5377  ;;  %v3460_v2 = vadd.f32 1.0, %v5376_v40  ;;  %s5596_s22 = scalar_lea.vmem %s5595_s28, 8192  ;;  %p5597_p6 = scmp.lt.s32.totalorder %s7382_s10, %s5595_s28 }
0x11b4   : > { %v5380_v32 = vpop.eup %5379  ;;  %v3462_v59 = vadd.f32 1.0, %v5378_v42  ;;  %p5598_p12 = scmp.lt.s32.totalorder %s5596_s22, %s5590_s12 }
0x11b5   : > { %v3463_v18 = vadd.f32 1.0, %v5380_v32  ;;  %5391 = vrcp.f32 %v3460_v2 }
0x11b6   : > { %v5382_v1 = vpop.eup %5381  ;;  %p5599_p7 = por %p5598_p12, %p5597_p6 }
0x11b7   : > { %v3461_v52 = vadd.f32 1.0, %v5382_v1  ;;  %5393 = vrcp.f32 %v3463_v18 }
0x11b8   : > { %p5600_p9 = pnand %p5599_p7, %p5593_p2 }
0x11b9   : > { %5395 = vrcp.f32 %v3461_v52 }
0x11ba   : > { %v5384_v38 = vpop.eup %5383  ;;  %5397 = vrcp.f32 %v3462_v59 }
0x11bb   : > { %v5386_v45 = vpop.eup %5385  ;;  %v3464_v47 = vadd.f32 1.0, %v5384_v38 }
0x11bc   : > { %v5388_v31 = vpop.eup %5387  ;;  %v3466_v30 = vadd.f32 1.0, %v5386_v45 }
0x11bd   : > { %v3467_v50 = vadd.f32 1.0, %v5388_v31  ;;  %5399 = vrcp.f32 %v3464_v47 }
0x11be   : > { %v5390_v44 = vpop.eup %5389 }
0x11bf   : > { %v3465_v29 = vadd.f32 1.0, %v5390_v44  ;;  %5401 = vrcp.f32 %v3467_v50 }
0x11c1   : > { %5403 = vrcp.f32 %v3465_v29 }
0x11c2   : > { %5405 = vrcp.f32 %v3466_v30  ;;  %v5392_v62 = vpop.eup %5391 }
0x11c3   : > { %5407 = vpow2.f32 %v2962_v55 }
0x11c4   : > { %v5394_v7 = vpop.eup %5393 }
0x11c6   : > { %v5396_v10 = vpop.eup %5395 }
0x11c7   : > { %v5398_v11 = vpop.eup %5397  ;;  %v3476_v12 = vpack.c.bf16 %v5396_v10, %v5392_v62 }
0x11c8   : > { %v3477_v13 = vpack.c.bf16 %v5394_v7, %v5398_v11 }
0x11c9   : > { %5079 = vmatprep.mubr.bf16.mxu0 %v3476_v12 }
0x11ca   : > { %5080 = vmatmul.mubr.bf16.vlgmr.msra.gmra.mxu0 %v3477_v13  ;;  %v5400_v15 = vpop.eup %5399 }
0x11cc   : > { %v5402_v16 = vpop.eup %5401 }
0x11ce   : > { %v5404_v17 = vpop.eup %5403 }
0x11cf   : > { %v5406_v34 = vpop.eup %5405  ;;  %v3478_v39 = vpack.c.bf16 %v5404_v17, %v5400_v15 }
0x11d0   : > { %v3479_v22 = vpack.c.bf16 %v5402_v16, %v5406_v34  ;;  %v5408_v25 = vpop.eup %5407 }
0x11d1   : > { %5083 = vmatprep.mubr.bf16.mxu0 %v3478_v39  ;;  %v2964_v26 = vadd.f32 1.0, %v5408_v25 }
0x11d2   : > { %5084 = vmatmul.mubr.bf16.gmra.mxu0 %v3479_v22 }
0x11d3   : > { %5409 = vrcp.f32 %v2964_v26 }
0x11e0   : > { %v5410_v57 = vpop.eup %5409 }
0x11e1   : > { %v3556_v0 = vrot.slane %v5410_v57, %v7635_v56 }
0x128a   : > { %v5081_v9 = vpop.f32.mrf.mxu0 }
0x128b   : > { %v3547_v54 = vmul.f32 %v5081_v9, %v7646_v51 }
0x128c   : > { %v3514_v41 = vpop.f32.mrf.mxu0 }
0x128d   : > { %v3559_v43 = vmul.f32 %v3556_v0, %v3547_v54  ;;  %v3545_v49 = vmul.f32 %v7645_v37, %v3514_v41 }
0x128e   : > { %v5082_v5 = vpop.f32.mrf.mxu0 }
0x128f   : > { %3903 = vst [vmem:[%s6522_s3 + $0xd0] sm:$0xff] %v3559_v43  ;;  %v3557_v20 = vmul.f32 %v3556_v0, %v3545_v49  ;;  %v3548_v48 = vmul.f32 %v5082_v5, %v7647_v3 }
0x1290   : > { %v3517_v4 = vpop.f32.mrf.mxu0 }
0x1291   : > { %3901 = vst [vmem:[%s6522_s3 + $0xc0] sm:$0xff] %v3557_v20  ;;  %v3560_v56 = vmul.f32 %v3556_v0, %v3548_v48  ;;  %v3546_v23 = vmul.f32 %v7648_v61, %v3517_v4 }
0x1292   : > { %v5085_v8 = vpop.f32.mrf.mxu0 }
0x1293   : > { %3904 = vst [vmem:[%s6522_s3 + $0xd8] sm:$0xff] %v3560_v56  ;;  %v3558_v27 = vmul.f32 %v3556_v0, %v3546_v23  ;;  %v3551_v14 = vmul.f32 %v5506_v36, %v5085_v8 }
0x1294   : > { %v3530_v6 = vpop.f32.mrf.mxu0 }
0x1295   : > { %3902 = vst [vmem:[%s6522_s3 + $0xc8] sm:$0xff] %v3558_v27  ;;  %v3563_v24 = vmul.f32 %v3556_v0, %v3551_v14  ;;  %v3549_v58 = vmul.f32 %v5507_v53, %v3530_v6 }
0x1296   : > { %v5086_v46 = vpop.f32.mrf.mxu0 }
0x1297   : > { %3907 = vst [vmem:[%s6522_s3 + $0xf0] sm:$0xff] %v3563_v24  ;;  %v3561_v60 = vmul.f32 %v3556_v0, %v3549_v58  ;;  %v3552_v63 = vmul.f32 %v5508_v19, %v5086_v46 }
0x1298   : > { %v3533_v33 = vpop.f32.mrf.mxu0 }
0x1299   : > { %3905 = vst [vmem:[%s6522_s3 + $0xe0] sm:$0xff] %v3561_v60  ;;  %v3564_v35 = vmul.f32 %v3556_v0, %v3552_v63  ;;  %v3550_v40 = vmul.f32 %v5509_v21, %v3533_v33 }
0x129b   : > { %3908 = vst [vmem:[%s6522_s3 + $0xf8] sm:$0xff] %v3564_v35  ;;  %v3562_v42 = vmul.f32 %v3556_v0, %v3550_v40 }
0x129d   : > { %3906 = vst [vmem:[%s6522_s3 + $0xe8] sm:$0xff] %v3562_v42 }
0x129e   : > { %5603 = shalt.err (!%p5600_p9)
}
0x129f   : > { %s5604_s3 = scalar_lea.hbm %s7380_s29, 4096  ;;  %s5608_s13 = scalar_lea.hbm %s7438_s11, 8192 }
0x12a0   : > { %p5605_p13 = scmp.ne.s32.totalorder %s7380_s29, %s5604_s3  ;;  %p5609_p4 = scmp.lt.s32.totalorder %s7380_s29, %s7438_s11 }
0x12a1   : > { %p5610_p8 = scmp.lt.s32.totalorder %s5608_s13, %s5604_s3 }
0x12a2   : > { %p5606_p5 = pnand %p5605_p13, %p7649_p10 }
0x12a3   : > { %p5611_p3 = por %p5610_p8, %p5609_p4 }
0x12a4   : > { %p5607_p0 = pneg %p5606_p5 }
0x12a6   : > { %p5612_p11 = pnand %p5611_p3, %p5607_p0 }
0x12a8   : > { %5615 = shalt.err (!%p5612_p11)
}
0x12a9   : > { %s5671_s23 = smov 128   ;;  %s5672_s25 = smov 8  }
0x12aa   : > { %5097 = dma.vmem_to_hbm [thread:$0]  (%p7649_p10), %s7382_s10, 4096, %s7380_s29, %s3575_s21, %s5671_s23, %s5671_s23, %s5672_s25  }
0x12ab PF: > { %s3604_s12 = sand.u32 1, %s5646_s17   ;;  %p7650_p1 = scmp.ne.s32.totalorder %s7526_s24, 0 }
0x12ac   : > { %p7651_p2 = scmp.ge.s32.totalorder %s5658_s20, 2  ;;  %s3605_s14 = scalar_lea.sflag [#allocation4], %s3604_s12 }
0x12ae   : > { %p5111_p6 = pnand %p7651_p2, %p7650_p1 }
0x12b0   : > { %p5112_p12 = pneg %p5111_p6 }
0x12b2   : > { %5641 = dma.done.wait (%p5112_p12), %s3605_s14, 4096  }
0x12b3   : > { %5643 = vsyncadd (%p5112_p12), %s3605_s14, 4294963200  ;;  %s7652_s20 = sld [smem:[#allocation13_spill]]  ;;  %s7655_s17 = smov %s5650_s18 }
0x12b4   : > { %s7653_s28 = sld [smem:[#allocation12_spill]] }
0x12b5   : > { %s7654_s19 = sld [smem:[#allocation14_spill]] }
0x12b9   : > { %p25_p7 = scmp.ge.s32.totalorder %s7652_s20, 4  }
0x12ba   : > { %s7656_s18 = smov %s7653_s28 }
0x12bb   :  { %27 = sbr.rel (!%p25_p7) target bundleno = 9 (0x9), region = 127 }
0x12c0   :  { %3610 = vsyncpa [#allocation3], 1 }
0x12c1   :  { %3612 = vsyncpa [#allocation3 + $0x1], 1 }
0x12c2   :  { %3613 = vsyncpa [#allocation6], 1 }
0x12c3   :  { %3614 = vsyncpa [#allocation4], 1 }
0x12c4   :  { %3616 = vsyncpa [#allocation4 + $0x1], 1 }

</bundles_post_ra>
